<compile_context>
chip_gen: v7x
topology: tpu7x:2x2x1
jax: 0.10.0
libtpu: 0.0.40
codegen_flags: <defaults>
</compile_context>

<pallas_src>
import jax
import jax.numpy as jnp
from jax.experimental import pallas as pl
from jax.experimental.pallas import tpu as pltpu

# ---- scaled-down, structure-preserving config ----
N_EMBD = 96            # (reference: 384)
N_HEADS = 6            # (reference: 6)
HEAD_SIZE = N_EMBD // N_HEADS
N_LAYERS = 2           # (reference: 6)
BLOCK_SIZE = 32        # max sequence length (reference: 256)
VOCAB_SIZE = 64
LN_EPS = 1e-5          # torch.nn.LayerNorm default

C_PAD = 128            # n_embd padded to one full lane tile
V_PAD = 128            # vocab padded to one full lane tile
FF = 4 * N_EMBD        # 384 — already a multiple of 128, no padding needed


# ---------------------------------------------------------------------------
# Fused kernel: all transformer Blocks + lm_head for one batch element
# ---------------------------------------------------------------------------
def fused_forward_kernel(x_ref,
                         ln1g_ref, ln1b_ref, wqkv_ref, wp_ref, bproj_ref,
                         ln2g_ref, ln2b_ref, w1_ref, bf1_ref, w2_ref, bf2_ref,
                         lmw_ref, lmb_ref,
                         o_ref):
    x = x_ref[0]                       # (T, C_PAD); real data in lanes [0, N_EMBD)
    T = x.shape[0]

    lane = jax.lax.broadcasted_iota(jnp.int32, (T, C_PAD), 1)
    valid = lane < N_EMBD              # real-embedding lanes

    row = jax.lax.broadcasted_iota(jnp.int32, (T, T), 0)
    col = jax.lax.broadcasted_iota(jnp.int32, (T, T), 1)
    causal = row >= col

    inv_c = jnp.float32(1.0 / N_EMBD)

    def layer_norm(y, g, b):
        # Padded lanes of y are exactly zero, so the sum is over real lanes;
        # mask (y - mu) so the variance is over the N_EMBD real lanes only.
        mu = jnp.sum(y, axis=-1, keepdims=True) * inv_c
        d = jnp.where(valid, y - mu, 0.0)
        var = jnp.sum(d * d, axis=-1, keepdims=True) * inv_c
        # gamma/beta are zero on padded lanes -> LN output stays zero there.
        return d * jax.lax.rsqrt(var + LN_EPS) * g + b

    for l in range(N_LAYERS):
        # ---- pre-LN multi-head causal self-attention ----
        xn = layer_norm(x, ln1g_ref[l], ln1b_ref[l])
        qkv = jnp.dot(xn, wqkv_ref[l], preferred_element_type=jnp.float32)  # (T, 3*C_PAD)
        q = qkv[:, :C_PAD]             # scale n_embd**-0.5 already folded into wq
        k = qkv[:, C_PAD:2 * C_PAD]
        v = qkv[:, 2 * C_PAD:]

        att = jnp.zeros((T, C_PAD), jnp.float32)
        for h in range(N_HEADS):
            hm = (lane >= h * HEAD_SIZE) & (lane < (h + 1) * HEAD_SIZE)
            qh = jnp.where(hm, q, 0.0)
            # scores for head h: contraction only over head-h lanes (q masked)
            s = jax.lax.dot_general(qh, k, (((1,), (1,)), ((), ())),
                                    preferred_element_type=jnp.float32)      # (T, T)
            s = jnp.where(causal, s, -jnp.inf)
            s = s - jnp.max(s, axis=-1, keepdims=True)
            e = jnp.exp(s)
            p = e * pl.reciprocal(jnp.sum(e, axis=-1, keepdims=True), approx=True)
            # masked v confines this head's output to its own lane slice
            att = att + jnp.dot(p, jnp.where(hm, v, 0.0),
                                preferred_element_type=jnp.float32)

        att = jnp.dot(att, wp_ref[l], preferred_element_type=jnp.float32) + bproj_ref[l]
        x = x + att

        # ---- pre-LN feed-forward ----
        xn2 = layer_norm(x, ln2g_ref[l], ln2b_ref[l])
        h1 = jnp.dot(xn2, w1_ref[l], preferred_element_type=jnp.float32) + bf1_ref[l]
        h1 = jnp.maximum(h1, 0.0)
        x = x + jnp.dot(h1, w2_ref[l], preferred_element_type=jnp.float32) + bf2_ref[l]

    # ---- lm_head (reference forward skips self.lnf) ----
    o_ref[0] = jnp.dot(x, lmw_ref[...], preferred_element_type=jnp.float32) + lmb_ref[...]


# ---------------------------------------------------------------------------
# Wrapper
# ---------------------------------------------------------------------------
def _full_spec(w):
    # Whole (untiled) weight block; same block for every grid step (stays in VMEM).
    return pl.BlockSpec(w.shape, lambda b, _nd=w.ndim: (0,) * _nd)


def bigram_forward(idx, params):
    """idx: int32 [B, T]  ->  (logits [B, T, vocab], None)"""
    B, T = idx.shape
    pp = params["padded"]

    # Embedding gathers are tiny glue; done in plain JAX, then lane-padded.
    tok = jnp.take(params["tok_emb"], idx, axis=0)            # (B, T, N_EMBD)
    x = tok + params["pos_emb"][:T][None]
    x = jnp.pad(x, ((0, 0), (0, 0), (0, C_PAD - N_EMBD)))     # (B, T, 128)

    weights = [pp["ln1_g"], pp["ln1_b"], pp["wqkv"], pp["wp"], pp["bp"],
               pp["ln2_g"], pp["ln2_b"], pp["w1"], pp["bf1"], pp["w2"], pp["bf2"],
               pp["lm_w"], pp["lm_b"]]

    in_specs = [pl.BlockSpec((1, T, C_PAD), lambda b: (b, 0, 0))]
    in_specs += [_full_spec(w) for w in weights]

    logits_padded = pl.pallas_call(
        fused_forward_kernel,
        out_shape=jax.ShapeDtypeStruct((B, T, V_PAD), jnp.float32),
        grid=(B,),
        in_specs=in_specs,
        out_specs=pl.BlockSpec((1, T, V_PAD), lambda b: (b, 0, 0)),
        compiler_params=pltpu.CompilerParams(
            dimension_semantics=("parallel",)),       # both TCs on v7x
    )(x, *weights)

    return logits_padded[:, :, :VOCAB_SIZE], None     # targets=None path


# ---------------------------------------------------------------------------
# Parameter init (logical / unpadded) + padded-stacked prep for the kernel
# ---------------------------------------------------------------------------
def init_params(key):
    def nrm(k, shape, scale=0.02):
        return (scale * jax.random.normal(k, shape)).astype(jnp.float32)

    keys = iter(jax.random.split(key, 8 + N_LAYERS * 16))
    params = {
        "tok_emb": nrm(next(keys), (VOCAB_SIZE, N_EMBD), 1.0),
        "pos_emb": nrm(next(keys), (BLOCK_SIZE, N_EMBD), 1.0),
        "lm_w": nrm(next(keys), (N_EMBD, VOCAB_SIZE)),
        "lm_b": nrm(next(keys), (1, VOCAB_SIZE)),
        "blocks": [],
    }
    for _ in range(N_LAYERS):
        params["blocks"].append({
            "g1": jnp.ones((1, N_EMBD), jnp.float32),
            "b1": jnp.zeros((1, N_EMBD), jnp.float32),
            "wq": nrm(next(keys), (N_EMBD, N_EMBD)),
            "wk": nrm(next(keys), (N_EMBD, N_EMBD)),
            "wv": nrm(next(keys), (N_EMBD, N_EMBD)),
            "wp": nrm(next(keys), (N_EMBD, N_EMBD)),
            "bp": nrm(next(keys), (1, N_EMBD)),
            "g2": jnp.ones((1, N_EMBD), jnp.float32),
            "b2": jnp.zeros((1, N_EMBD), jnp.float32),
            "w1": nrm(next(keys), (N_EMBD, 4 * N_EMBD)),
            "bf1": nrm(next(keys), (1, 4 * N_EMBD)),
            "w2": nrm(next(keys), (4 * N_EMBD, N_EMBD)),
            "bf2": nrm(next(keys), (1, N_EMBD)),
        })
    return params


def _pad2(w, rows, cols):
    return jnp.pad(w, ((0, rows - w.shape[0]), (0, cols - w.shape[1])))


def prepare_padded(params):
    """Zero-pad to 128 lanes, fold the attention scale into wq, fuse wq|wk|wv,
    and stack the per-layer weights along a leading L axis."""
    scale = jnp.float32(N_EMBD ** (-0.5))

    def stack(fn):
        return jnp.stack([fn(bp) for bp in params["blocks"]])

    return {
        "ln1_g": stack(lambda bp: _pad2(bp["g1"], 1, C_PAD)),
        "ln1_b": stack(lambda bp: _pad2(bp["b1"], 1, C_PAD)),
        "wqkv": stack(lambda bp: jnp.concatenate(
            [_pad2(bp["wq"] * scale, C_PAD, C_PAD),
             _pad2(bp["wk"], C_PAD, C_PAD),
             _pad2(bp["wv"], C_PAD, C_PAD)], axis=1)),
        "wp": stack(lambda bp: _pad2(bp["wp"], C_PAD, C_PAD)),
        "bp": stack(lambda bp: _pad2(bp["bp"], 1, C_PAD)),
        "ln2_g": stack(lambda bp: _pad2(bp["g2"], 1, C_PAD)),
        "ln2_b": stack(lambda bp: _pad2(bp["b2"], 1, C_PAD)),
        "w1": stack(lambda bp: _pad2(bp["w1"], C_PAD, FF)),
        "bf1": stack(lambda bp: bp["bf1"]),
        "w2": stack(lambda bp: _pad2(bp["w2"], FF, C_PAD)),
        "bf2": stack(lambda bp: _pad2(bp["bf2"], 1, C_PAD)),
        "lm_w": _pad2(params["lm_w"], C_PAD, V_PAD),
        "lm_b": _pad2(params["lm_b"], 1, V_PAD),
    }


# ---------------------------------------------------------------------------
# Pure-JAX reference (unpadded) for correctness checking
# ---------------------------------------------------------------------------
def _ln(x, g, b):
    mu = jnp.mean(x, -1, keepdims=True)
    var = jnp.mean((x - mu) ** 2, -1, keepdims=True)
    return (x - mu) * jax.lax.rsqrt(var + LN_EPS) * g + b


def reference_forward(idx, params):
    B, T = idx.shape
    x = jnp.take(params["tok_emb"], idx, axis=0) + params["pos_emb"][:T][None]
    mask = jnp.tril(jnp.ones((T, T), bool))
    for bp in params["blocks"]:
        xn = _ln(x, bp["g1"], bp["b1"])
        q, k, v = xn @ bp["wq"], xn @ bp["wk"], xn @ bp["wv"]
        outs = []
        for h in range(N_HEADS):
            s = h * HEAD_SIZE
            qh, kh, vh = (t[..., s:s + HEAD_SIZE] for t in (q, k, v))
            wei = jnp.einsum("btd,bsd->bts", qh, kh) * (N_EMBD ** -0.5)
            wei = jnp.where(mask, wei, -jnp.inf)
            wei = jax.nn.softmax(wei, axis=-1)
            outs.append(jnp.einsum("bts,bsd->btd", wei, vh))
        att = jnp.concatenate(outs, -1) @ bp["wp"] + bp["bp"]
        x = x + att
        xn2 = _ln(x, bp["g2"], bp["b2"])
        h1 = jnp.maximum(xn2 @ bp["w1"] + bp["bf1"], 0.0)
        x = x + (h1 @ bp["w2"] + bp["bf2"])
    return x @ params["lm_w"] + params["lm_b"]


# ---------------------------------------------------------------------------
if __name__ == "__main__":
    key = jax.random.PRNGKey(0)
    pkey, ikey = jax.random.split(key)
    params = init_params(pkey)
    params["padded"] = prepare_padded(params)

    B, T = 2, 16   # T <= BLOCK_SIZE, multiple of 8 sublanes
    idx = jax.random.randint(ikey, (B, T), 0, VOCAB_SIZE, dtype=jnp.int32)

    logits, loss = bigram_forward(idx, params)
    logits = jax.block_until_ready(logits)
    assert logits.shape == (B, T, VOCAB_SIZE) and loss is None

    ref = jax.block_until_ready(reference_forward(idx, params))
    max_err = float(jnp.max(jnp.abs(logits - ref)))
    assert jnp.allclose(logits, ref, atol=1e-3, rtol=1e-3), max_err

    print("KERNEL_OK")
</pallas_src>

<mosaic_0001>
module attributes {stable_mosaic.version = 11 : i64} {
  func.func @fused_forward_kernel(%arg0: i32, %arg1: memref<1x16x128xf32, #tpu.memory_space<vmem>>, %arg2: memref<2x1x128xf32, #tpu.memory_space<vmem>>, %arg3: memref<2x1x128xf32, #tpu.memory_space<vmem>>, %arg4: memref<2x128x384xf32, #tpu.memory_space<vmem>>, %arg5: memref<2x128x128xf32, #tpu.memory_space<vmem>>, %arg6: memref<2x1x128xf32, #tpu.memory_space<vmem>>, %arg7: memref<2x1x128xf32, #tpu.memory_space<vmem>>, %arg8: memref<2x1x128xf32, #tpu.memory_space<vmem>>, %arg9: memref<2x128x384xf32, #tpu.memory_space<vmem>>, %arg10: memref<2x1x384xf32, #tpu.memory_space<vmem>>, %arg11: memref<2x384x128xf32, #tpu.memory_space<vmem>>, %arg12: memref<2x1x128xf32, #tpu.memory_space<vmem>>, %arg13: memref<128x128xf32, #tpu.memory_space<vmem>>, %arg14: memref<1x128xf32, #tpu.memory_space<vmem>>, %arg15: memref<1x16x128xf32, #tpu.memory_space<vmem>>) attributes {dimension_semantics = [#tpu.dimension_semantics<parallel>], iteration_bounds = array<i64: 2>, scalar_prefetch = 0 : i64, scratch_operands = 0 : i64, tpu.core_type = #tpu.core_type<tc>, window_params = [{transform_indices = @transform_0, window_bounds = array<i64: 1, 16, 128>}, {pipeline_mode = #tpu.pipeline_mode<synchronous>, transform_indices = @transform_1, window_bounds = array<i64: 2, 1, 128>}, {pipeline_mode = #tpu.pipeline_mode<synchronous>, transform_indices = @transform_2, window_bounds = array<i64: 2, 1, 128>}, {pipeline_mode = #tpu.pipeline_mode<synchronous>, transform_indices = @transform_3, window_bounds = array<i64: 2, 128, 384>}, {pipeline_mode = #tpu.pipeline_mode<synchronous>, transform_indices = @transform_4, window_bounds = array<i64: 2, 128, 128>}, {pipeline_mode = #tpu.pipeline_mode<synchronous>, transform_indices = @transform_5, window_bounds = array<i64: 2, 1, 128>}, {pipeline_mode = #tpu.pipeline_mode<synchronous>, transform_indices = @transform_6, window_bounds = array<i64: 2, 1, 128>}, {pipeline_mode = #tpu.pipeline_mode<synchronous>, transform_indices = @transform_7, window_bounds = array<i64: 2, 1, 128>}, {pipeline_mode = #tpu.pipeline_mode<synchronous>, transform_indices = @transform_8, window_bounds = array<i64: 2, 128, 384>}, {pipeline_mode = #tpu.pipeline_mode<synchronous>, transform_indices = @transform_9, window_bounds = array<i64: 2, 1, 384>}, {pipeline_mode = #tpu.pipeline_mode<synchronous>, transform_indices = @transform_10, window_bounds = array<i64: 2, 384, 128>}, {pipeline_mode = #tpu.pipeline_mode<synchronous>, transform_indices = @transform_11, window_bounds = array<i64: 2, 1, 128>}, {pipeline_mode = #tpu.pipeline_mode<synchronous>, transform_indices = @transform_12, window_bounds = array<i64: 128, 128>}, {pipeline_mode = #tpu.pipeline_mode<synchronous>, transform_indices = @transform_13, window_bounds = array<i64: 1, 128>}, {transform_indices = @transform_14, window_bounds = array<i64: 1, 16, 128>}]} {
    %c0 = arith.constant 0 : index
    %c0_0 = arith.constant 0 : index
    %c0_1 = arith.constant 0 : index
    %0 = vector.load %arg1[%c0, %c0_0, %c0_1] : memref<1x16x128xf32, #tpu.memory_space<vmem>>, vector<1x16x128xf32>
    %1 = vector.shape_cast %0 : vector<1x16x128xf32> to vector<16x128xf32>
    %2 = tpu.iota {dimensions = array<i32: 1>} : vector<16x128xi32>
    %c96_i32 = arith.constant 96 : i32
    %3 = vector.broadcast %c96_i32 : i32 to vector<16x128xi32>
    %4 = arith.cmpi slt, %2, %3 : vector<16x128xi32>
    %5 = tpu.iota {dimensions = array<i32: 0>} : vector<16x16xi32>
    %6 = tpu.iota {dimensions = array<i32: 1>} : vector<16x16xi32>
    %7 = arith.cmpi sge, %5, %6 : vector<16x16xi32>
    %c0_2 = arith.constant 0 : index
    %c0_3 = arith.constant 0 : index
    %c0_4 = arith.constant 0 : index
    %8 = vector.load %arg2[%c0_2, %c0_3, %c0_4] : memref<2x1x128xf32, #tpu.memory_space<vmem>>, vector<1x1x128xf32>
    %9 = vector.shape_cast %8 : vector<1x1x128xf32> to vector<1x128xf32>
    %c0_5 = arith.constant 0 : index
    %c0_6 = arith.constant 0 : index
    %c0_7 = arith.constant 0 : index
    %10 = vector.load %arg3[%c0_5, %c0_6, %c0_7] : memref<2x1x128xf32, #tpu.memory_space<vmem>>, vector<1x1x128xf32>
    %11 = vector.shape_cast %10 : vector<1x1x128xf32> to vector<1x128xf32>
    %cst = arith.constant dense<0.000000e+00> : vector<16xf32>
    %12 = vector.multi_reduction <add>, %1, %cst [1] : vector<16x128xf32> to vector<16xf32>
    %13 = vector.shape_cast %12 : vector<16xf32> to vector<16x1xf32>
    %cst_8 = arith.constant 0.010416667 : f32
    %14 = vector.broadcast %cst_8 : f32 to vector<16x1xf32>
    %15 = arith.mulf %13, %14 : vector<16x1xf32>
    %16 = vector.broadcast %15 : vector<16x1xf32> to vector<16x128xf32>
    %17 = arith.subf %1, %16 : vector<16x128xf32>
    %cst_9 = arith.constant 0.000000e+00 : f32
    %18 = vector.broadcast %cst_9 : f32 to vector<16x128xf32>
    %19 = arith.select %4, %17, %18 : vector<16x128xi1>, vector<16x128xf32>
    %20 = arith.mulf %19, %19 : vector<16x128xf32>
    %cst_10 = arith.constant dense<0.000000e+00> : vector<16xf32>
    %21 = vector.multi_reduction <add>, %20, %cst_10 [1] : vector<16x128xf32> to vector<16xf32>
    %22 = vector.shape_cast %21 : vector<16xf32> to vector<16x1xf32>
    %cst_11 = arith.constant 0.010416667 : f32
    %23 = vector.broadcast %cst_11 : f32 to vector<16x1xf32>
    %24 = arith.mulf %22, %23 : vector<16x1xf32>
    %cst_12 = arith.constant 9.99999974E-6 : f32
    %25 = vector.broadcast %cst_12 : f32 to vector<16x1xf32>
    %26 = arith.addf %24, %25 : vector<16x1xf32>
    %27 = math.rsqrt %26 : vector<16x1xf32>
    %28 = vector.broadcast %27 : vector<16x1xf32> to vector<16x128xf32>
    %29 = arith.mulf %19, %28 : vector<16x128xf32>
    %30 = vector.broadcast %9 : vector<1x128xf32> to vector<16x128xf32>
    %31 = arith.mulf %29, %30 : vector<16x128xf32>
    %32 = vector.broadcast %11 : vector<1x128xf32> to vector<16x128xf32>
    %33 = arith.addf %31, %32 : vector<16x128xf32>
    %c0_13 = arith.constant 0 : index
    %c0_14 = arith.constant 0 : index
    %c0_15 = arith.constant 0 : index
    %34 = vector.load %arg4[%c0_13, %c0_14, %c0_15] : memref<2x128x384xf32, #tpu.memory_space<vmem>>, vector<1x128x384xf32>
    %35 = vector.shape_cast %34 : vector<1x128x384xf32> to vector<128x384xf32>
    %cst_16 = arith.constant dense<0.000000e+00> : vector<16x384xf32>
    %36 = tpu.matmul %33, %35, %cst_16 {dimension_numbers = #tpu.dot_dimension_numbers<[1], [0], [0], [1], [0, 0, 1, 1], [], []>} : vector<16x128xf32>, vector<128x384xf32>, vector<16x384xf32> -> vector<16x384xf32>
    %37 = vector.extract_strided_slice %36 {offsets = [0, 0], sizes = [16, 128], strides = [1, 1]} : vector<16x384xf32> to vector<16x128xf32>
    %38 = vector.extract_strided_slice %36 {offsets = [0, 128], sizes = [16, 128], strides = [1, 1]} : vector<16x384xf32> to vector<16x128xf32>
    %39 = vector.extract_strided_slice %36 {offsets = [0, 256], sizes = [16, 128], strides = [1, 1]} : vector<16x384xf32> to vector<16x128xf32>
    %cst_17 = arith.constant 0.000000e+00 : f32
    %40 = vector.broadcast %cst_17 : f32 to vector<16x128xf32>
    %c0_i32 = arith.constant 0 : i32
    %41 = vector.broadcast %c0_i32 : i32 to vector<16x128xi32>
    %42 = arith.cmpi sge, %2, %41 : vector<16x128xi32>
    %c16_i32 = arith.constant 16 : i32
    %43 = vector.broadcast %c16_i32 : i32 to vector<16x128xi32>
    %44 = arith.cmpi slt, %2, %43 : vector<16x128xi32>
    %45 = arith.andi %42, %44 : vector<16x128xi1>
    %cst_18 = arith.constant 0.000000e+00 : f32
    %46 = vector.broadcast %cst_18 : f32 to vector<16x128xf32>
    %47 = arith.select %45, %37, %46 : vector<16x128xi1>, vector<16x128xf32>
    %cst_19 = arith.constant dense<0.000000e+00> : vector<16x16xf32>
    %48 = tpu.matmul %47, %38, %cst_19 {dimension_numbers = #tpu.dot_dimension_numbers<[1], [1], [0], [0], [0, 0, 1, 0], [], []>} : vector<16x128xf32>, vector<16x128xf32>, vector<16x16xf32> -> vector<16x16xf32>
    %cst_20 = arith.constant 0xFF800000 : f32
    %49 = vector.broadcast %cst_20 : f32 to vector<16x16xf32>
    %50 = arith.select %7, %48, %49 : vector<16x16xi1>, vector<16x16xf32>
    %cst_21 = arith.constant dense<0xFF800000> : vector<16xf32>
    %51 = vector.multi_reduction <maximumf>, %50, %cst_21 [1] : vector<16x16xf32> to vector<16xf32>
    %52 = vector.shape_cast %51 : vector<16xf32> to vector<16x1xf32>
    %53 = vector.broadcast %52 : vector<16x1xf32> to vector<16x16xf32>
    %54 = arith.subf %50, %53 : vector<16x16xf32>
    %55 = math.exp %54 : vector<16x16xf32>
    %cst_22 = arith.constant dense<0.000000e+00> : vector<16xf32>
    %56 = vector.multi_reduction <add>, %55, %cst_22 [1] : vector<16x16xf32> to vector<16xf32>
    %57 = vector.shape_cast %56 : vector<16xf32> to vector<16x1xf32>
    %58 = tpu.reciprocal %57 {approx = true} : vector<16x1xf32> -> vector<16x1xf32>
    %59 = vector.broadcast %58 : vector<16x1xf32> to vector<16x16xf32>
    %60 = arith.mulf %55, %59 : vector<16x16xf32>
    %cst_23 = arith.constant 0.000000e+00 : f32
    %61 = vector.broadcast %cst_23 : f32 to vector<16x128xf32>
    %62 = arith.select %45, %39, %61 : vector<16x128xi1>, vector<16x128xf32>
    %cst_24 = arith.constant dense<0.000000e+00> : vector<16x128xf32>
    %63 = tpu.matmul %60, %62, %cst_24 {dimension_numbers = #tpu.dot_dimension_numbers<[1], [0], [0], [1], [0, 0, 1, 1], [], []>} : vector<16x16xf32>, vector<16x128xf32>, vector<16x128xf32> -> vector<16x128xf32>
    %64 = arith.addf %40, %63 : vector<16x128xf32>
    %c16_i32_25 = arith.constant 16 : i32
    %65 = vector.broadcast %c16_i32_25 : i32 to vector<16x128xi32>
    %66 = arith.cmpi sge, %2, %65 : vector<16x128xi32>
    %c32_i32 = arith.constant 32 : i32
    %67 = vector.broadcast %c32_i32 : i32 to vector<16x128xi32>
    %68 = arith.cmpi slt, %2, %67 : vector<16x128xi32>
    %69 = arith.andi %66, %68 : vector<16x128xi1>
    %cst_26 = arith.constant 0.000000e+00 : f32
    %70 = vector.broadcast %cst_26 : f32 to vector<16x128xf32>
    %71 = arith.select %69, %37, %70 : vector<16x128xi1>, vector<16x128xf32>
    %cst_27 = arith.constant dense<0.000000e+00> : vector<16x16xf32>
    %72 = tpu.matmul %71, %38, %cst_27 {dimension_numbers = #tpu.dot_dimension_numbers<[1], [1], [0], [0], [0, 0, 1, 0], [], []>} : vector<16x128xf32>, vector<16x128xf32>, vector<16x16xf32> -> vector<16x16xf32>
    %cst_28 = arith.constant 0xFF800000 : f32
    %73 = vector.broadcast %cst_28 : f32 to vector<16x16xf32>
    %74 = arith.select %7, %72, %73 : vector<16x16xi1>, vector<16x16xf32>
    %cst_29 = arith.constant dense<0xFF800000> : vector<16xf32>
    %75 = vector.multi_reduction <maximumf>, %74, %cst_29 [1] : vector<16x16xf32> to vector<16xf32>
    %76 = vector.shape_cast %75 : vector<16xf32> to vector<16x1xf32>
    %77 = vector.broadcast %76 : vector<16x1xf32> to vector<16x16xf32>
    %78 = arith.subf %74, %77 : vector<16x16xf32>
    %79 = math.exp %78 : vector<16x16xf32>
    %cst_30 = arith.constant dense<0.000000e+00> : vector<16xf32>
    %80 = vector.multi_reduction <add>, %79, %cst_30 [1] : vector<16x16xf32> to vector<16xf32>
    %81 = vector.shape_cast %80 : vector<16xf32> to vector<16x1xf32>
    %82 = tpu.reciprocal %81 {approx = true} : vector<16x1xf32> -> vector<16x1xf32>
    %83 = vector.broadcast %82 : vector<16x1xf32> to vector<16x16xf32>
    %84 = arith.mulf %79, %83 : vector<16x16xf32>
    %cst_31 = arith.constant 0.000000e+00 : f32
    %85 = vector.broadcast %cst_31 : f32 to vector<16x128xf32>
    %86 = arith.select %69, %39, %85 : vector<16x128xi1>, vector<16x128xf32>
    %cst_32 = arith.constant dense<0.000000e+00> : vector<16x128xf32>
    %87 = tpu.matmul %84, %86, %cst_32 {dimension_numbers = #tpu.dot_dimension_numbers<[1], [0], [0], [1], [0, 0, 1, 1], [], []>} : vector<16x16xf32>, vector<16x128xf32>, vector<16x128xf32> -> vector<16x128xf32>
    %88 = arith.addf %64, %87 : vector<16x128xf32>
    %c32_i32_33 = arith.constant 32 : i32
    %89 = vector.broadcast %c32_i32_33 : i32 to vector<16x128xi32>
    %90 = arith.cmpi sge, %2, %89 : vector<16x128xi32>
    %c48_i32 = arith.constant 48 : i32
    %91 = vector.broadcast %c48_i32 : i32 to vector<16x128xi32>
    %92 = arith.cmpi slt, %2, %91 : vector<16x128xi32>
    %93 = arith.andi %90, %92 : vector<16x128xi1>
    %cst_34 = arith.constant 0.000000e+00 : f32
    %94 = vector.broadcast %cst_34 : f32 to vector<16x128xf32>
    %95 = arith.select %93, %37, %94 : vector<16x128xi1>, vector<16x128xf32>
    %cst_35 = arith.constant dense<0.000000e+00> : vector<16x16xf32>
    %96 = tpu.matmul %95, %38, %cst_35 {dimension_numbers = #tpu.dot_dimension_numbers<[1], [1], [0], [0], [0, 0, 1, 0], [], []>} : vector<16x128xf32>, vector<16x128xf32>, vector<16x16xf32> -> vector<16x16xf32>
    %cst_36 = arith.constant 0xFF800000 : f32
    %97 = vector.broadcast %cst_36 : f32 to vector<16x16xf32>
    %98 = arith.select %7, %96, %97 : vector<16x16xi1>, vector<16x16xf32>
    %cst_37 = arith.constant dense<0xFF800000> : vector<16xf32>
    %99 = vector.multi_reduction <maximumf>, %98, %cst_37 [1] : vector<16x16xf32> to vector<16xf32>
    %100 = vector.shape_cast %99 : vector<16xf32> to vector<16x1xf32>
    %101 = vector.broadcast %100 : vector<16x1xf32> to vector<16x16xf32>
    %102 = arith.subf %98, %101 : vector<16x16xf32>
    %103 = math.exp %102 : vector<16x16xf32>
    %cst_38 = arith.constant dense<0.000000e+00> : vector<16xf32>
    %104 = vector.multi_reduction <add>, %103, %cst_38 [1] : vector<16x16xf32> to vector<16xf32>
    %105 = vector.shape_cast %104 : vector<16xf32> to vector<16x1xf32>
    %106 = tpu.reciprocal %105 {approx = true} : vector<16x1xf32> -> vector<16x1xf32>
    %107 = vector.broadcast %106 : vector<16x1xf32> to vector<16x16xf32>
    %108 = arith.mulf %103, %107 : vector<16x16xf32>
    %cst_39 = arith.constant 0.000000e+00 : f32
    %109 = vector.broadcast %cst_39 : f32 to vector<16x128xf32>
    %110 = arith.select %93, %39, %109 : vector<16x128xi1>, vector<16x128xf32>
    %cst_40 = arith.constant dense<0.000000e+00> : vector<16x128xf32>
    %111 = tpu.matmul %108, %110, %cst_40 {dimension_numbers = #tpu.dot_dimension_numbers<[1], [0], [0], [1], [0, 0, 1, 1], [], []>} : vector<16x16xf32>, vector<16x128xf32>, vector<16x128xf32> -> vector<16x128xf32>
    %112 = arith.addf %88, %111 : vector<16x128xf32>
    %c48_i32_41 = arith.constant 48 : i32
    %113 = vector.broadcast %c48_i32_41 : i32 to vector<16x128xi32>
    %114 = arith.cmpi sge, %2, %113 : vector<16x128xi32>
    %c64_i32 = arith.constant 64 : i32
    %115 = vector.broadcast %c64_i32 : i32 to vector<16x128xi32>
    %116 = arith.cmpi slt, %2, %115 : vector<16x128xi32>
    %117 = arith.andi %114, %116 : vector<16x128xi1>
    %cst_42 = arith.constant 0.000000e+00 : f32
    %118 = vector.broadcast %cst_42 : f32 to vector<16x128xf32>
    %119 = arith.select %117, %37, %118 : vector<16x128xi1>, vector<16x128xf32>
    %cst_43 = arith.constant dense<0.000000e+00> : vector<16x16xf32>
    %120 = tpu.matmul %119, %38, %cst_43 {dimension_numbers = #tpu.dot_dimension_numbers<[1], [1], [0], [0], [0, 0, 1, 0], [], []>} : vector<16x128xf32>, vector<16x128xf32>, vector<16x16xf32> -> vector<16x16xf32>
    %cst_44 = arith.constant 0xFF800000 : f32
    %121 = vector.broadcast %cst_44 : f32 to vector<16x16xf32>
    %122 = arith.select %7, %120, %121 : vector<16x16xi1>, vector<16x16xf32>
    %cst_45 = arith.constant dense<0xFF800000> : vector<16xf32>
    %123 = vector.multi_reduction <maximumf>, %122, %cst_45 [1] : vector<16x16xf32> to vector<16xf32>
    %124 = vector.shape_cast %123 : vector<16xf32> to vector<16x1xf32>
    %125 = vector.broadcast %124 : vector<16x1xf32> to vector<16x16xf32>
    %126 = arith.subf %122, %125 : vector<16x16xf32>
    %127 = math.exp %126 : vector<16x16xf32>
    %cst_46 = arith.constant dense<0.000000e+00> : vector<16xf32>
    %128 = vector.multi_reduction <add>, %127, %cst_46 [1] : vector<16x16xf32> to vector<16xf32>
    %129 = vector.shape_cast %128 : vector<16xf32> to vector<16x1xf32>
    %130 = tpu.reciprocal %129 {approx = true} : vector<16x1xf32> -> vector<16x1xf32>
    %131 = vector.broadcast %130 : vector<16x1xf32> to vector<16x16xf32>
    %132 = arith.mulf %127, %131 : vector<16x16xf32>
    %cst_47 = arith.constant 0.000000e+00 : f32
    %133 = vector.broadcast %cst_47 : f32 to vector<16x128xf32>
    %134 = arith.select %117, %39, %133 : vector<16x128xi1>, vector<16x128xf32>
    %cst_48 = arith.constant dense<0.000000e+00> : vector<16x128xf32>
    %135 = tpu.matmul %132, %134, %cst_48 {dimension_numbers = #tpu.dot_dimension_numbers<[1], [0], [0], [1], [0, 0, 1, 1], [], []>} : vector<16x16xf32>, vector<16x128xf32>, vector<16x128xf32> -> vector<16x128xf32>
    %136 = arith.addf %112, %135 : vector<16x128xf32>
    %c64_i32_49 = arith.constant 64 : i32
    %137 = vector.broadcast %c64_i32_49 : i32 to vector<16x128xi32>
    %138 = arith.cmpi sge, %2, %137 : vector<16x128xi32>
    %c80_i32 = arith.constant 80 : i32
    %139 = vector.broadcast %c80_i32 : i32 to vector<16x128xi32>
    %140 = arith.cmpi slt, %2, %139 : vector<16x128xi32>
    %141 = arith.andi %138, %140 : vector<16x128xi1>
    %cst_50 = arith.constant 0.000000e+00 : f32
    %142 = vector.broadcast %cst_50 : f32 to vector<16x128xf32>
    %143 = arith.select %141, %37, %142 : vector<16x128xi1>, vector<16x128xf32>
    %cst_51 = arith.constant dense<0.000000e+00> : vector<16x16xf32>
    %144 = tpu.matmul %143, %38, %cst_51 {dimension_numbers = #tpu.dot_dimension_numbers<[1], [1], [0], [0], [0, 0, 1, 0], [], []>} : vector<16x128xf32>, vector<16x128xf32>, vector<16x16xf32> -> vector<16x16xf32>
    %cst_52 = arith.constant 0xFF800000 : f32
    %145 = vector.broadcast %cst_52 : f32 to vector<16x16xf32>
    %146 = arith.select %7, %144, %145 : vector<16x16xi1>, vector<16x16xf32>
    %cst_53 = arith.constant dense<0xFF800000> : vector<16xf32>
    %147 = vector.multi_reduction <maximumf>, %146, %cst_53 [1] : vector<16x16xf32> to vector<16xf32>
    %148 = vector.shape_cast %147 : vector<16xf32> to vector<16x1xf32>
    %149 = vector.broadcast %148 : vector<16x1xf32> to vector<16x16xf32>
    %150 = arith.subf %146, %149 : vector<16x16xf32>
    %151 = math.exp %150 : vector<16x16xf32>
    %cst_54 = arith.constant dense<0.000000e+00> : vector<16xf32>
    %152 = vector.multi_reduction <add>, %151, %cst_54 [1] : vector<16x16xf32> to vector<16xf32>
    %153 = vector.shape_cast %152 : vector<16xf32> to vector<16x1xf32>
    %154 = tpu.reciprocal %153 {approx = true} : vector<16x1xf32> -> vector<16x1xf32>
    %155 = vector.broadcast %154 : vector<16x1xf32> to vector<16x16xf32>
    %156 = arith.mulf %151, %155 : vector<16x16xf32>
    %cst_55 = arith.constant 0.000000e+00 : f32
    %157 = vector.broadcast %cst_55 : f32 to vector<16x128xf32>
    %158 = arith.select %141, %39, %157 : vector<16x128xi1>, vector<16x128xf32>
    %cst_56 = arith.constant dense<0.000000e+00> : vector<16x128xf32>
    %159 = tpu.matmul %156, %158, %cst_56 {dimension_numbers = #tpu.dot_dimension_numbers<[1], [0], [0], [1], [0, 0, 1, 1], [], []>} : vector<16x16xf32>, vector<16x128xf32>, vector<16x128xf32> -> vector<16x128xf32>
    %160 = arith.addf %136, %159 : vector<16x128xf32>
    %c80_i32_57 = arith.constant 80 : i32
    %161 = vector.broadcast %c80_i32_57 : i32 to vector<16x128xi32>
    %162 = arith.cmpi sge, %2, %161 : vector<16x128xi32>
    %c96_i32_58 = arith.constant 96 : i32
    %163 = vector.broadcast %c96_i32_58 : i32 to vector<16x128xi32>
    %164 = arith.cmpi slt, %2, %163 : vector<16x128xi32>
    %165 = arith.andi %162, %164 : vector<16x128xi1>
    %cst_59 = arith.constant 0.000000e+00 : f32
    %166 = vector.broadcast %cst_59 : f32 to vector<16x128xf32>
    %167 = arith.select %165, %37, %166 : vector<16x128xi1>, vector<16x128xf32>
    %cst_60 = arith.constant dense<0.000000e+00> : vector<16x16xf32>
    %168 = tpu.matmul %167, %38, %cst_60 {dimension_numbers = #tpu.dot_dimension_numbers<[1], [1], [0], [0], [0, 0, 1, 0], [], []>} : vector<16x128xf32>, vector<16x128xf32>, vector<16x16xf32> -> vector<16x16xf32>
    %cst_61 = arith.constant 0xFF800000 : f32
    %169 = vector.broadcast %cst_61 : f32 to vector<16x16xf32>
    %170 = arith.select %7, %168, %169 : vector<16x16xi1>, vector<16x16xf32>
    %cst_62 = arith.constant dense<0xFF800000> : vector<16xf32>
    %171 = vector.multi_reduction <maximumf>, %170, %cst_62 [1] : vector<16x16xf32> to vector<16xf32>
    %172 = vector.shape_cast %171 : vector<16xf32> to vector<16x1xf32>
    %173 = vector.broadcast %172 : vector<16x1xf32> to vector<16x16xf32>
    %174 = arith.subf %170, %173 : vector<16x16xf32>
    %175 = math.exp %174 : vector<16x16xf32>
    %cst_63 = arith.constant dense<0.000000e+00> : vector<16xf32>
    %176 = vector.multi_reduction <add>, %175, %cst_63 [1] : vector<16x16xf32> to vector<16xf32>
    %177 = vector.shape_cast %176 : vector<16xf32> to vector<16x1xf32>
    %178 = tpu.reciprocal %177 {approx = true} : vector<16x1xf32> -> vector<16x1xf32>
    %179 = vector.broadcast %178 : vector<16x1xf32> to vector<16x16xf32>
    %180 = arith.mulf %175, %179 : vector<16x16xf32>
    %cst_64 = arith.constant 0.000000e+00 : f32
    %181 = vector.broadcast %cst_64 : f32 to vector<16x128xf32>
    %182 = arith.select %165, %39, %181 : vector<16x128xi1>, vector<16x128xf32>
    %cst_65 = arith.constant dense<0.000000e+00> : vector<16x128xf32>
    %183 = tpu.matmul %180, %182, %cst_65 {dimension_numbers = #tpu.dot_dimension_numbers<[1], [0], [0], [1], [0, 0, 1, 1], [], []>} : vector<16x16xf32>, vector<16x128xf32>, vector<16x128xf32> -> vector<16x128xf32>
    %184 = arith.addf %160, %183 : vector<16x128xf32>
    %c0_66 = arith.constant 0 : index
    %c0_67 = arith.constant 0 : index
    %c0_68 = arith.constant 0 : index
    %185 = vector.load %arg5[%c0_66, %c0_67, %c0_68] : memref<2x128x128xf32, #tpu.memory_space<vmem>>, vector<1x128x128xf32>
    %186 = vector.shape_cast %185 : vector<1x128x128xf32> to vector<128x128xf32>
    %cst_69 = arith.constant dense<0.000000e+00> : vector<16x128xf32>
    %187 = tpu.matmul %184, %186, %cst_69 {dimension_numbers = #tpu.dot_dimension_numbers<[1], [0], [0], [1], [0, 0, 1, 1], [], []>} : vector<16x128xf32>, vector<128x128xf32>, vector<16x128xf32> -> vector<16x128xf32>
    %c0_70 = arith.constant 0 : index
    %c0_71 = arith.constant 0 : index
    %c0_72 = arith.constant 0 : index
    %188 = vector.load %arg6[%c0_70, %c0_71, %c0_72] : memref<2x1x128xf32, #tpu.memory_space<vmem>>, vector<1x1x128xf32>
    %189 = vector.shape_cast %188 : vector<1x1x128xf32> to vector<1x128xf32>
    %190 = vector.broadcast %189 : vector<1x128xf32> to vector<16x128xf32>
    %191 = arith.addf %187, %190 : vector<16x128xf32>
    %192 = arith.addf %1, %191 : vector<16x128xf32>
    %c0_73 = arith.constant 0 : index
    %c0_74 = arith.constant 0 : index
    %c0_75 = arith.constant 0 : index
    %193 = vector.load %arg7[%c0_73, %c0_74, %c0_75] : memref<2x1x128xf32, #tpu.memory_space<vmem>>, vector<1x1x128xf32>
    %194 = vector.shape_cast %193 : vector<1x1x128xf32> to vector<1x128xf32>
    %c0_76 = arith.constant 0 : index
    %c0_77 = arith.constant 0 : index
    %c0_78 = arith.constant 0 : index
    %195 = vector.load %arg8[%c0_76, %c0_77, %c0_78] : memref<2x1x128xf32, #tpu.memory_space<vmem>>, vector<1x1x128xf32>
    %196 = vector.shape_cast %195 : vector<1x1x128xf32> to vector<1x128xf32>
    %cst_79 = arith.constant dense<0.000000e+00> : vector<16xf32>
    %197 = vector.multi_reduction <add>, %192, %cst_79 [1] : vector<16x128xf32> to vector<16xf32>
    %198 = vector.shape_cast %197 : vector<16xf32> to vector<16x1xf32>
    %cst_80 = arith.constant 0.010416667 : f32
    %199 = vector.broadcast %cst_80 : f32 to vector<16x1xf32>
    %200 = arith.mulf %198, %199 : vector<16x1xf32>
    %201 = vector.broadcast %200 : vector<16x1xf32> to vector<16x128xf32>
    %202 = arith.subf %192, %201 : vector<16x128xf32>
    %cst_81 = arith.constant 0.000000e+00 : f32
    %203 = vector.broadcast %cst_81 : f32 to vector<16x128xf32>
    %204 = arith.select %4, %202, %203 : vector<16x128xi1>, vector<16x128xf32>
    %205 = arith.mulf %204, %204 : vector<16x128xf32>
    %cst_82 = arith.constant dense<0.000000e+00> : vector<16xf32>
    %206 = vector.multi_reduction <add>, %205, %cst_82 [1] : vector<16x128xf32> to vector<16xf32>
    %207 = vector.shape_cast %206 : vector<16xf32> to vector<16x1xf32>
    %cst_83 = arith.constant 0.010416667 : f32
    %208 = vector.broadcast %cst_83 : f32 to vector<16x1xf32>
    %209 = arith.mulf %207, %208 : vector<16x1xf32>
    %cst_84 = arith.constant 9.99999974E-6 : f32
    %210 = vector.broadcast %cst_84 : f32 to vector<16x1xf32>
    %211 = arith.addf %209, %210 : vector<16x1xf32>
    %212 = math.rsqrt %211 : vector<16x1xf32>
    %213 = vector.broadcast %212 : vector<16x1xf32> to vector<16x128xf32>
    %214 = arith.mulf %204, %213 : vector<16x128xf32>
    %215 = vector.broadcast %194 : vector<1x128xf32> to vector<16x128xf32>
    %216 = arith.mulf %214, %215 : vector<16x128xf32>
    %217 = vector.broadcast %196 : vector<1x128xf32> to vector<16x128xf32>
    %218 = arith.addf %216, %217 : vector<16x128xf32>
    %c0_85 = arith.constant 0 : index
    %c0_86 = arith.constant 0 : index
    %c0_87 = arith.constant 0 : index
    %219 = vector.load %arg9[%c0_85, %c0_86, %c0_87] : memref<2x128x384xf32, #tpu.memory_space<vmem>>, vector<1x128x384xf32>
    %220 = vector.shape_cast %219 : vector<1x128x384xf32> to vector<128x384xf32>
    %cst_88 = arith.constant dense<0.000000e+00> : vector<16x384xf32>
    %221 = tpu.matmul %218, %220, %cst_88 {dimension_numbers = #tpu.dot_dimension_numbers<[1], [0], [0], [1], [0, 0, 1, 1], [], []>} : vector<16x128xf32>, vector<128x384xf32>, vector<16x384xf32> -> vector<16x384xf32>
    %c0_89 = arith.constant 0 : index
    %c0_90 = arith.constant 0 : index
    %c0_91 = arith.constant 0 : index
    %222 = vector.load %arg10[%c0_89, %c0_90, %c0_91] : memref<2x1x384xf32, #tpu.memory_space<vmem>>, vector<1x1x384xf32>
    %223 = vector.shape_cast %222 : vector<1x1x384xf32> to vector<1x384xf32>
    %224 = vector.broadcast %223 : vector<1x384xf32> to vector<16x384xf32>
    %225 = arith.addf %221, %224 : vector<16x384xf32>
    %cst_92 = arith.constant 0.000000e+00 : f32
    %226 = vector.broadcast %cst_92 : f32 to vector<16x384xf32>
    %227 = arith.maximumf %225, %226 : vector<16x384xf32>
    %c0_93 = arith.constant 0 : index
    %c0_94 = arith.constant 0 : index
    %c0_95 = arith.constant 0 : index
    %228 = vector.load %arg11[%c0_93, %c0_94, %c0_95] : memref<2x384x128xf32, #tpu.memory_space<vmem>>, vector<1x384x128xf32>
    %229 = vector.shape_cast %228 : vector<1x384x128xf32> to vector<384x128xf32>
    %cst_96 = arith.constant dense<0.000000e+00> : vector<16x128xf32>
    %230 = tpu.matmul %227, %229, %cst_96 {dimension_numbers = #tpu.dot_dimension_numbers<[1], [0], [0], [1], [0, 0, 1, 1], [], []>} : vector<16x384xf32>, vector<384x128xf32>, vector<16x128xf32> -> vector<16x128xf32>
    %231 = arith.addf %192, %230 : vector<16x128xf32>
    %c0_97 = arith.constant 0 : index
    %c0_98 = arith.constant 0 : index
    %c0_99 = arith.constant 0 : index
    %232 = vector.load %arg12[%c0_97, %c0_98, %c0_99] : memref<2x1x128xf32, #tpu.memory_space<vmem>>, vector<1x1x128xf32>
    %233 = vector.shape_cast %232 : vector<1x1x128xf32> to vector<1x128xf32>
    %234 = vector.broadcast %233 : vector<1x128xf32> to vector<16x128xf32>
    %235 = arith.addf %231, %234 : vector<16x128xf32>
    %c1 = arith.constant 1 : index
    %c0_100 = arith.constant 0 : index
    %c0_101 = arith.constant 0 : index
    %236 = vector.load %arg2[%c1, %c0_100, %c0_101] : memref<2x1x128xf32, #tpu.memory_space<vmem>>, vector<1x1x128xf32>
    %237 = vector.shape_cast %236 : vector<1x1x128xf32> to vector<1x128xf32>
    %c1_102 = arith.constant 1 : index
    %c0_103 = arith.constant 0 : index
    %c0_104 = arith.constant 0 : index
    %238 = vector.load %arg3[%c1_102, %c0_103, %c0_104] : memref<2x1x128xf32, #tpu.memory_space<vmem>>, vector<1x1x128xf32>
    %239 = vector.shape_cast %238 : vector<1x1x128xf32> to vector<1x128xf32>
    %cst_105 = arith.constant dense<0.000000e+00> : vector<16xf32>
    %240 = vector.multi_reduction <add>, %235, %cst_105 [1] : vector<16x128xf32> to vector<16xf32>
    %241 = vector.shape_cast %240 : vector<16xf32> to vector<16x1xf32>
    %cst_106 = arith.constant 0.010416667 : f32
    %242 = vector.broadcast %cst_106 : f32 to vector<16x1xf32>
    %243 = arith.mulf %241, %242 : vector<16x1xf32>
    %244 = vector.broadcast %243 : vector<16x1xf32> to vector<16x128xf32>
    %245 = arith.subf %235, %244 : vector<16x128xf32>
    %cst_107 = arith.constant 0.000000e+00 : f32
    %246 = vector.broadcast %cst_107 : f32 to vector<16x128xf32>
    %247 = arith.select %4, %245, %246 : vector<16x128xi1>, vector<16x128xf32>
    %248 = arith.mulf %247, %247 : vector<16x128xf32>
    %cst_108 = arith.constant dense<0.000000e+00> : vector<16xf32>
    %249 = vector.multi_reduction <add>, %248, %cst_108 [1] : vector<16x128xf32> to vector<16xf32>
    %250 = vector.shape_cast %249 : vector<16xf32> to vector<16x1xf32>
    %cst_109 = arith.constant 0.010416667 : f32
    %251 = vector.broadcast %cst_109 : f32 to vector<16x1xf32>
    %252 = arith.mulf %250, %251 : vector<16x1xf32>
    %cst_110 = arith.constant 9.99999974E-6 : f32
    %253 = vector.broadcast %cst_110 : f32 to vector<16x1xf32>
    %254 = arith.addf %252, %253 : vector<16x1xf32>
    %255 = math.rsqrt %254 : vector<16x1xf32>
    %256 = vector.broadcast %255 : vector<16x1xf32> to vector<16x128xf32>
    %257 = arith.mulf %247, %256 : vector<16x128xf32>
    %258 = vector.broadcast %237 : vector<1x128xf32> to vector<16x128xf32>
    %259 = arith.mulf %257, %258 : vector<16x128xf32>
    %260 = vector.broadcast %239 : vector<1x128xf32> to vector<16x128xf32>
    %261 = arith.addf %259, %260 : vector<16x128xf32>
    %c1_111 = arith.constant 1 : index
    %c0_112 = arith.constant 0 : index
    %c0_113 = arith.constant 0 : index
    %262 = vector.load %arg4[%c1_111, %c0_112, %c0_113] : memref<2x128x384xf32, #tpu.memory_space<vmem>>, vector<1x128x384xf32>
    %263 = vector.shape_cast %262 : vector<1x128x384xf32> to vector<128x384xf32>
    %cst_114 = arith.constant dense<0.000000e+00> : vector<16x384xf32>
    %264 = tpu.matmul %261, %263, %cst_114 {dimension_numbers = #tpu.dot_dimension_numbers<[1], [0], [0], [1], [0, 0, 1, 1], [], []>} : vector<16x128xf32>, vector<128x384xf32>, vector<16x384xf32> -> vector<16x384xf32>
    %265 = vector.extract_strided_slice %264 {offsets = [0, 0], sizes = [16, 128], strides = [1, 1]} : vector<16x384xf32> to vector<16x128xf32>
    %266 = vector.extract_strided_slice %264 {offsets = [0, 128], sizes = [16, 128], strides = [1, 1]} : vector<16x384xf32> to vector<16x128xf32>
    %267 = vector.extract_strided_slice %264 {offsets = [0, 256], sizes = [16, 128], strides = [1, 1]} : vector<16x384xf32> to vector<16x128xf32>
    %cst_115 = arith.constant 0.000000e+00 : f32
    %268 = vector.broadcast %cst_115 : f32 to vector<16x128xf32>
    %c0_i32_116 = arith.constant 0 : i32
    %269 = vector.broadcast %c0_i32_116 : i32 to vector<16x128xi32>
    %270 = arith.cmpi sge, %2, %269 : vector<16x128xi32>
    %c16_i32_117 = arith.constant 16 : i32
    %271 = vector.broadcast %c16_i32_117 : i32 to vector<16x128xi32>
    %272 = arith.cmpi slt, %2, %271 : vector<16x128xi32>
    %273 = arith.andi %270, %272 : vector<16x128xi1>
    %cst_118 = arith.constant 0.000000e+00 : f32
    %274 = vector.broadcast %cst_118 : f32 to vector<16x128xf32>
    %275 = arith.select %273, %265, %274 : vector<16x128xi1>, vector<16x128xf32>
    %cst_119 = arith.constant dense<0.000000e+00> : vector<16x16xf32>
    %276 = tpu.matmul %275, %266, %cst_119 {dimension_numbers = #tpu.dot_dimension_numbers<[1], [1], [0], [0], [0, 0, 1, 0], [], []>} : vector<16x128xf32>, vector<16x128xf32>, vector<16x16xf32> -> vector<16x16xf32>
    %cst_120 = arith.constant 0xFF800000 : f32
    %277 = vector.broadcast %cst_120 : f32 to vector<16x16xf32>
    %278 = arith.select %7, %276, %277 : vector<16x16xi1>, vector<16x16xf32>
    %cst_121 = arith.constant dense<0xFF800000> : vector<16xf32>
    %279 = vector.multi_reduction <maximumf>, %278, %cst_121 [1] : vector<16x16xf32> to vector<16xf32>
    %280 = vector.shape_cast %279 : vector<16xf32> to vector<16x1xf32>
    %281 = vector.broadcast %280 : vector<16x1xf32> to vector<16x16xf32>
    %282 = arith.subf %278, %281 : vector<16x16xf32>
    %283 = math.exp %282 : vector<16x16xf32>
    %cst_122 = arith.constant dense<0.000000e+00> : vector<16xf32>
    %284 = vector.multi_reduction <add>, %283, %cst_122 [1] : vector<16x16xf32> to vector<16xf32>
    %285 = vector.shape_cast %284 : vector<16xf32> to vector<16x1xf32>
    %286 = tpu.reciprocal %285 {approx = true} : vector<16x1xf32> -> vector<16x1xf32>
    %287 = vector.broadcast %286 : vector<16x1xf32> to vector<16x16xf32>
    %288 = arith.mulf %283, %287 : vector<16x16xf32>
    %cst_123 = arith.constant 0.000000e+00 : f32
    %289 = vector.broadcast %cst_123 : f32 to vector<16x128xf32>
    %290 = arith.select %273, %267, %289 : vector<16x128xi1>, vector<16x128xf32>
    %cst_124 = arith.constant dense<0.000000e+00> : vector<16x128xf32>
    %291 = tpu.matmul %288, %290, %cst_124 {dimension_numbers = #tpu.dot_dimension_numbers<[1], [0], [0], [1], [0, 0, 1, 1], [], []>} : vector<16x16xf32>, vector<16x128xf32>, vector<16x128xf32> -> vector<16x128xf32>
    %292 = arith.addf %268, %291 : vector<16x128xf32>
    %c16_i32_125 = arith.constant 16 : i32
    %293 = vector.broadcast %c16_i32_125 : i32 to vector<16x128xi32>
    %294 = arith.cmpi sge, %2, %293 : vector<16x128xi32>
    %c32_i32_126 = arith.constant 32 : i32
    %295 = vector.broadcast %c32_i32_126 : i32 to vector<16x128xi32>
    %296 = arith.cmpi slt, %2, %295 : vector<16x128xi32>
    %297 = arith.andi %294, %296 : vector<16x128xi1>
    %cst_127 = arith.constant 0.000000e+00 : f32
    %298 = vector.broadcast %cst_127 : f32 to vector<16x128xf32>
    %299 = arith.select %297, %265, %298 : vector<16x128xi1>, vector<16x128xf32>
    %cst_128 = arith.constant dense<0.000000e+00> : vector<16x16xf32>
    %300 = tpu.matmul %299, %266, %cst_128 {dimension_numbers = #tpu.dot_dimension_numbers<[1], [1], [0], [0], [0, 0, 1, 0], [], []>} : vector<16x128xf32>, vector<16x128xf32>, vector<16x16xf32> -> vector<16x16xf32>
    %cst_129 = arith.constant 0xFF800000 : f32
    %301 = vector.broadcast %cst_129 : f32 to vector<16x16xf32>
    %302 = arith.select %7, %300, %301 : vector<16x16xi1>, vector<16x16xf32>
    %cst_130 = arith.constant dense<0xFF800000> : vector<16xf32>
    %303 = vector.multi_reduction <maximumf>, %302, %cst_130 [1] : vector<16x16xf32> to vector<16xf32>
    %304 = vector.shape_cast %303 : vector<16xf32> to vector<16x1xf32>
    %305 = vector.broadcast %304 : vector<16x1xf32> to vector<16x16xf32>
    %306 = arith.subf %302, %305 : vector<16x16xf32>
    %307 = math.exp %306 : vector<16x16xf32>
    %cst_131 = arith.constant dense<0.000000e+00> : vector<16xf32>
    %308 = vector.multi_reduction <add>, %307, %cst_131 [1] : vector<16x16xf32> to vector<16xf32>
    %309 = vector.shape_cast %308 : vector<16xf32> to vector<16x1xf32>
    %310 = tpu.reciprocal %309 {approx = true} : vector<16x1xf32> -> vector<16x1xf32>
    %311 = vector.broadcast %310 : vector<16x1xf32> to vector<16x16xf32>
    %312 = arith.mulf %307, %311 : vector<16x16xf32>
    %cst_132 = arith.constant 0.000000e+00 : f32
    %313 = vector.broadcast %cst_132 : f32 to vector<16x128xf32>
    %314 = arith.select %297, %267, %313 : vector<16x128xi1>, vector<16x128xf32>
    %cst_133 = arith.constant dense<0.000000e+00> : vector<16x128xf32>
    %315 = tpu.matmul %312, %314, %cst_133 {dimension_numbers = #tpu.dot_dimension_numbers<[1], [0], [0], [1], [0, 0, 1, 1], [], []>} : vector<16x16xf32>, vector<16x128xf32>, vector<16x128xf32> -> vector<16x128xf32>
    %316 = arith.addf %292, %315 : vector<16x128xf32>
    %c32_i32_134 = arith.constant 32 : i32
    %317 = vector.broadcast %c32_i32_134 : i32 to vector<16x128xi32>
    %318 = arith.cmpi sge, %2, %317 : vector<16x128xi32>
    %c48_i32_135 = arith.constant 48 : i32
    %319 = vector.broadcast %c48_i32_135 : i32 to vector<16x128xi32>
    %320 = arith.cmpi slt, %2, %319 : vector<16x128xi32>
    %321 = arith.andi %318, %320 : vector<16x128xi1>
    %cst_136 = arith.constant 0.000000e+00 : f32
    %322 = vector.broadcast %cst_136 : f32 to vector<16x128xf32>
    %323 = arith.select %321, %265, %322 : vector<16x128xi1>, vector<16x128xf32>
    %cst_137 = arith.constant dense<0.000000e+00> : vector<16x16xf32>
    %324 = tpu.matmul %323, %266, %cst_137 {dimension_numbers = #tpu.dot_dimension_numbers<[1], [1], [0], [0], [0, 0, 1, 0], [], []>} : vector<16x128xf32>, vector<16x128xf32>, vector<16x16xf32> -> vector<16x16xf32>
    %cst_138 = arith.constant 0xFF800000 : f32
    %325 = vector.broadcast %cst_138 : f32 to vector<16x16xf32>
    %326 = arith.select %7, %324, %325 : vector<16x16xi1>, vector<16x16xf32>
    %cst_139 = arith.constant dense<0xFF800000> : vector<16xf32>
    %327 = vector.multi_reduction <maximumf>, %326, %cst_139 [1] : vector<16x16xf32> to vector<16xf32>
    %328 = vector.shape_cast %327 : vector<16xf32> to vector<16x1xf32>
    %329 = vector.broadcast %328 : vector<16x1xf32> to vector<16x16xf32>
    %330 = arith.subf %326, %329 : vector<16x16xf32>
    %331 = math.exp %330 : vector<16x16xf32>
    %cst_140 = arith.constant dense<0.000000e+00> : vector<16xf32>
    %332 = vector.multi_reduction <add>, %331, %cst_140 [1] : vector<16x16xf32> to vector<16xf32>
    %333 = vector.shape_cast %332 : vector<16xf32> to vector<16x1xf32>
    %334 = tpu.reciprocal %333 {approx = true} : vector<16x1xf32> -> vector<16x1xf32>
    %335 = vector.broadcast %334 : vector<16x1xf32> to vector<16x16xf32>
    %336 = arith.mulf %331, %335 : vector<16x16xf32>
    %cst_141 = arith.constant 0.000000e+00 : f32
    %337 = vector.broadcast %cst_141 : f32 to vector<16x128xf32>
    %338 = arith.select %321, %267, %337 : vector<16x128xi1>, vector<16x128xf32>
    %cst_142 = arith.constant dense<0.000000e+00> : vector<16x128xf32>
    %339 = tpu.matmul %336, %338, %cst_142 {dimension_numbers = #tpu.dot_dimension_numbers<[1], [0], [0], [1], [0, 0, 1, 1], [], []>} : vector<16x16xf32>, vector<16x128xf32>, vector<16x128xf32> -> vector<16x128xf32>
    %340 = arith.addf %316, %339 : vector<16x128xf32>
    %c48_i32_143 = arith.constant 48 : i32
    %341 = vector.broadcast %c48_i32_143 : i32 to vector<16x128xi32>
    %342 = arith.cmpi sge, %2, %341 : vector<16x128xi32>
    %c64_i32_144 = arith.constant 64 : i32
    %343 = vector.broadcast %c64_i32_144 : i32 to vector<16x128xi32>
    %344 = arith.cmpi slt, %2, %343 : vector<16x128xi32>
    %345 = arith.andi %342, %344 : vector<16x128xi1>
    %cst_145 = arith.constant 0.000000e+00 : f32
    %346 = vector.broadcast %cst_145 : f32 to vector<16x128xf32>
    %347 = arith.select %345, %265, %346 : vector<16x128xi1>, vector<16x128xf32>
    %cst_146 = arith.constant dense<0.000000e+00> : vector<16x16xf32>
    %348 = tpu.matmul %347, %266, %cst_146 {dimension_numbers = #tpu.dot_dimension_numbers<[1], [1], [0], [0], [0, 0, 1, 0], [], []>} : vector<16x128xf32>, vector<16x128xf32>, vector<16x16xf32> -> vector<16x16xf32>
    %cst_147 = arith.constant 0xFF800000 : f32
    %349 = vector.broadcast %cst_147 : f32 to vector<16x16xf32>
    %350 = arith.select %7, %348, %349 : vector<16x16xi1>, vector<16x16xf32>
    %cst_148 = arith.constant dense<0xFF800000> : vector<16xf32>
    %351 = vector.multi_reduction <maximumf>, %350, %cst_148 [1] : vector<16x16xf32> to vector<16xf32>
    %352 = vector.shape_cast %351 : vector<16xf32> to vector<16x1xf32>
    %353 = vector.broadcast %352 : vector<16x1xf32> to vector<16x16xf32>
    %354 = arith.subf %350, %353 : vector<16x16xf32>
    %355 = math.exp %354 : vector<16x16xf32>
    %cst_149 = arith.constant dense<0.000000e+00> : vector<16xf32>
    %356 = vector.multi_reduction <add>, %355, %cst_149 [1] : vector<16x16xf32> to vector<16xf32>
    %357 = vector.shape_cast %356 : vector<16xf32> to vector<16x1xf32>
    %358 = tpu.reciprocal %357 {approx = true} : vector<16x1xf32> -> vector<16x1xf32>
    %359 = vector.broadcast %358 : vector<16x1xf32> to vector<16x16xf32>
    %360 = arith.mulf %355, %359 : vector<16x16xf32>
    %cst_150 = arith.constant 0.000000e+00 : f32
    %361 = vector.broadcast %cst_150 : f32 to vector<16x128xf32>
    %362 = arith.select %345, %267, %361 : vector<16x128xi1>, vector<16x128xf32>
    %cst_151 = arith.constant dense<0.000000e+00> : vector<16x128xf32>
    %363 = tpu.matmul %360, %362, %cst_151 {dimension_numbers = #tpu.dot_dimension_numbers<[1], [0], [0], [1], [0, 0, 1, 1], [], []>} : vector<16x16xf32>, vector<16x128xf32>, vector<16x128xf32> -> vector<16x128xf32>
    %364 = arith.addf %340, %363 : vector<16x128xf32>
    %c64_i32_152 = arith.constant 64 : i32
    %365 = vector.broadcast %c64_i32_152 : i32 to vector<16x128xi32>
    %366 = arith.cmpi sge, %2, %365 : vector<16x128xi32>
    %c80_i32_153 = arith.constant 80 : i32
    %367 = vector.broadcast %c80_i32_153 : i32 to vector<16x128xi32>
    %368 = arith.cmpi slt, %2, %367 : vector<16x128xi32>
    %369 = arith.andi %366, %368 : vector<16x128xi1>
    %cst_154 = arith.constant 0.000000e+00 : f32
    %370 = vector.broadcast %cst_154 : f32 to vector<16x128xf32>
    %371 = arith.select %369, %265, %370 : vector<16x128xi1>, vector<16x128xf32>
    %cst_155 = arith.constant dense<0.000000e+00> : vector<16x16xf32>
    %372 = tpu.matmul %371, %266, %cst_155 {dimension_numbers = #tpu.dot_dimension_numbers<[1], [1], [0], [0], [0, 0, 1, 0], [], []>} : vector<16x128xf32>, vector<16x128xf32>, vector<16x16xf32> -> vector<16x16xf32>
    %cst_156 = arith.constant 0xFF800000 : f32
    %373 = vector.broadcast %cst_156 : f32 to vector<16x16xf32>
    %374 = arith.select %7, %372, %373 : vector<16x16xi1>, vector<16x16xf32>
    %cst_157 = arith.constant dense<0xFF800000> : vector<16xf32>
    %375 = vector.multi_reduction <maximumf>, %374, %cst_157 [1] : vector<16x16xf32> to vector<16xf32>
    %376 = vector.shape_cast %375 : vector<16xf32> to vector<16x1xf32>
    %377 = vector.broadcast %376 : vector<16x1xf32> to vector<16x16xf32>
    %378 = arith.subf %374, %377 : vector<16x16xf32>
    %379 = math.exp %378 : vector<16x16xf32>
    %cst_158 = arith.constant dense<0.000000e+00> : vector<16xf32>
    %380 = vector.multi_reduction <add>, %379, %cst_158 [1] : vector<16x16xf32> to vector<16xf32>
    %381 = vector.shape_cast %380 : vector<16xf32> to vector<16x1xf32>
    %382 = tpu.reciprocal %381 {approx = true} : vector<16x1xf32> -> vector<16x1xf32>
    %383 = vector.broadcast %382 : vector<16x1xf32> to vector<16x16xf32>
    %384 = arith.mulf %379, %383 : vector<16x16xf32>
    %cst_159 = arith.constant 0.000000e+00 : f32
    %385 = vector.broadcast %cst_159 : f32 to vector<16x128xf32>
    %386 = arith.select %369, %267, %385 : vector<16x128xi1>, vector<16x128xf32>
    %cst_160 = arith.constant dense<0.000000e+00> : vector<16x128xf32>
    %387 = tpu.matmul %384, %386, %cst_160 {dimension_numbers = #tpu.dot_dimension_numbers<[1], [0], [0], [1], [0, 0, 1, 1], [], []>} : vector<16x16xf32>, vector<16x128xf32>, vector<16x128xf32> -> vector<16x128xf32>
    %388 = arith.addf %364, %387 : vector<16x128xf32>
    %c80_i32_161 = arith.constant 80 : i32
    %389 = vector.broadcast %c80_i32_161 : i32 to vector<16x128xi32>
    %390 = arith.cmpi sge, %2, %389 : vector<16x128xi32>
    %c96_i32_162 = arith.constant 96 : i32
    %391 = vector.broadcast %c96_i32_162 : i32 to vector<16x128xi32>
    %392 = arith.cmpi slt, %2, %391 : vector<16x128xi32>
    %393 = arith.andi %390, %392 : vector<16x128xi1>
    %cst_163 = arith.constant 0.000000e+00 : f32
    %394 = vector.broadcast %cst_163 : f32 to vector<16x128xf32>
    %395 = arith.select %393, %265, %394 : vector<16x128xi1>, vector<16x128xf32>
    %cst_164 = arith.constant dense<0.000000e+00> : vector<16x16xf32>
    %396 = tpu.matmul %395, %266, %cst_164 {dimension_numbers = #tpu.dot_dimension_numbers<[1], [1], [0], [0], [0, 0, 1, 0], [], []>} : vector<16x128xf32>, vector<16x128xf32>, vector<16x16xf32> -> vector<16x16xf32>
    %cst_165 = arith.constant 0xFF800000 : f32
    %397 = vector.broadcast %cst_165 : f32 to vector<16x16xf32>
    %398 = arith.select %7, %396, %397 : vector<16x16xi1>, vector<16x16xf32>
    %cst_166 = arith.constant dense<0xFF800000> : vector<16xf32>
    %399 = vector.multi_reduction <maximumf>, %398, %cst_166 [1] : vector<16x16xf32> to vector<16xf32>
    %400 = vector.shape_cast %399 : vector<16xf32> to vector<16x1xf32>
    %401 = vector.broadcast %400 : vector<16x1xf32> to vector<16x16xf32>
    %402 = arith.subf %398, %401 : vector<16x16xf32>
    %403 = math.exp %402 : vector<16x16xf32>
    %cst_167 = arith.constant dense<0.000000e+00> : vector<16xf32>
    %404 = vector.multi_reduction <add>, %403, %cst_167 [1] : vector<16x16xf32> to vector<16xf32>
    %405 = vector.shape_cast %404 : vector<16xf32> to vector<16x1xf32>
    %406 = tpu.reciprocal %405 {approx = true} : vector<16x1xf32> -> vector<16x1xf32>
    %407 = vector.broadcast %406 : vector<16x1xf32> to vector<16x16xf32>
    %408 = arith.mulf %403, %407 : vector<16x16xf32>
    %cst_168 = arith.constant 0.000000e+00 : f32
    %409 = vector.broadcast %cst_168 : f32 to vector<16x128xf32>
    %410 = arith.select %393, %267, %409 : vector<16x128xi1>, vector<16x128xf32>
    %cst_169 = arith.constant dense<0.000000e+00> : vector<16x128xf32>
    %411 = tpu.matmul %408, %410, %cst_169 {dimension_numbers = #tpu.dot_dimension_numbers<[1], [0], [0], [1], [0, 0, 1, 1], [], []>} : vector<16x16xf32>, vector<16x128xf32>, vector<16x128xf32> -> vector<16x128xf32>
    %412 = arith.addf %388, %411 : vector<16x128xf32>
    %c1_170 = arith.constant 1 : index
    %c0_171 = arith.constant 0 : index
    %c0_172 = arith.constant 0 : index
    %413 = vector.load %arg5[%c1_170, %c0_171, %c0_172] : memref<2x128x128xf32, #tpu.memory_space<vmem>>, vector<1x128x128xf32>
    %414 = vector.shape_cast %413 : vector<1x128x128xf32> to vector<128x128xf32>
    %cst_173 = arith.constant dense<0.000000e+00> : vector<16x128xf32>
    %415 = tpu.matmul %412, %414, %cst_173 {dimension_numbers = #tpu.dot_dimension_numbers<[1], [0], [0], [1], [0, 0, 1, 1], [], []>} : vector<16x128xf32>, vector<128x128xf32>, vector<16x128xf32> -> vector<16x128xf32>
    %c1_174 = arith.constant 1 : index
    %c0_175 = arith.constant 0 : index
    %c0_176 = arith.constant 0 : index
    %416 = vector.load %arg6[%c1_174, %c0_175, %c0_176] : memref<2x1x128xf32, #tpu.memory_space<vmem>>, vector<1x1x128xf32>
    %417 = vector.shape_cast %416 : vector<1x1x128xf32> to vector<1x128xf32>
    %418 = vector.broadcast %417 : vector<1x128xf32> to vector<16x128xf32>
    %419 = arith.addf %415, %418 : vector<16x128xf32>
    %420 = arith.addf %235, %419 : vector<16x128xf32>
    %c1_177 = arith.constant 1 : index
    %c0_178 = arith.constant 0 : index
    %c0_179 = arith.constant 0 : index
    %421 = vector.load %arg7[%c1_177, %c0_178, %c0_179] : memref<2x1x128xf32, #tpu.memory_space<vmem>>, vector<1x1x128xf32>
    %422 = vector.shape_cast %421 : vector<1x1x128xf32> to vector<1x128xf32>
    %c1_180 = arith.constant 1 : index
    %c0_181 = arith.constant 0 : index
    %c0_182 = arith.constant 0 : index
    %423 = vector.load %arg8[%c1_180, %c0_181, %c0_182] : memref<2x1x128xf32, #tpu.memory_space<vmem>>, vector<1x1x128xf32>
    %424 = vector.shape_cast %423 : vector<1x1x128xf32> to vector<1x128xf32>
    %cst_183 = arith.constant dense<0.000000e+00> : vector<16xf32>
    %425 = vector.multi_reduction <add>, %420, %cst_183 [1] : vector<16x128xf32> to vector<16xf32>
    %426 = vector.shape_cast %425 : vector<16xf32> to vector<16x1xf32>
    %cst_184 = arith.constant 0.010416667 : f32
    %427 = vector.broadcast %cst_184 : f32 to vector<16x1xf32>
    %428 = arith.mulf %426, %427 : vector<16x1xf32>
    %429 = vector.broadcast %428 : vector<16x1xf32> to vector<16x128xf32>
    %430 = arith.subf %420, %429 : vector<16x128xf32>
    %cst_185 = arith.constant 0.000000e+00 : f32
    %431 = vector.broadcast %cst_185 : f32 to vector<16x128xf32>
    %432 = arith.select %4, %430, %431 : vector<16x128xi1>, vector<16x128xf32>
    %433 = arith.mulf %432, %432 : vector<16x128xf32>
    %cst_186 = arith.constant dense<0.000000e+00> : vector<16xf32>
    %434 = vector.multi_reduction <add>, %433, %cst_186 [1] : vector<16x128xf32> to vector<16xf32>
    %435 = vector.shape_cast %434 : vector<16xf32> to vector<16x1xf32>
    %cst_187 = arith.constant 0.010416667 : f32
    %436 = vector.broadcast %cst_187 : f32 to vector<16x1xf32>
    %437 = arith.mulf %435, %436 : vector<16x1xf32>
    %cst_188 = arith.constant 9.99999974E-6 : f32
    %438 = vector.broadcast %cst_188 : f32 to vector<16x1xf32>
    %439 = arith.addf %437, %438 : vector<16x1xf32>
    %440 = math.rsqrt %439 : vector<16x1xf32>
    %441 = vector.broadcast %440 : vector<16x1xf32> to vector<16x128xf32>
    %442 = arith.mulf %432, %441 : vector<16x128xf32>
    %443 = vector.broadcast %422 : vector<1x128xf32> to vector<16x128xf32>
    %444 = arith.mulf %442, %443 : vector<16x128xf32>
    %445 = vector.broadcast %424 : vector<1x128xf32> to vector<16x128xf32>
    %446 = arith.addf %444, %445 : vector<16x128xf32>
    %c1_189 = arith.constant 1 : index
    %c0_190 = arith.constant 0 : index
    %c0_191 = arith.constant 0 : index
    %447 = vector.load %arg9[%c1_189, %c0_190, %c0_191] : memref<2x128x384xf32, #tpu.memory_space<vmem>>, vector<1x128x384xf32>
    %448 = vector.shape_cast %447 : vector<1x128x384xf32> to vector<128x384xf32>
    %cst_192 = arith.constant dense<0.000000e+00> : vector<16x384xf32>
    %449 = tpu.matmul %446, %448, %cst_192 {dimension_numbers = #tpu.dot_dimension_numbers<[1], [0], [0], [1], [0, 0, 1, 1], [], []>} : vector<16x128xf32>, vector<128x384xf32>, vector<16x384xf32> -> vector<16x384xf32>
    %c1_193 = arith.constant 1 : index
    %c0_194 = arith.constant 0 : index
    %c0_195 = arith.constant 0 : index
    %450 = vector.load %arg10[%c1_193, %c0_194, %c0_195] : memref<2x1x384xf32, #tpu.memory_space<vmem>>, vector<1x1x384xf32>
    %451 = vector.shape_cast %450 : vector<1x1x384xf32> to vector<1x384xf32>
    %452 = vector.broadcast %451 : vector<1x384xf32> to vector<16x384xf32>
    %453 = arith.addf %449, %452 : vector<16x384xf32>
    %cst_196 = arith.constant 0.000000e+00 : f32
    %454 = vector.broadcast %cst_196 : f32 to vector<16x384xf32>
    %455 = arith.maximumf %453, %454 : vector<16x384xf32>
    %c1_197 = arith.constant 1 : index
    %c0_198 = arith.constant 0 : index
    %c0_199 = arith.constant 0 : index
    %456 = vector.load %arg11[%c1_197, %c0_198, %c0_199] : memref<2x384x128xf32, #tpu.memory_space<vmem>>, vector<1x384x128xf32>
    %457 = vector.shape_cast %456 : vector<1x384x128xf32> to vector<384x128xf32>
    %cst_200 = arith.constant dense<0.000000e+00> : vector<16x128xf32>
    %458 = tpu.matmul %455, %457, %cst_200 {dimension_numbers = #tpu.dot_dimension_numbers<[1], [0], [0], [1], [0, 0, 1, 1], [], []>} : vector<16x384xf32>, vector<384x128xf32>, vector<16x128xf32> -> vector<16x128xf32>
    %459 = arith.addf %420, %458 : vector<16x128xf32>
    %c1_201 = arith.constant 1 : index
    %c0_202 = arith.constant 0 : index
    %c0_203 = arith.constant 0 : index
    %460 = vector.load %arg12[%c1_201, %c0_202, %c0_203] : memref<2x1x128xf32, #tpu.memory_space<vmem>>, vector<1x1x128xf32>
    %461 = vector.shape_cast %460 : vector<1x1x128xf32> to vector<1x128xf32>
    %462 = vector.broadcast %461 : vector<1x128xf32> to vector<16x128xf32>
    %463 = arith.addf %459, %462 : vector<16x128xf32>
    %c0_204 = arith.constant 0 : index
    %c0_205 = arith.constant 0 : index
    %464 = vector.load %arg13[%c0_204, %c0_205] : memref<128x128xf32, #tpu.memory_space<vmem>>, vector<128x128xf32>
    %cst_206 = arith.constant dense<0.000000e+00> : vector<16x128xf32>
    %465 = tpu.matmul %463, %464, %cst_206 {dimension_numbers = #tpu.dot_dimension_numbers<[1], [0], [0], [1], [0, 0, 1, 1], [], []>} : vector<16x128xf32>, vector<128x128xf32>, vector<16x128xf32> -> vector<16x128xf32>
    %c0_207 = arith.constant 0 : index
    %c0_208 = arith.constant 0 : index
    %466 = vector.load %arg14[%c0_207, %c0_208] : memref<1x128xf32, #tpu.memory_space<vmem>>, vector<1x128xf32>
    %467 = vector.broadcast %466 : vector<1x128xf32> to vector<16x128xf32>
    %468 = arith.addf %465, %467 : vector<16x128xf32>
    %c0_209 = arith.constant 0 : index
    %c0_210 = arith.constant 0 : index
    %c0_211 = arith.constant 0 : index
    %469 = vector.load %arg15[%c0_209, %c0_210, %c0_211] : memref<1x16x128xf32, #tpu.memory_space<vmem>>, vector<1x16x128xf32>
    %470 = vector.shape_cast %469 : vector<1x16x128xf32> to vector<16x128xf32>
    %471 = vector.shape_cast %468 : vector<16x128xf32> to vector<1x16x128xf32>
    tpu.vector_store %arg15[%c0_209, %c0_210, %c0_211], %471 {strides = array<i32>} : memref<1x16x128xf32, #tpu.memory_space<vmem>>, vector<1x16x128xf32>,
    return
  }
  func.func @transform_0(%arg0: i32) -> (i32, i32, i32) {
    %c0_i32 = arith.constant 0 : i32
    %c0_i32_0 = arith.constant 0 : i32
    %c0_i32_1 = arith.constant 0 : i32
    return %arg0, %c0_i32, %c0_i32_0 : i32, i32, i32
  }
  func.func @transform_1(%arg0: i32) -> (i32, i32, i32) {
    %c0_i32 = arith.constant 0 : i32
    %c0_i32_0 = arith.constant 0 : i32
    %c0_i32_1 = arith.constant 0 : i32
    %c0_i32_2 = arith.constant 0 : i32
    return %c0_i32, %c0_i32_0, %c0_i32_1 : i32, i32, i32
  }
  func.func @transform_2(%arg0: i32) -> (i32, i32, i32) {
    %c0_i32 = arith.constant 0 : i32
    %c0_i32_0 = arith.constant 0 : i32
    %c0_i32_1 = arith.constant 0 : i32
    %c0_i32_2 = arith.constant 0 : i32
    return %c0_i32, %c0_i32_0, %c0_i32_1 : i32, i32, i32
  }
  func.func @transform_3(%arg0: i32) -> (i32, i32, i32) {
    %c0_i32 = arith.constant 0 : i32
    %c0_i32_0 = arith.constant 0 : i32
    %c0_i32_1 = arith.constant 0 : i32
    %c0_i32_2 = arith.constant 0 : i32
    return %c0_i32, %c0_i32_0, %c0_i32_1 : i32, i32, i32
  }
  func.func @transform_4(%arg0: i32) -> (i32, i32, i32) {
    %c0_i32 = arith.constant 0 : i32
    %c0_i32_0 = arith.constant 0 : i32
    %c0_i32_1 = arith.constant 0 : i32
    %c0_i32_2 = arith.constant 0 : i32
    return %c0_i32, %c0_i32_0, %c0_i32_1 : i32, i32, i32
  }
  func.func @transform_5(%arg0: i32) -> (i32, i32, i32) {
    %c0_i32 = arith.constant 0 : i32
    %c0_i32_0 = arith.constant 0 : i32
    %c0_i32_1 = arith.constant 0 : i32
    %c0_i32_2 = arith.constant 0 : i32
    return %c0_i32, %c0_i32_0, %c0_i32_1 : i32, i32, i32
  }
  func.func @transform_6(%arg0: i32) -> (i32, i32, i32) {
    %c0_i32 = arith.constant 0 : i32
    %c0_i32_0 = arith.constant 0 : i32
    %c0_i32_1 = arith.constant 0 : i32
    %c0_i32_2 = arith.constant 0 : i32
    return %c0_i32, %c0_i32_0, %c0_i32_1 : i32, i32, i32
  }
  func.func @transform_7(%arg0: i32) -> (i32, i32, i32) {
    %c0_i32 = arith.constant 0 : i32
    %c0_i32_0 = arith.constant 0 : i32
    %c0_i32_1 = arith.constant 0 : i32
    %c0_i32_2 = arith.constant 0 : i32
    return %c0_i32, %c0_i32_0, %c0_i32_1 : i32, i32, i32
  }
  func.func @transform_8(%arg0: i32) -> (i32, i32, i32) {
    %c0_i32 = arith.constant 0 : i32
    %c0_i32_0 = arith.constant 0 : i32
    %c0_i32_1 = arith.constant 0 : i32
    %c0_i32_2 = arith.constant 0 : i32
    return %c0_i32, %c0_i32_0, %c0_i32_1 : i32, i32, i32
  }
  func.func @transform_9(%arg0: i32) -> (i32, i32, i32) {
    %c0_i32 = arith.constant 0 : i32
    %c0_i32_0 = arith.constant 0 : i32
    %c0_i32_1 = arith.constant 0 : i32
    %c0_i32_2 = arith.constant 0 : i32
    return %c0_i32, %c0_i32_0, %c0_i32_1 : i32, i32, i32
  }
  func.func @transform_10(%arg0: i32) -> (i32, i32, i32) {
    %c0_i32 = arith.constant 0 : i32
    %c0_i32_0 = arith.constant 0 : i32
    %c0_i32_1 = arith.constant 0 : i32
    %c0_i32_2 = arith.constant 0 : i32
    return %c0_i32, %c0_i32_0, %c0_i32_1 : i32, i32, i32
  }
  func.func @transform_11(%arg0: i32) -> (i32, i32, i32) {
    %c0_i32 = arith.constant 0 : i32
    %c0_i32_0 = arith.constant 0 : i32
    %c0_i32_1 = arith.constant 0 : i32
    %c0_i32_2 = arith.constant 0 : i32
    return %c0_i32, %c0_i32_0, %c0_i32_1 : i32, i32, i32
  }
  func.func @transform_12(%arg0: i32) -> (i32, i32) {
    %c0_i32 = arith.constant 0 : i32
    %c0_i32_0 = arith.constant 0 : i32
    %c0_i32_1 = arith.constant 0 : i32
    return %c0_i32, %c0_i32_0 : i32, i32
  }
  func.func @transform_13(%arg0: i32) -> (i32, i32) {
    %c0_i32 = arith.constant 0 : i32
    %c0_i32_0 = arith.constant 0 : i32
    %c0_i32_1 = arith.constant 0 : i32
    return %c0_i32, %c0_i32_0 : i32, i32
  }
  func.func @transform_14(%arg0: i32) -> (i32, i32, i32) {
    %c0_i32 = arith.constant 0 : i32
    %c0_i32_0 = arith.constant 0 : i32
    %c0_i32_1 = arith.constant 0 : i32
    return %arg0, %c0_i32, %c0_i32_0 : i32, i32, i32
  }
}

</mosaic_0001>

<bundles_post_ra>
// kernel: tpu_custom_call.1
= control target key start
LH: loop header
LB: loop body
LE: loop exit
PB: predicated region body
PF: predicated region fallthrough
CT: control target
= control target key end

     0   :  { %s7709_s0 = inlined_call_operand.hbm [shape: f32[2,16,128], index: 0, kind: input, shape index: {}]   ;;  %s7710_s1 = inlined_call_operand.vmem [shape: f32[2,1,128], index: 1, kind: input, shape index: {}]   ;;  %s7711_s2 = inlined_call_operand.vmem [shape: f32[2,1,128], index: 2, kind: input, shape index: {}]   ;;  %s7712_s3 = inlined_call_operand.hbm [shape: f32[2,128,384], index: 3, kind: input, shape index: {}]   ;;  %s7713_s4 = inlined_call_operand.hbm [shape: f32[2,128,128], index: 4, kind: input, shape index: {}]   ;;  %s7714_s5 = inlined_call_operand.vmem [shape: f32[2,1,128], index: 5, kind: input, shape index: {}]   ;;  %s7715_s6 = inlined_call_operand.vmem [shape: f32[2,1,128], index: 6, kind: input, shape index: {}]   ;;  %s7716_s7 = inlined_call_operand.vmem [shape: f32[2,1,128], index: 7, kind: input, shape index: {}]   ;;  %s7717_s8 = inlined_call_operand.hbm [shape: f32[2,128,384], index: 8, kind: input, shape index: {}]   ;;  %s7718_s9 = inlined_call_operand.vmem [shape: f32[2,1,384], index: 9, kind: input, shape index: {}]   ;;  %s7719_s10 = inlined_call_operand.hbm [shape: f32[2,384,128], index: 10, kind: input, shape index: {}]   ;;  %s7720_s11 = inlined_call_operand.vmem [shape: f32[2,1,128], index: 11, kind: input, shape index: {}]   ;;  %s7721_s12 = inlined_call_operand.hbm [shape: f32[128,128], index: 12, kind: input, shape index: {}]   ;;  %s7722_s13 = inlined_call_operand.vmem [shape: f32[1,128], index: 13, kind: input, shape index: {}]   ;;  %s7723_s14 = inlined_call_operand.hbm [shape: f32[2,16,128], index: 14, kind: output, shape index: {}]  }
   0x1   :  { %7733 = sst [smem:[#allocation19_spill]] %s7709_s0 }
   0x2   :  { %7734 = sst [smem:[#allocation20_spill]] %s7712_s3 }
   0x3   :  { %7735 = sst [smem:[#allocation21_spill]] %s7715_s6 }
   0x4   :  { %7736 = sst [smem:[#allocation22_spill]] %s7716_s7 }
   0x5   :  { %7737 = sst [smem:[#allocation23_spill]] %s7717_s8 }
   0x6   :  { %7738 = sst [smem:[#allocation24_spill]] %s7718_s9 }
   0x7   :  { %7739 = sst [smem:[#allocation25_spill]] %s7720_s11 }
   0x8   :  { %7740 = sst [smem:[#allocation26_spill]] %s7722_s13 }
   0x9   :  { %7741 = sst [smem:[#allocation27_spill]] %s7723_s14 }
   0xa   :  { %19 = vsyncpa [#allocation3], 0 }
   0xb   :  { %21 = vsyncpa [#allocation3 + $0x1], 0 }
   0xc   :  { %22 = vsyncpa [#allocation6], 0 }
   0xd   :  { %23 = vsyncpa [#allocation9], 0 }
   0xe   :  { %24 = vsyncpa [#allocation12], 0 }
   0xf   :  { %25 = vsyncpa [#allocation4], 0 }
  0x10   :  { %27 = vsyncpa [#allocation4 + $0x1], 0  ;;  %s6799_s29 = smov 0   ;;  %s6801_s30 = smov 0  }
  0x11   :  { %s6803_s15 = smov 0   ;;  %s6805_s16 = smov 0  }
  0x12 LB: > { %s6710_s17 = smov [#allocation5]   ;;  %s6820_s19 = sadd.s32 4294967295, %s6708_s16   ;;  %s6708_s16 = sphi %s6805_s16, %s7799_s16   ;;  %s6704_s15 = sphi %s6803_s15, %s7798_s15   ;;  %s6700_s30 = sphi %s6801_s30, %s7797_s30   ;;  %s6696_s29 = sphi %s6799_s29, %s7796_s29  }
  0x13   : > { %s381_s18 = sshll.u32 %s6710_s17, 4  ;;  %p4690_p0 = scmp.ge.s32.totalorder %s6708_s16, 1  ;;  %s6825_s18 = int_to_ptr.vmem [resolvable:$true] %s381_s18 }
  0x14   : > { %p7729_p1 = scmp.eq.s32.totalorder %s6820_s19, 0  ;;  %p363_p2 = scmp.lt.s32.totalorder %s6708_s16, 3 }
  0x15   : > { %s6711_s21 = smov [#allocation8]   ;;  %s6712_s24 = smov [#allocation7]  }
  0x16   : > { %p6827_p3 = pnand %p4690_p0, %p363_p2  ;;  %s416_s22 = sshll.u32 %s6711_s21, 4  ;;  %s6840_s22 = int_to_ptr.vmem [resolvable:$true] %s416_s22 }
  0x17   : > { %s394_s25 = sshll.u32 %s6712_s24, 4  ;;  %s7744_s3 = sld [smem:[#allocation20_spill]]  ;;  %s6842_s25 = int_to_ptr.vmem [resolvable:$true] %s394_s25 }
  0x18   : > { %s7742_s20 = scalar_select %p6827_p3, 1, 0 }
  0x19   : > { %p6268_p5 = pneg %p6827_p3 }
  0x1b   : > { %p6836_p6 = pnand %p6268_p5, %p7729_p1 }
  0x1d   : > { %s6460_s28 = scalar_lea.hbm %s7744_s3, 12288  ;;  %p6852_p8 = pneg %p6836_p6 }
  0x1e   : > { %p6461_p7 = scmp.ne.s32.totalorder %s7744_s3, %s6460_s28  ;;  %p6467_p11 = scmp.lt.u32.totalorder %s6460_s28, %s7744_s3 }
  0x20   : > { %p6463_p9 = pnand %p6852_p8, %p6461_p7 }
  0x22   : > { %p6464_p10 = pneg %p6463_p9 }
  0x24   : > { %p6469_p12 = pnand %p6467_p11, %p6464_p10 }
  0x26   : > { %6472 = shalt.err (!%p6469_p12)
}
  0x27   : > { %s6473_s14 = scalar_lea.vmem %s6825_s18, 12288  ;;  %p6481_p5 = scmp.lt.s32.totalorder %s6825_s18, %s6825_s18 }
  0x28   : > { %p6474_p13 = scmp.ne.s32.totalorder %s6825_s18, %s6473_s14  ;;  %p6482_p4 = scmp.lt.s32.totalorder %s6473_s14, %s6473_s14 }
  0x2a   : > { %p6476_p0 = pnand %p6474_p13, %p6852_p8  ;;  %p6483_p7 = por %p6482_p4, %p6481_p5 }
  0x2c   : > { %p6477_p2 = pneg %p6476_p0 }
  0x2e   : > { %p6484_p9 = pnand %p6483_p7, %p6477_p2 }
  0x30   : > { %6487 = shalt.err (!%p6484_p9)
}
  0x31   : > { %s6713_s26 = smov 384   ;;  %s6714_s13 = smov 24  }
  0x32   : > { %6271 = dma.hbm_to_vmem [thread:$0]  (!%p6836_p6), %s7744_s3, 12288, %s6825_s18, [#allocation6], %s6713_s26, %s6713_s26, %s6714_s13  }
  0x33   : > { %s7746_s8 = sld [smem:[#allocation23_spill]] }
  0x39   : > { %s6488_s11 = scalar_lea.hbm %s7746_s8, 12288 }
  0x3a   : > { %p6489_p4 = scmp.ne.s32.totalorder %s7746_s8, %s6488_s11  ;;  %p6495_p12 = scmp.lt.u32.totalorder %s6488_s11, %s7746_s8 }
  0x3c   : > { %p6491_p10 = pnand %p6489_p4, %p6852_p8 }
  0x3e   : > { %p6492_p11 = pneg %p6491_p10 }
  0x40   : > { %p6497_p13 = pnand %p6495_p12, %p6492_p11 }
  0x42   : > { %6500 = shalt.err (!%p6497_p13)
}
  0x43   : > { %s6501_s18 = scalar_lea.vmem %s6840_s22, 12288  ;;  %p6509_p7 = scmp.lt.s32.totalorder %s6840_s22, %s6840_s22 }
  0x44   : > { %p6502_p0 = scmp.ne.s32.totalorder %s6840_s22, %s6501_s18  ;;  %p6510_p9 = scmp.lt.s32.totalorder %s6501_s18, %s6501_s18 }
  0x46   : > { %p6504_p2 = pnand %p6502_p0, %p6852_p8  ;;  %p6511_p4 = por %p6510_p9, %p6509_p7 }
  0x48   : > { %p6505_p5 = pneg %p6504_p2 }
  0x4a   : > { %p6512_p10 = pnand %p6511_p4, %p6505_p5 }
  0x4c   : > { %6515 = shalt.err (!%p6512_p10)
}
  0x4d   : > { %6277 = dma.hbm_to_vmem [thread:$0]  (!%p6836_p6), %s7746_s8, 12288, %s6840_s22, [#allocation9], %s6713_s26, %s6713_s26, %s6714_s13  }
  0x4e   : > { %s6516_s27 = scalar_lea.hbm %s7713_s4, 4096 }
  0x4f   : > { %p6517_p11 = scmp.ne.s32.totalorder %s7713_s4, %s6516_s27  ;;  %p6523_p0 = scmp.lt.u32.totalorder %s6516_s27, %s7713_s4 }
  0x51   : > { %p6519_p12 = pnand %p6517_p11, %p6852_p8 }
  0x53   : > { %p6520_p13 = pneg %p6519_p12 }
  0x55   : > { %p6525_p2 = pnand %p6523_p0, %p6520_p13 }
  0x57   : > { %6528 = shalt.err (!%p6525_p2)
}
  0x58   : > { %s6529_s22 = scalar_lea.vmem %s6842_s25, 4096  ;;  %p6537_p4 = scmp.lt.s32.totalorder %s6842_s25, %s6842_s25 }
  0x59   : > { %p6530_p5 = scmp.ne.s32.totalorder %s6842_s25, %s6529_s22  ;;  %p6538_p10 = scmp.lt.s32.totalorder %s6529_s22, %s6529_s22 }
  0x5b   : > { %p6532_p7 = pnand %p6530_p5, %p6852_p8  ;;  %p6539_p11 = por %p6538_p10, %p6537_p4 }
  0x5d   : > { %p6533_p9 = pneg %p6532_p7 }
  0x5f   : > { %p6540_p12 = pnand %p6539_p11, %p6533_p9 }
  0x61   : > { %6543 = shalt.err (!%p6540_p12)
}
  0x62   : > { %s6715_s26 = smov 128   ;;  %s6716_s13 = smov 8  }
  0x63   : > { %6274 = dma.hbm_to_vmem [thread:$0]  (!%p6836_p6), %s7713_s4, 4096, %s6842_s25, [#allocation6], %s6715_s26, %s6715_s26, %s6716_s13  }
  0x64   : > { %s6717_s7 = smov [#allocation10]   ;;  %s6718_s11 = smov [#allocation11]  }
  0x65   : > { %s432_s9 = sshll.u32 %s6717_s7, 4  ;;  %s448_s27 = sshll.u32 %s6718_s11, 4  ;;  %s433_s9 = int_to_ptr.vmem [resolvable:$true] %s432_s9  ;;  %s449_s27 = int_to_ptr.vmem [resolvable:$true] %s448_s27 }
  0x66   : > { %s6544_s24 = scalar_lea.hbm %s7719_s10, 12288 }
  0x67   : > { %p6545_p13 = scmp.ne.s32.totalorder %s7719_s10, %s6544_s24  ;;  %p6551_p5 = scmp.lt.u32.totalorder %s6544_s24, %s7719_s10 }
  0x69   : > { %p6547_p0 = pnand %p6545_p13, %p6852_p8 }
  0x6b   : > { %p6548_p2 = pneg %p6547_p0 }
  0x6d   : > { %p6553_p7 = pnand %p6551_p5, %p6548_p2 }
  0x6f   : > { %6556 = shalt.err (!%p6553_p7)
}
  0x70   : > { %s6557_s25 = scalar_lea.vmem %s433_s9, 12288  ;;  %p6565_p11 = scmp.lt.s32.totalorder %s433_s9, %s433_s9 }
  0x71   : > { %p6558_p9 = scmp.ne.s32.totalorder %s433_s9, %s6557_s25  ;;  %p6566_p12 = scmp.lt.s32.totalorder %s6557_s25, %s6557_s25 }
  0x73   : > { %p6560_p4 = pnand %p6558_p9, %p6852_p8  ;;  %p6567_p1 = por %p6566_p12, %p6565_p11 }
  0x75   : > { %p6561_p10 = pneg %p6560_p4 }
  0x77   : > { %p6568_p3 = pnand %p6567_p1, %p6561_p10 }
  0x79   : > { %6571 = shalt.err (!%p6568_p3)
}
  0x7a   : > { %6280 = dma.hbm_to_vmem [thread:$0]  (!%p6836_p6), %s7719_s10, 12288, %s433_s9, [#allocation9], %s6715_s26, %s6715_s26, %s6716_s13  }
  0x7b   : > { %s6572_s7 = scalar_lea.hbm %s7721_s12, 2048 }
  0x7c   : > { %p6573_p1 = scmp.ne.s32.totalorder %s7721_s12, %s6572_s7  ;;  %p6579_p0 = scmp.lt.u32.totalorder %s6572_s7, %s7721_s12 }
  0x7e   : > { %p6575_p3 = pnand %p6573_p1, %p6852_p8 }
  0x80   : > { %p6576_p13 = pneg %p6575_p3 }
  0x82   : > { %p6581_p2 = pnand %p6579_p0, %p6576_p13 }
  0x84   : > { %6584 = shalt.err (!%p6581_p2)
}
  0x85   : > { %s6585_s14 = scalar_lea.vmem %s449_s27, 2048  ;;  %p6593_p4 = scmp.lt.s32.totalorder %s449_s27, %s449_s27 }
  0x86   : > { %p6586_p5 = scmp.ne.s32.totalorder %s449_s27, %s6585_s14  ;;  %p6594_p10 = scmp.lt.s32.totalorder %s6585_s14, %s6585_s14 }
  0x88   : > { %p6588_p7 = pnand %p6586_p5, %p6852_p8  ;;  %p6595_p11 = por %p6594_p10, %p6593_p4 }
  0x8a   : > { %p6589_p9 = pneg %p6588_p7 }
  0x8c   : > { %p6596_p12 = pnand %p6595_p11, %p6589_p9 }
  0x8e   : > { %6599 = shalt.err (!%p6596_p12)
}
  0x8f   : > { %6283 = dma.hbm_to_vmem [thread:$0]  (!%p6836_p6), %s7721_s12, 2048, %s449_s27, [#allocation12], %s6715_s26, %s6715_s26, %s6716_s13  }
  0x90   : > { %s4689_s23 = sadd.s32 4294967294, %s6708_s16   ;;  %s6966_s21 = sadd.s32 1, %s6708_s16  }
  0x91   : > { %s40_s25 = sadd.s32 1, %s6704_s15  ;;  %s37_s3 = ssub.s32 %s6708_s16, %s6966_s21 }
  0x92   : > { %p47_p8 = scmp.ne.s32.totalorder %s6704_s15, %s6700_s30  ;;  %p38_p1 = scmp.eq.s32.totalorder %s37_s3, 0 }
  0x93   : > { %p48_p3 = scmp.eq.s32.totalorder %s6708_s16, 0  ;;  %p53_p13 = scmp.ne.s32.totalorder %s6700_s30, %s6696_s29 }
  0x94   : > { %p350_p0 = scmp.eq.s32.totalorder %s6820_s19, 1  ;;  %p7747_p5 = scmp.eq.s32.totalorder %s6820_s19, 0 }
  0x95   : > { %s6978_s8 = scalar_select %p38_p1, %s6704_s15, %s40_s25  }
  0x96   : > { %p49_p2 = por %p48_p3, %p47_p8  ;;  %p6982_p7 = por %p7747_p5, %p53_p13 }
  0x97   : > { %p6986_p6 = por %p350_p0, %p47_p8  ;;  %p356_p9 = scmp.eq.s32.totalorder %s4689_s23, 1 }
  0x98   : > { %p6297_p4 = scmp.lt.s32.totalorder %s6708_s16, 2  ;;  %s465_s6 = sand.u32 1, %s6704_s15  }
  0x99   : > { %s7749_s27 = scalar_select %p6986_p6, 1, 0 }
  0x9a   : > { %p6992_p10 = por %p356_p9, %p53_p13  ;;  %s4697_s11 = sshll.u32 %s465_s6, 4 }
  0x9b   : > { %s4805_s28 = sshll.u32 %s6708_s16, 8  ;;  %s7751_s0 = sld [smem:[#allocation19_spill]] }
  0x9c   : > { %s7750_s7 = scalar_select %p6992_p10, 1, 0 }
  0x9d   : > { %s469_s9 = scalar_lea.vmem [#allocation2], %s4697_s11  ;;  %p7002_p11 = pnand %p6297_p4, %p49_p2 }
  0x9e   : > { %s476_s22 = sshll.u32 %s469_s9, 4  ;;  %s7008_s25 = scalar_lea.sflag [#allocation3], %s465_s6  ;;  %s7006_s22 = int_to_ptr.vmem [resolvable:$true] %s476_s22 }
  0x9f   : > { %p6602_p8 = pneg %p7002_p11 }
  0xa1   : > { %s7000_s14 = scalar_lea.hbm %s7751_s0, %s4805_s28  ;;  %s6605_s17 = scalar_lea.hbm %s7751_s0, 512 }
  0xa2   : > { %s6600_s3 = scalar_lea.hbm %s7000_s14, 256  ;;  %p6606_p13 = scmp.lt.u32.totalorder %s7000_s14, %s7751_s0 }
  0xa3   : > { %p6601_p12 = scmp.ne.s32.totalorder %s7000_s14, %s6600_s3  ;;  %p6607_p0 = scmp.lt.u32.totalorder %s6605_s17, %s6600_s3 }
  0xa4   : > { %p6609_p5 = scmp.lt.u32.totalorder %s6600_s3, %s7000_s14 }
  0xa5   : > { %p6603_p1 = pnand %p6602_p8, %p6601_p12  ;;  %p6608_p2 = por %p6607_p0, %p6606_p13 }
  0xa7   : > { %p6604_p3 = pneg %p6603_p1  ;;  %p6610_p9 = por %p6609_p5, %p6608_p2 }
  0xa9   : > { %p6611_p4 = pnand %p6610_p9, %p6604_p3 }
  0xab   : > { %6614 = shalt.err (!%p6611_p4)
}
  0xac   : > { %s6615_s6 = scalar_lea.vmem %s7006_s22, 256  ;;  %s6719_s11 = smov [#allocation2]  }
  0xad   : > { %p6616_p12 = scmp.ne.s32.totalorder %s7006_s22, %s6615_s6  ;;  %s6620_s28 = sshll.u32 %s6719_s11, 4  ;;  %s6621_s28 = int_to_ptr.vmem [resolvable:$false] %s6620_s28 }
  0xae   : > { %s6622_s24 = scalar_lea.vmem %s6621_s28, 512  ;;  %p6623_p6 = scmp.lt.s32.totalorder %s7006_s22, %s6621_s28 }
  0xaf   : > { %p6618_p1 = pnand %p6616_p12, %p6602_p8  ;;  %p6624_p13 = scmp.lt.s32.totalorder %s6622_s24, %s6615_s6 }
  0xb1   : > { %p6619_p10 = pneg %p6618_p1  ;;  %p6625_p0 = por %p6624_p13, %p6623_p6 }
  0xb3   : > { %p6626_p2 = pnand %p6625_p0, %p6619_p10 }
  0xb5   : > { %6629 = shalt.err (!%p6626_p2)
}
  0xb6   : > { %6287 = dma.hbm_to_vmem [thread:$0]  (!%p7002_p11), %s7000_s14, 256, %s7006_s22, %s7008_s25, %s6715_s26, %s6715_s26, %s6716_s13  }
  0xb7   : > { %p7753_p8 = scmp.ne.s32.totalorder %s7742_s20, 0 }
  0xb8   : > { %s7042_s3 = sand.u32 (!%p7753_p8), 1, %s6700_s30  }
  0xb9   : > { %488 = sbr.rel (%p7753_p8) target bundleno = 6086 (0x17c6), region = 76  ;;  %s4701_s17 = sshll.u32 (!%p7753_p8), %s7042_s3, 4 }
  0xba   : > { %s491_s9 = scalar_lea.sflag (!%p7753_p8), [#allocation3], %s7042_s3  ;;  %s494_s23 = scalar_lea.vmem (!%p7753_p8), [#allocation2], %s4701_s17 }
  0xc0   : > { %6675 = dma.done.wait (%p6982_p7), %s491_s9, 256  }
  0xc1   : > { %6677 = vsyncadd (%p6982_p7), %s491_s9, 4294967040  ;;  %p7754_p6 = scmp.eq.s32.totalorder %s6820_s19, 0 }
  0xc3   : > { %6679 = dma.done.wait (%p7754_p6), [#allocation6], 16384   ;;  %p7755_p10 = pmov %p7754_p6 }
  0xc4   : > { %p7756_p11 = pmov %p7754_p6 }
  0xc5   : > { %6681 = vsyncadd (%p7755_p10), [#allocation6], 4294950912 }
  0xc6   : > { %6683 = dma.done.wait (%p7756_p11), [#allocation9], 24576   ;;  %p7757_p3 = pmov %p7754_p6 }
  0xc8   : > { %6685 = vsyncadd (%p7757_p3), [#allocation9], 4294942720  ;;  %p7758_p5 = pmov %p7757_p3 }
  0xc9   : > { %p7759_p9 = pmov %p7757_p3 }
  0xca   : > { %6687 = dma.done.wait (%p7758_p5), [#allocation12], 2048  }
  0xcb   : > { %6689 = vsyncadd (%p7759_p9), [#allocation12], 4294965248  ;;  %v7064_v0 = vld [vmem:[%s494_s23] sm:$0xff]  ;;  %v7067_v1 = vld [vmem:[%s494_s23 + $0x8] sm:$0xff]  ;;  %v561_v26 = vlaneseq  ;;  %s7786_s11 = sld [smem:[#allocation21_spill]]  ;;  %s7787_s9 = sld [smem:[#allocation22_spill]] }
  0xcc   : > { %571 = vadd.xlane.f32.xlu0 %v7064_v0  ;;  %v612_v2 = vld [vmem:[#allocation5 + $0x8] sm:$0xff]  ;;  %v615_v3 = vld [vmem:[#allocation5 + $0x20] sm:$0xff]  ;;  %v614_v6 = vld [vmem:[#allocation5 + $0x18] sm:$0xff]  ;;  %s7788_s26 = sld [smem:[#allocation24_spill]]  ;;  %s7789_s14 = sld [smem:[#allocation25_spill]] }
  0xcd   : > { %v611_v4 = vld [vmem:[#allocation5] sm:$0xff]  ;;  %v5624_v5 = vpack.c.bf16 %v615_v3, %v612_v2  ;;  %v618_v7 = vld [vmem:[#allocation5 + $0x38] sm:$0xff]  ;;  %v621_v8 = vld [vmem:[#allocation5 + $0x50] sm:$0xff]  ;;  %v7071_v27 = vand.u32 127, %v561_v26  ;;  %s558_s23 = scalar_lea.vmem [#allocation13], %s4701_s17  ;;  %s7791_s22 = sld [smem:[#allocation26_spill]] }
  0xce   : > { %v5626_v9 = vpack.c.bf16 %v614_v6, %v611_v4  ;;  %v5628_v10 = vpack.c.bf16 %v621_v8, %v618_v7  ;;  %v613_v11 = vld [vmem:[#allocation5 + $0x10] sm:$0xff]  ;;  %v616_v12 = vld [vmem:[#allocation5 + $0x28] sm:$0xff]  ;;  %v627_v17 = vld [vmem:[#allocation5 + $0x80] sm:$0xff]  ;;  %s4568_s20 = sshll.u32 %s558_s23, 4  ;;  %s4806_s25 = sshll.u32 %s6820_s19, 8  ;;  %s7660_s20 = int_to_ptr.vmem [resolvable:$true] %s4568_s20 }
  0xcf   : > { %v617_v13 = vld [vmem:[#allocation5 + $0x30] sm:$0xff]  ;;  %5625 = vmatprep.subr.bf16.mxu0 %v5624_v5  ;;  %v5656_v14 = vpack.c.bf16 %v616_v12, %v613_v11  ;;  %v620_v15 = vld [vmem:[#allocation5 + $0x48] sm:$0xff]  ;;  %v619_v19 = vld [vmem:[#allocation5 + $0x40] sm:$0xff]  ;;  %vm563_vm0 = vcmp.lt.s32.totalorder %v7071_v27, 96  ;;  %vm918_vm1 = vcmp.ge.s32.totalorder %v7071_v27, 16  ;;  %vm919_vm2 = vcmp.lt.s32.totalorder %v7071_v27, 32 }
  0xd0   : > { %573 = vadd.xlane.f32.xlu0 %v7067_v1  ;;  %v624_v16 = vld [vmem:[#allocation5 + $0x68] sm:$0xff]  ;;  %5627 = vmatpush1.bf16.msra.mxu0 %v5626_v9  ;;  %v5630_v18 = vpack.c.bf16 %v620_v15, %v617_v13  ;;  %v622_v20 = vld [vmem:[#allocation5 + $0x58] sm:$0xff]  ;;  %v623_v23 = vld [vmem:[#allocation5 + $0x60] sm:$0xff]  ;;  %vm7732_vm3 = vcmp.lt.s32.totalorder %v7071_v27, 16  ;;  %vm1186_vm6 = vcmp.ge.s32.totalorder %v7071_v27, 32  ;;  %vm1187_vm7 = vcmp.lt.s32.totalorder %v7071_v27, 48 }
  0xd1   : > { %5629 = vmatprep.subr.bf16.mxu0 %v5628_v10  ;;  %5657 = vmatprep.subr.bf16.mxu1 %v5656_v14  ;;  %v5632_v21 = vpack.c.bf16 %v627_v17, %v624_v16  ;;  %v5660_v22 = vpack.c.bf16 %v622_v20, %v619_v19  ;;  %v626_v24 = vld [vmem:[#allocation5 + $0x78] sm:$0xff]  ;;  %v633_v39 = vld [vmem:[#allocation5 + $0xb0] sm:$0xff]  ;;  %v628_v42 = vld [vmem:[#allocation5 + $0x88] sm:$0xff]  ;;  %v6720_v10 = vmov 0.0   ;;  %vm1375_vm10 = vcmp.ge.s32.totalorder %v7071_v27, 48  ;;  %s7792_s24 = sld [smem:[#allocation27_spill]] }
  0xd2   : > { %5659 = vmatpush3.bf16.msra.mxu1 %v5656_v14  ;;  %v5634_v25 = vpack.c.bf16 %v626_v24, %v623_v23  ;;  %v630_v38 = vld [vmem:[#allocation5 + $0x98] sm:$0xff]  ;;  %v625_v40 = vld [vmem:[#allocation5 + $0x70] sm:$0xff]  ;;  %v632_v44 = vld [vmem:[#allocation5 + $0xa8] sm:$0xff]  ;;  %723 = vmatprep.mubr.f32.mxu0 %v6720_v10  ;;  %vm1376_vm11 = vcmp.lt.s32.totalorder %v7071_v27, 64  ;;  %vm1753_vm13 = vcmp.ge.s32.totalorder %v7071_v27, 80  ;;  %s4555_s17 = scalar_lea.sflag [#allocation4], %s7042_s3 }
  0xd3   : > { %5661 = vmatprep.subr.bf16.mxu1 %v5660_v22  ;;  %v5636_v41 = vpack.c.bf16 %v633_v39, %v630_v38  ;;  %v629_v43 = vld [vmem:[#allocation5 + $0x90] sm:$0xff]  ;;  %v5664_v45 = vpack.c.bf16 %v628_v42, %v625_v40  ;;  %v636_v47 = vld [vmem:[#allocation5 + $0xc8] sm:$0xff]  ;;  %v639_v48 = vld [vmem:[#allocation5 + $0xe0] sm:$0xff]  ;;  %s6630_s13 = scalar_lea.vmem %s7660_s20, 256  ;;  %p7793_p4 = scmp.ne.s32.totalorder %s7749_s27, 0 }
  0xd4   : > { %5631 = vmatpush1.bf16.msra.mxu0 %v5630_v18  ;;  %v5638_v46 = vpack.c.bf16 %v632_v44, %v629_v43  ;;  %v631_v49 = vld [vmem:[#allocation5 + $0xa0] sm:$0xff]  ;;  %v5640_v50 = vpack.c.bf16 %v639_v48, %v636_v47  ;;  %v634_v51 = vld [vmem:[#allocation5 + $0xb8] sm:$0xff]  ;;  %v645_v57 = vld [vmem:[#allocation5 + $0x110] sm:$0xff]  ;;  %p6631_p7 = scmp.ne.s32.totalorder %s7660_s20, %s6630_s13  ;;  %s6721_s19 = smov [#allocation13]  }
  0xd5   : > { %5633 = vmatprep.subr.bf16.mxu0 %v5632_v21  ;;  %v635_v52 = vld [vmem:[#allocation5 + $0xc0] sm:$0xff]  ;;  %v638_v53 = vld [vmem:[#allocation5 + $0xd8] sm:$0xff]  ;;  %v5668_v54 = vpack.c.bf16 %v634_v51, %v631_v49  ;;  %v637_v58 = vld [vmem:[#allocation5 + $0xd0] sm:$0xff]  ;;  %s6634_s18 = sshll.u32 %s6721_s19, 4  ;;  %s6635_s18 = int_to_ptr.vmem [resolvable:$false] %s6634_s18 }
  0xd6   : > { %5663 = vmatpush3.bf16.msra.mxu1 %v5660_v22  ;;  %v5642_v55 = vpack.c.bf16 %v638_v53, %v635_v52  ;;  %v642_v56 = vld [vmem:[#allocation5 + $0xf8] sm:$0xff]  ;;  %v640_v60 = vld [vmem:[#allocation5 + $0xe8] sm:$0xff]  ;;  %v641_v61 = vld [vmem:[#allocation5 + $0xf0] sm:$0xff]  ;;  %p6632_p12 = pnand %p6631_p7, %p7793_p4  ;;  %p6637_p13 = scmp.lt.s32.totalorder %s7660_s20, %s6635_s18 }
  0xd7   : > { %5665 = vmatprep.subr.bf16.mxu1 %v5664_v45  ;;  %v5644_v59 = vpack.c.bf16 %v645_v57, %v642_v56  ;;  %v644_v62 = vld [vmem:[#allocation5 + $0x108] sm:$0xff]  ;;  %v5672_v63 = vpack.c.bf16 %v640_v60, %v637_v58  ;;  %v651_v4 = vld [vmem:[#allocation5 + $0x140] sm:$0xff]  ;;  %v646_v7 = vld [vmem:[#allocation5 + $0x118] sm:$0xff]  ;;  %v7196_v57 = vshrl.u32 %v561_v26, 7  ;;  %s7665_s0 = scalar_lea.hbm %s7792_s24, %s4806_s25 }
  0xd8   : > { %5635 = vmatpush1.bf16.msra.mxu0 %v5634_v25  ;;  %v5646_v2 = vpack.c.bf16 %v644_v62, %v641_v61  ;;  %v648_v3 = vld [vmem:[#allocation5 + $0x128] sm:$0xff]  ;;  %v643_v5 = vld [vmem:[#allocation5 + $0x100] sm:$0xff]  ;;  %v650_v9 = vld [vmem:[#allocation5 + $0x138] sm:$0xff]  ;;  %p6633_p1 = pneg %p6632_p12 }
  0xd9   : > { %5637 = vmatprep.subr.bf16.mxu0 %v5636_v41  ;;  %v5648_v6 = vpack.c.bf16 %v651_v4, %v648_v3  ;;  %v647_v8 = vld [vmem:[#allocation5 + $0x120] sm:$0xff]  ;;  %v5676_v11 = vpack.c.bf16 %v646_v7, %v643_v5  ;;  %v654_v13 = vld [vmem:[#allocation5 + $0x158] sm:$0xff]  ;;  %v657_v14 = vld [vmem:[#allocation5 + $0x170] sm:$0xff]  ;;  %v566_v58 = vadd.s32 8, %v7196_v57 }
  0xda   : > { %5667 = vmatpush3.bf16.msra.mxu1 %v5664_v45  ;;  %v5650_v12 = vpack.c.bf16 %v650_v9, %v647_v8  ;;  %v649_v15 = vld [vmem:[#allocation5 + $0x130] sm:$0xff]  ;;  %v5652_v16 = vpack.c.bf16 %v657_v14, %v654_v13  ;;  %v652_v17 = vld [vmem:[#allocation5 + $0x148] sm:$0xff]  ;;  %v655_v22 = vld [vmem:[#allocation5 + $0x160] sm:$0xff] }
  0xdb   : > { %5669 = vmatprep.subr.bf16.mxu1 %v5668_v54  ;;  %v653_v18 = vld [vmem:[#allocation5 + $0x150] sm:$0xff]  ;;  %v656_v19 = vld [vmem:[#allocation5 + $0x168] sm:$0xff]  ;;  %v5680_v20 = vpack.c.bf16 %v652_v17, %v649_v15  ;;  %v658_v23 = vld [vmem:[#allocation5 + $0x178] sm:$0xff]  ;;  %vm7200_vm15 = vcmp.ge.s32.totalorder %v566_v58, %v7071_v27 }
  0xdc   : > { %5639 = vmatpush1.bf16.msra.mxu0 %v5638_v46  ;;  %v5654_v21 = vpack.c.bf16 %v656_v19, %v653_v18  ;;  %v5684_v24 = vpack.c.bf16 %v658_v23, %v655_v22  ;;  %v4709_v38 = vld [vmem:[%s7711_s2] ss:$0 sm:$0xff]  ;;  %vm7101_vm4 = vmand %vm918_vm1, %vm919_vm2  ;;  %vm7206_vm1 = vcmp.ge.s32.totalorder %v7196_v57, %v7071_v27  ;;  %vm893_vm2 = vcmask 130048  }
  0xdd   : > { %5641 = vmatprep.subr.bf16.mxu0 %v5640_v50  ;;  %vm7122_vm5 = vmpackc.low %vm7101_vm4, %vm7101_vm4 }
  0xde   : > { %5671 = vmatpush3.bf16.msra.mxu1 %v5668_v54  ;;  %vm7136_vm8 = vmand %vm1186_vm6, %vm1187_vm7 }
  0xdf   : > { %5673 = vmatprep.subr.bf16.mxu1 %v5672_v63  ;;  %vm7143_vm9 = vmpackc.low %vm7732_vm3, %vm7732_vm3 }
  0xe0   : > { %5643 = vmatpush1.bf16.msra.mxu0 %v5642_v55  ;;  %vm7166_vm12 = vmand %vm1375_vm10, %vm1376_vm11  ;;  %vm1564_vm10 = vcmp.ge.s32.totalorder %v7071_v27, 64  ;;  %vm1565_vm11 = vcmp.lt.s32.totalorder %v7071_v27, 80 }
  0xe1   : > { %5645 = vmatprep.subr.bf16.mxu0 %v5644_v59  ;;  %vm7181_vm14 = vmand %vm1753_vm13, %vm563_vm0 }
  0xe2   : > { %5675 = vmatpush3.bf16.msra.mxu1 %v5672_v63  ;;  %vm7250_vm6 = vmpackc.low %vm7136_vm8, %vm7136_vm8 }
  0xe3   : > { %5677 = vmatprep.subr.bf16.mxu1 %v5676_v11  ;;  %vm7265_vm7 = vmpackc.low %vm7166_vm12, %vm7166_vm12 }
  0xe4   : > { %5647 = vmatpush1.bf16.msra.mxu0 %v5646_v2  ;;  %vm7285_vm13 = vmand %vm1564_vm10, %vm1565_vm11  ;;  %vm7790_vm11 = vcmp.lt.s32.totalorder %v7071_v27, 16  ;;  %v4047_v27 = vld [vmem:[#allocation8 + $0x260] sm:$0xff] }
  0xe5   : > { %5649 = vmatprep.subr.bf16.mxu0 %v5648_v6  ;;  %vm7307_vm10 = vmpackc.low %vm7181_vm14, %vm7181_vm14 }
  0xe6   : > { %5679 = vmatpush3.bf16.msra.mxu1 %v5676_v11 }
  0xe7   : > { %5681 = vmatprep.subr.bf16.mxu1 %v5680_v20 }
  0xe8   : > { %5651 = vmatpush1.bf16.msra.mxu0 %v5650_v12 }
  0xe9   : > { %5653 = vmatprep.subr.bf16.mxu0 %v5652_v16 }
  0xea   : > { %5683 = vmatpush3.bf16.msra.mxu1 %v5680_v20 }
  0xeb   : > { %5685 = vmatprep.subr.bf16.mxu1 %v5684_v24 }
  0xec   : > { %5655 = vmatpush1.bf16.msra.mxu0 %v5654_v21 }
  0xee   : > { %5687 = vmatpush3.bf16.msra.mxu1 %v5684_v24 }
 0x159   : > { %v572_v28 = vpop.xlane.xlu0 %571 }
 0x15a   : > { %v575_v29 = vmul.f32 0.010416667, %v572_v28 }
 0x15c   : > { %v577_v30 = vsub.f32 %v7064_v0, %v575_v29 }
 0x15d   : > { %v574_v31 = vpop.xlane.xlu0 %573 }
 0x15e   : > { %v576_v32 = vmul.f32 0.010416667, %v574_v31  ;;  %v7077_v33 = vsel %vm563_vm0, %v577_v30, 0.0 }
 0x15f   : > { %v581_v34 = vmul.f32 %v7077_v33, %v7077_v33 }
 0x160   : > { %v578_v35 = vsub.f32 %v7067_v1, %v576_v32 }
 0x161   : > { %583 = vadd.xlane.f32.xlu1 %v581_v34 }
 0x162   : > { %v7084_v36 = vsel %vm563_vm0, %v578_v35, 0.0  ;;  %v4708_v35 = vld [vmem:[%s7710_s1] ss:$0 sm:$0xff] }
 0x163   : > { %v582_v37 = vmul.f32 %v7084_v36, %v7084_v36 }
 0x165   : > { %585 = vadd.xlane.f32.xlu1 %v582_v37 }
 0x1ee   : > { %v584_v25 = vpop.xlane.xlu1 %583 }
 0x1ef   : > { %v587_v28 = vmul.f32 0.010416667, %v584_v25 }
 0x1f1   : > { %v589_v29 = vadd.f32 1e-05, %v587_v28 }
 0x1f2   : > { %v586_v30 = vpop.xlane.xlu1 %585 }
 0x1f3   : > { %6348 = vrsqrt.f32 %v589_v29  ;;  %v588_v31 = vmul.f32 0.010416667, %v586_v30 }
 0x1f5   : > { %v590_v32 = vadd.f32 1e-05, %v588_v31 }
 0x1f7   : > { %6350 = vrsqrt.f32 %v590_v32 }
 0x1fd   : > { %v6349_v34 = vpop.eup %6348 }
 0x1fe   : > { %v593_v37 = vmul.f32 %v6349_v34, %v7077_v33 }
 0x200   : > { %v601_v39 = vmul.f32 %v4708_v35, %v593_v37 }
 0x201   : > { %v6351_v40 = vpop.eup %6350 }
 0x202   : > { %v609_v41 = vadd.f32 %v4709_v38, %v601_v39  ;;  %v594_v42 = vmul.f32 %v6351_v40, %v7084_v36 }
 0x204   : > { %724 = vmatmul.mubr.f32.vlgmr.msra.gmra.mrb[0].mxu0 %v609_v41  ;;  %5173 = vmatprep.mubr.f32.mxu1 %v609_v41  ;;  %v602_v43 = vmul.f32 %v4708_v35, %v594_v42 }
 0x205   : > { %729 = vmatprep.mubr.f32.mxu0 %v6720_v10 }
 0x206   : > { %v610_v44 = vadd.f32 %v4709_v38, %v602_v43 }
 0x208   : > { %730 = vmatmul.mubr.f32.gmra.mrb[2].mxu0 %v610_v44  ;;  %5174 = vmatmul.mubr.f32.vlgmr.msra.gmra.mrb[0].mxu1 %v610_v44 }
 0x2d7   : > { %v7105_v45 = vpop.f32.mrb[0].mxu0 }
 0x2d8   : > { %v727_v36 = vpop.f32.mrb[1].mxu0  ;;  %5180 = vmatprep.mubr.msk.f32.mxu0 %vm7732_vm3, %v7105_v45  ;;  %5187 = vmatprep.mubr.msk.f32.mxu1 %vm7101_vm4, %v7105_v45 }
 0x2db   : > { %v7113_v46 = vpop.f32.mrb[2].mxu0  ;;  %v5175_v47 = vpop.f32.mrb[0].mxu1 }
 0x2dc   : > { %v733_v48 = vpop.f32.mrb[3].mxu0  ;;  %v802_v49 = vpop.f32.mrb[1].mxu1 }
 0x2dd   : > { %v7115_v50 = vpack.c.bf16 %v733_v48, %v727_v36  ;;  %v7117_v51 = vpack.c.bf16 %v5175_v47, %v802_v49 }
 0x2df   : > { %5689 = vmatprep.subr.bf16.mxu0 %v7115_v50  ;;  %5693 = vmatprep.subr.bf16.mxu1 %v7115_v50 }
 0x2e0   : > { %5691 = vmatpush3.bf16.xpose.msra.mxu0 %v7115_v50  ;;  %5695 = vmatpush3.bf16.xpose.msra.mxu1 %v7115_v50 }
 0x2e1   : > { %5698 = vmatprep.subr.msk.bf16.mxu0 %vm7122_vm5, %v7117_v51  ;;  %5709 = vmatprep.subr.bf16.mxu1 %v7115_v50 }
 0x2e7   : > { %5181 = vmatmul.mubr.msk.f32.vlgmr.msra.gmra.mrb[4].mxu0 %vm7732_vm3, %v7113_v46  ;;  %5188 = vmatmul.mubr.msk.f32.vlgmr.msra.gmra.mrb[2].mxu1 %vm7101_vm4, %v7113_v46  ;;  %vm7293_vm3 = vmpackc.low %vm7285_vm13, %vm7285_vm13 }
 0x2e8   : > { %5701 = vmatpush3.bf16.msk.msra.mxu0 %vm7122_vm5, %v7117_v51  ;;  %5711 = vmatpush3.bf16.xpose.msra.mxu1 %v7115_v50 }
 0x2e9   : > { %5208 = vmatprep.mubr.msk.f32.mxu1 %vm7136_vm8, %v7105_v45  ;;  %5704 = vmatprep.subr.msk.bf16.mxu0 %vm7143_vm9, %v7117_v51 }
 0x2ea   : > { %5719 = vmatprep.subr.bf16.mxu1 %v7115_v50 }
 0x2ef   : > { %5209 = vmatmul.mubr.msk.f32.vlgmr.msra.gmra.mrb[4].mxu1 %vm7136_vm8, %v7113_v46 }
 0x2f0   : > { %5721 = vmatpush3.bf16.xpose.msra.mxu1 %v7115_v50  ;;  %5222 = vmatprep.mubr.msk.f32.mxu1 %vm7166_vm12, %v7105_v45 }
 0x2f1   : > { %5739 = vmatprep.subr.bf16.mxu1 %v7115_v50 }
 0x2f7   : > { %5223 = vmatmul.mubr.msk.f32.vlgmr.msra.gmra.mrb[6].mxu1 %vm7166_vm12, %v7113_v46 }
 0x2f8   : > { %5741 = vmatpush3.bf16.xpose.msra.mxu1 %v7115_v50  ;;  %5250 = vmatprep.mubr.msk.f32.mxu1 %vm7181_vm14, %v7105_v45 }
 0x2ff   : > { %5251 = vmatmul.mubr.msk.f32.vlgmr.msra.gmra.mrb[8].mxu1 %vm7181_vm14, %v7113_v46 }
 0x3ba   : > { %v5182_v61 = vpop.f32.mrb[4].mxu0  ;;  %v5189_v62 = vpop.f32.mrb[2].mxu1 }
 0x3bb   : > { %v999_v26 = vsel %vm7200_vm15, %v5189_v62, -inf  ;;  %v882_v63 = vpop.f32.mrb[5].mxu0  ;;  %v989_v2 = vpop.f32.mrb[3].mxu1  ;;  %v892_v5 = vsel %vm7200_vm15, %v5182_v61, -inf }
 0x3bc   : > { %v998_v3 = vsel %vm7206_vm1, %v989_v2, -inf  ;;  %v1003_v4 = vsel %vm893_vm2, %v999_v26, -inf  ;;  %v891_v7 = vsel %vm7206_vm1, %v882_v63, -inf  ;;  %v897_v8 = vsel %vm893_vm2, %v892_v5, -inf }
 0x3bd   : > { %1004 = vmax.xlane.f32.xlu1 %v1003_v4  ;;  %v1000_v6 = vsel %vm893_vm2, %v998_v3, -inf  ;;  %v894_v9 = vsel %vm893_vm2, %v891_v7, -inf }
 0x3be   : > { %1001 = vmax.xlane.f32.xlu0 %v1000_v6 }
 0x3c1   : > { %898 = vmax.xlane.f32.xlu1 %v897_v8 }
 0x3c2   : > { %v5210_v11 = vpop.f32.mrb[4].mxu1  ;;  %895 = vmax.xlane.f32.xlu0 %v894_v9 }
 0x3c3   : > { %v1267_v12 = vsel %vm7200_vm15, %v5210_v11, -inf  ;;  %v1257_v13 = vpop.f32.mrb[5].mxu1 }
 0x3c4   : > { %v1266_v14 = vsel %vm7206_vm1, %v1257_v13, -inf  ;;  %v1271_v15 = vsel %vm893_vm2, %v1267_v12, -inf }
 0x3c5   : > { %1272 = vmax.xlane.f32.xlu1 %v1271_v15  ;;  %v1268_v16 = vsel %vm893_vm2, %v1266_v14, -inf }
 0x3c6   : > { %1269 = vmax.xlane.f32.xlu0 %v1268_v16 }
 0x3ca   : > { %v5224_v17 = vpop.f32.mrb[6].mxu1 }
 0x3cb   : > { %v1456_v18 = vsel %vm7200_vm15, %v5224_v17, -inf  ;;  %v1446_v19 = vpop.f32.mrb[7].mxu1 }
 0x3cc   : > { %v1455_v20 = vsel %vm7206_vm1, %v1446_v19, -inf  ;;  %v1460_v21 = vsel %vm893_vm2, %v1456_v18, -inf }
 0x3cd   : > { %1461 = vmax.xlane.f32.xlu1 %v1460_v21  ;;  %v1457_v22 = vsel %vm893_vm2, %v1455_v20, -inf }
 0x3ce   : > { %1458 = vmax.xlane.f32.xlu0 %v1457_v22 }
 0x3d2   : > { %v7234_v23 = vpop.f32.mrb[8].mxu1 }
 0x3d3   : > { %v7236_v24 = vpop.f32.mrb[9].mxu1 }
 0x44a   : > { %v1005_v25 = vpop.xlane.xlu1 %1004 }
 0x44b   : > { %v1007_v28 = vsub.f32 %v999_v26, %v1005_v25  ;;  %v1002_v29 = vpop.xlane.xlu0 %1001 }
 0x44c   : > { %v1006_v30 = vsub.f32 %v998_v3, %v1002_v29 }
 0x44d   : > { %v1010_v31 = vmul.f32 1.442695, %v1007_v28 }
 0x44e   : > { %v1008_v32 = vmul.f32 1.442695, %v1006_v30  ;;  %v899_v34 = vpop.xlane.xlu1 %898 }
 0x44f   : > { %6352 = vpow2.f32 %v1010_v31  ;;  %v901_v35 = vsub.f32 %v892_v5, %v899_v34  ;;  %v896_v37 = vpop.xlane.xlu0 %895 }
 0x450   : > { %6354 = vpow2.f32 %v1008_v32  ;;  %v900_v38 = vsub.f32 %v891_v7, %v896_v37 }
 0x451   : > { %v904_v39 = vmul.f32 1.442695, %v901_v35 }
 0x452   : > { %v902_v40 = vmul.f32 1.442695, %v900_v38  ;;  %v1273_v41 = vpop.xlane.xlu1 %1272 }
 0x453   : > { %6356 = vpow2.f32 %v904_v39  ;;  %v1275_v42 = vsub.f32 %v1267_v12, %v1273_v41  ;;  %v1270_v43 = vpop.xlane.xlu0 %1269 }
 0x454   : > { %6358 = vpow2.f32 %v902_v40  ;;  %v1274_v44 = vsub.f32 %v1266_v14, %v1270_v43 }
 0x455   : > { %v1278_v36 = vmul.f32 1.442695, %v1275_v42 }
 0x456   : > { %v1276_v47 = vmul.f32 1.442695, %v1274_v44 }
 0x457   : > { %6360 = vpow2.f32 %v1278_v36 }
 0x458   : > { %6362 = vpow2.f32 %v1276_v47 }
 0x459   : > { %v6353_v48 = vpop.eup %6352 }
 0x45a   : > { %v6355_v49 = vpop.eup %6354  ;;  %v1462_v58 = vpop.xlane.xlu1 %1461  ;;  %v1015_v61 = vsel %vm893_vm2, %v6353_v48, 0.0 }
 0x45b   : > { %v1464_v62 = vsub.f32 %v1456_v18, %v1462_v58  ;;  %1016 = vadd.xlane.f32.xlu1 %v1015_v61  ;;  %v1459_v26 = vpop.xlane.xlu0 %1458  ;;  %v1012_v63 = vsel %vm893_vm2, %v6355_v49, 0.0 }
 0x45c   : > { %v1463_v2 = vsub.f32 %v1455_v20, %v1459_v26  ;;  %1013 = vadd.xlane.f32.xlu0 %v1012_v63 }
 0x45d   : > { %v6357_v3 = vpop.eup %6356  ;;  %v1467_v4 = vmul.f32 1.442695, %v1464_v62 }
 0x45e   : > { %v6359_v5 = vpop.eup %6358  ;;  %v1465_v6 = vmul.f32 1.442695, %v1463_v2  ;;  %v909_v7 = vsel %vm893_vm2, %v6357_v3, 0.0 }
 0x45f   : > { %6364 = vpow2.f32 %v1467_v4  ;;  %910 = vadd.xlane.f32.xlu1 %v909_v7  ;;  %v906_v8 = vsel %vm893_vm2, %v6359_v5, 0.0 }
 0x460   : > { %6366 = vpow2.f32 %v1465_v6  ;;  %907 = vadd.xlane.f32.xlu0 %v906_v8 }
 0x461   : > { %v6361_v9 = vpop.eup %6360 }
 0x462   : > { %v6363_v11 = vpop.eup %6362  ;;  %v1283_v12 = vsel %vm893_vm2, %v6361_v9, 0.0 }
 0x463   : > { %1284 = vadd.xlane.f32.xlu1 %v1283_v12  ;;  %v1280_v13 = vsel %vm893_vm2, %v6363_v11, 0.0 }
 0x464   : > { %1281 = vadd.xlane.f32.xlu0 %v1280_v13 }
 0x469   : > { %v6365_v14 = vpop.eup %6364 }
 0x46a   : > { %v6367_v15 = vpop.eup %6366  ;;  %v1472_v16 = vsel %vm893_vm2, %v6365_v14, 0.0 }
 0x46b   : > { %1473 = vadd.xlane.f32.xlu1 %v1472_v16  ;;  %v1469_v17 = vsel %vm893_vm2, %v6367_v15, 0.0 }
 0x46c   : > { %1470 = vadd.xlane.f32.xlu0 %v1469_v17 }
 0x4e8   : > { %v1017_v18 = vpop.xlane.xlu1 %1016 }
 0x4e9   : > { %6368 = vrcp.f32 %v1017_v18  ;;  %v1014_v19 = vpop.xlane.xlu0 %1013 }
 0x4ea   : > { %6370 = vrcp.f32 %v1014_v19 }
 0x4ec   : > { %v911_v21 = vpop.xlane.xlu1 %910 }
 0x4ed   : > { %v908_v20 = vpop.xlane.xlu0 %907 }
 0x4ee   : > { %6372 = vrcp.f32 %v908_v20 }
 0x4ef   : > { %6374 = vrcp.f32 %v911_v21 }
 0x4f0   : > { %v1285_v31 = vpop.xlane.xlu1 %1284 }
 0x4f1   : > { %v1282_v22 = vpop.xlane.xlu0 %1281 }
 0x4f2   : > { %6376 = vrcp.f32 %v1282_v22 }
 0x4f3   : > { %v6369_v25 = vpop.eup %6368  ;;  %6378 = vrcp.f32 %v1285_v31  ;;  %v1941_v31 = vld [vmem:[#allocation7] sm:$0xff] }
 0x4f4   : > { %v6371_v28 = vpop.eup %6370  ;;  %v1021_v30 = vmul.f32 %v6369_v25, %v6353_v48 }
 0x4f5   : > { %v1020_v29 = vmul.f32 %v6371_v28, %v6355_v49 }
 0x4f7   : > { %5194 = vmatprep.mubr.msk.f32.mxu0 %vm893_vm2, %v1020_v29 }
 0x4f8   : > { %v6373_v34 = vpop.eup %6372  ;;  %5195 = vmatmul.mubr.msk.f32.vlgmr.msra.gmra.mrb[6].mxu0 %vm893_vm2, %v1021_v30  ;;  %v1474_v41 = vpop.xlane.xlu1 %1473 }
 0x4f9   : > { %5707 = vmatpush3.bf16.msk.msra.mxu0 %vm7143_vm9, %v7117_v51  ;;  %v1471_v35 = vpop.xlane.xlu0 %1470  ;;  %v914_v37 = vmul.f32 %v6373_v34, %v6359_v5  ;;  %v6375_v38 = vpop.eup %6374  ;;  %v1832_v5 = vsel %vm7206_vm1, %v7236_v24, -inf  ;;  %v1942_v34 = vld [vmem:[#allocation7 + $0x8] sm:$0xff] }
 0x4fa   : > { %5714 = vmatprep.subr.msk.bf16.mxu0 %vm7250_vm6, %v7117_v51  ;;  %6380 = vrcp.f32 %v1471_v35  ;;  %v915_v40 = vmul.f32 %v6375_v38, %v6357_v3  ;;  %v1834_v7 = vsel %vm893_vm2, %v1832_v5, -inf  ;;  %v1943_v35 = vld [vmem:[#allocation7 + $0x10] sm:$0xff]  ;;  %v1944_v38 = vld [vmem:[#allocation7 + $0x18] sm:$0xff] }
 0x4fb   : > { %5201 = vmatprep.mubr.msk.f32.mxu0 %vm893_vm2, %v914_v37  ;;  %6382 = vrcp.f32 %v1474_v41  ;;  %v5748_v37 = vpack.c.bf16 %v1942_v34, %v1941_v31  ;;  %v1946_v41 = vld [vmem:[#allocation7 + $0x28] sm:$0xff]  ;;  %v2087_v31 = vld [vmem:[#allocation8 + $0x20] sm:$0xff] }
 0x4fc   : > { %v6377_v39 = vpop.eup %6376  ;;  %v2083_v34 = vld [vmem:[#allocation8] sm:$0xff] }
 0x4fd   : > { %v1288_v42 = vmul.f32 %v6377_v39, %v6363_v11  ;;  %v6379_v44 = vpop.eup %6378  ;;  %v5752_v39 = vpack.c.bf16 %v1944_v38, %v1943_v35  ;;  %5749 = vmatprep.subr.bf16.mxu1 %v5748_v37  ;;  %v2085_v38 = vld [vmem:[#allocation8 + $0x10] sm:$0xff] }
 0x4fe   : > { %v1289_v47 = vmul.f32 %v6379_v44, %v6361_v9  ;;  %5751 = vmatpush3.bf16.msra.mxu1 %v5748_v37  ;;  %v1947_v44 = vld [vmem:[#allocation7 + $0x30] sm:$0xff]  ;;  %v2086_v37 = vld [vmem:[#allocation8 + $0x18] sm:$0xff] }
 0x4ff   : > { %5753 = vmatprep.subr.bf16.mxu1 %v5752_v39 }
 0x500   : > { %5202 = vmatmul.mubr.msk.f32.vlgmr.msra.gmra.mrb[6].mxu0 %vm893_vm2, %v915_v40  ;;  %v1945_v40 = vld [vmem:[#allocation7 + $0x20] sm:$0xff] }
 0x501   : > { %5717 = vmatpush3.bf16.msk.msra.mxu0 %vm7250_vm6, %v7117_v51  ;;  %5215 = vmatprep.mubr.msk.f32.mxu0 %vm893_vm2, %v1288_v42  ;;  %v5756_v42 = vpack.c.bf16 %v1946_v41, %v1945_v40  ;;  %v5782_v40 = vpack.c.bf16 %v2086_v37, %v2083_v34  ;;  %v2110_v37 = vld [vmem:[#allocation8 + $0xd8] sm:$0xff] }
 0x502   : > { %5724 = vmatprep.subr.msk.bf16.mxu0 %vm7265_vm7, %v7117_v51  ;;  %5755 = vmatpush3.bf16.msra.mxu1 %v5752_v39  ;;  %v2088_v39 = vld [vmem:[#allocation8 + $0x28] sm:$0xff] }
 0x503   : > { %5757 = vmatprep.subr.bf16.mxu1 %v5756_v42  ;;  %v5812_v41 = vpack.c.bf16 %v2088_v39, %v2085_v38  ;;  %v2109_v38 = vld [vmem:[#allocation8 + $0xd0] sm:$0xff] }
 0x504   : > { %v6381_v36 = vpop.eup %6380 }
 0x505   : > { %v1477_v48 = vmul.f32 %v6381_v36, %v6367_v15  ;;  %v6383_v49 = vpop.eup %6382  ;;  %v1948_v36 = vld [vmem:[#allocation7 + $0x38] sm:$0xff] }
 0x506   : > { %v1478_v61 = vmul.f32 %v6383_v49, %v6365_v14  ;;  %v1950_v49 = vld [vmem:[#allocation7 + $0x48] sm:$0xff]  ;;  %5759 = vmatpush3.bf16.msra.mxu1 %v5756_v42  ;;  %v2090_v42 = vld [vmem:[#allocation8 + $0x38] sm:$0xff] }
 0x508   : > { %5216 = vmatmul.mubr.msk.f32.vlgmr.msra.gmra.mrb[6].mxu0 %vm893_vm2, %v1289_v47  ;;  %v5760_v47 = vpack.c.bf16 %v1948_v36, %v1947_v44  ;;  %v2093_v44 = vld [vmem:[#allocation8 + $0x50] sm:$0xff] }
 0x509   : > { %5727 = vmatpush3.bf16.msk.msra.mxu0 %vm7265_vm7, %v7117_v51  ;;  %5229 = vmatprep.mubr.msk.f32.mxu0 %vm893_vm2, %v1477_v48  ;;  %v1949_v48 = vld [vmem:[#allocation7 + $0x40] sm:$0xff]  ;;  %v5784_v36 = vpack.c.bf16 %v2093_v44, %v2090_v42  ;;  %v2117_v42 = vld [vmem:[#allocation8 + $0x110] sm:$0xff] }
 0x50a   : > { %5729 = vmatprep.subr.bf16.mxu0 %v7115_v50  ;;  %5761 = vmatprep.subr.bf16.mxu1 %v5760_v47 }
 0x50b   : > { %5763 = vmatpush3.bf16.msra.mxu1 %v5760_v47  ;;  %v2091_v47 = vld [vmem:[#allocation8 + $0x40] sm:$0xff] }
 0x510   : > { %5230 = vmatmul.mubr.msk.f32.vlgmr.msra.gmra.mrb[6].mxu0 %vm893_vm2, %v1478_v61  ;;  %v5764_v61 = vpack.c.bf16 %v1950_v49, %v1949_v48  ;;  %v2094_v48 = vld [vmem:[#allocation8 + $0x58] sm:$0xff] }
 0x511   : > { %5236 = vmatprep.mubr.msk.f32.mxu0 %vm7285_vm13, %v7105_v45 }
 0x512   : > { %5731 = vmatpush3.bf16.xpose.msra.mxu0 %v7115_v50  ;;  %5765 = vmatprep.subr.bf16.mxu1 %v5764_v61 }
 0x513   : > { %5734 = vmatprep.subr.msk.bf16.mxu0 %vm7293_vm3, %v7117_v51  ;;  %5767 = vmatpush3.bf16.msra.mxu1 %v5764_v61  ;;  %v5816_v61 = vpack.c.bf16 %v2094_v48, %v2091_v47  ;;  %v2115_v47 = vld [vmem:[#allocation8 + $0x100] sm:$0xff] }
 0x519   : > { %5237 = vmatmul.mubr.msk.f32.vlgmr.msra.gmra.mrb[8].mxu0 %vm7285_vm13, %v7113_v46  ;;  %v1833_v46 = vsel %vm7200_vm15, %v7234_v23, -inf }
 0x51a   : > { %5737 = vmatpush3.bf16.msk.msra.mxu0 %vm7293_vm3, %v7117_v51  ;;  %v1837_v6 = vsel %vm893_vm2, %v1833_v46, -inf }
 0x51b   : > { %5744 = vmatprep.subr.msk.bf16.mxu0 %vm7307_vm10, %v7117_v51 }
 0x5ec   : > { %v5238_v45 = vpop.f32.mrb[8].mxu0 }
 0x5ed   : > { %v1645_v50 = vsel %vm7200_vm15, %v5238_v45, -inf  ;;  %v1635_v63 = vpop.f32.mrb[9].mxu0  ;;  %v1951_v45 = vld [vmem:[#allocation7 + $0x50] sm:$0xff] }
 0x5ee   : > { %v1644_v2 = vsel %vm7206_vm1, %v1635_v63, -inf  ;;  %v1649_v3 = vsel %vm893_vm2, %v1645_v50, -inf }
 0x5ef   : > { %1650 = vmax.xlane.f32.xlu1 %v1649_v3  ;;  %v1646_v4 = vsel %vm893_vm2, %v1644_v2, -inf  ;;  %v1954_v3 = vld [vmem:[#allocation7 + $0x68] sm:$0xff] }
 0x5f0   : > { %1647 = vmax.xlane.f32.xlu0 %v1646_v4  ;;  %v1955_v4 = vld [vmem:[#allocation7 + $0x70] sm:$0xff] }
 0x5f3   : > { %1838 = vmax.xlane.f32.xlu1 %v1837_v6 }
 0x5f4   : > { %1835 = vmax.xlane.f32.xlu0 %v1834_v7 }
 0x67c   : > { %v1651_v8 = vpop.xlane.xlu1 %1650 }
 0x67d   : > { %v1653_v9 = vsub.f32 %v1645_v50, %v1651_v8  ;;  %v1648_v11 = vpop.xlane.xlu0 %1647  ;;  %v1952_v50 = vld [vmem:[#allocation7 + $0x58] sm:$0xff] }
 0x67e   : > { %v1652_v12 = vsub.f32 %v1644_v2, %v1648_v11  ;;  %v5768_v63 = vpack.c.bf16 %v1952_v50, %v1951_v45  ;;  %v1953_v2 = vld [vmem:[#allocation7 + $0x60] sm:$0xff]  ;;  %v2096_v45 = vld [vmem:[#allocation8 + $0x68] sm:$0xff] }
 0x67f   : > { %v1656_v13 = vmul.f32 1.442695, %v1653_v9  ;;  %v2099_v50 = vld [vmem:[#allocation8 + $0x80] sm:$0xff] }
 0x680   : > { %v1654_v23 = vmul.f32 1.442695, %v1652_v12  ;;  %v1839_v14 = vpop.xlane.xlu1 %1838  ;;  %5769 = vmatprep.subr.bf16.mxu1 %v5768_v63 }
 0x681   : > { %6384 = vpow2.f32 %v1656_v13  ;;  %v1841_v15 = vsub.f32 %v1833_v46, %v1839_v14  ;;  %v1836_v16 = vpop.xlane.xlu0 %1835  ;;  %v5772_v46 = vpack.c.bf16 %v1954_v3, %v1953_v2  ;;  %5771 = vmatpush3.bf16.msra.mxu1 %v5768_v63  ;;  %v2095_v63 = vld [vmem:[#allocation8 + $0x60] sm:$0xff]  ;;  %v5788_v2 = vpack.c.bf16 %v2099_v50, %v2096_v45  ;;  %v2098_v3 = vld [vmem:[#allocation8 + $0x78] sm:$0xff] }
 0x682   : > { %6386 = vpow2.f32 %v1654_v23  ;;  %v1840_v17 = vsub.f32 %v1832_v5, %v1836_v16  ;;  %v1956_v5 = vld [vmem:[#allocation7 + $0x78] sm:$0xff]  ;;  %v2123_v45 = vld [vmem:[#allocation8 + $0x140] sm:$0xff] }
 0x683   : > { %v1844_v24 = vmul.f32 1.442695, %v1841_v15  ;;  %5773 = vmatprep.subr.bf16.mxu1 %v5772_v46  ;;  %v5776_v6 = vpack.c.bf16 %v1956_v5, %v1955_v4  ;;  %v2100_v4 = vld [vmem:[#allocation8 + $0x88] sm:$0xff] }
 0x684   : > { %v1842_v18 = vmul.f32 1.442695, %v1840_v17 }
 0x685   : > { %6388 = vpow2.f32 %v1844_v24  ;;  %5775 = vmatpush3.bf16.msra.mxu1 %v5772_v46  ;;  %v2097_v46 = vld [vmem:[#allocation8 + $0x70] sm:$0xff] }
 0x686   : > { %6390 = vpow2.f32 %v1842_v18  ;;  %5777 = vmatprep.subr.bf16.mxu1 %v5776_v6  ;;  %v5820_v5 = vpack.c.bf16 %v2100_v4, %v2097_v46  ;;  %v2121_v46 = vld [vmem:[#allocation8 + $0x130] sm:$0xff]  ;;  %v2124_v4 = vld [vmem:[#allocation8 + $0x148] sm:$0xff] }
 0x689   : > { %5779 = vmatpush3.bf16.msra.mxu1 %v5776_v6  ;;  %v5790_v6 = vpack.c.bf16 %v2098_v3, %v2095_v63  ;;  %v2122_v3 = vld [vmem:[#allocation8 + $0x138] sm:$0xff] }
 0x68a   : > { %5813 = vmatprep.subr.bf16.mxu1 %v5812_v41 }
 0x68b   : > { %v7334_v19 = vpop.eup %6384 }
 0x68c   : > { %v6387_v20 = vpop.eup %6386  ;;  %v1661_v21 = vsel %vm893_vm2, %v7334_v19, 0.0 }
 0x68d   : > { %1662 = vadd.xlane.f32.xlu1 %v1661_v21  ;;  %v1658_v22 = vsel %vm893_vm2, %v6387_v20, 0.0 }
 0x68e   : > { %1659 = vadd.xlane.f32.xlu0 %v1658_v22 }
 0x68f   : > { %v7339_v25 = vpop.eup %6388 }
 0x690   : > { %v6391_v28 = vpop.eup %6390  ;;  %v1849_v29 = vsel %vm893_vm2, %v7339_v25, 0.0 }
 0x691   : > { %1850 = vadd.xlane.f32.xlu1 %v1849_v29  ;;  %v1846_v30 = vsel %vm893_vm2, %v6391_v28, 0.0 }
 0x692   : > { %1847 = vadd.xlane.f32.xlu0 %v1846_v30  ;;  %v2084_v30 = vld [vmem:[#allocation8 + $0x8] sm:$0xff] }
 0x693   : > { %v5780_v35 = vpack.c.bf16 %v2087_v31, %v2084_v30  ;;  %v2108_v30 = vld [vmem:[#allocation8 + $0xc8] sm:$0xff]  ;;  %v2111_v31 = vld [vmem:[#allocation8 + $0xe0] sm:$0xff] }
 0x694   : > { %v5796_v34 = vpack.c.bf16 %v2111_v31, %v2108_v30 }
 0x71a   : > { %v1663_v7 = vpop.xlane.xlu1 %1662 }
 0x71b   : > { %6392 = vrcp.f32 %v1663_v7  ;;  %v1660_v8 = vpop.xlane.xlu0 %1659 }
 0x71c   : > { %6394 = vrcp.f32 %v1660_v8 }
 0x71e   : > { %v1851_v11 = vpop.xlane.xlu1 %1850 }
 0x71f   : > { %v1848_v9 = vpop.xlane.xlu0 %1847 }
 0x720   : > { %6396 = vrcp.f32 %v1848_v9 }
 0x721   : > { %6398 = vrcp.f32 %v1851_v11 }
 0x725   : > { %v6393_v12 = vpop.eup %6392 }
 0x726   : > { %v6395_v13 = vpop.eup %6394  ;;  %v1667_v14 = vmul.f32 %v6393_v12, %v7334_v19 }
 0x727   : > { %v1666_v23 = vmul.f32 %v6395_v13, %v6387_v20  ;;  %v4746_v20 = vld [vmem:[%s7714_s5] ss:$0 sm:$0xff] }
 0x729   : > { %5243 = vmatprep.mubr.msk.f32.mxu0 %vm893_vm2, %v1666_v23 }
 0x72a   : > { %v6397_v15 = vpop.eup %6396  ;;  %5244 = vmatmul.mubr.msk.f32.vlgmr.msra.gmra.mrb[6].mxu0 %vm893_vm2, %v1667_v14 }
 0x72b   : > { %5747 = vmatpush3.bf16.msk.msra.mxu0 %vm7307_vm10, %v7117_v51  ;;  %v1854_v16 = vmul.f32 %v6397_v15, %v6391_v28  ;;  %v6399_v17 = vpop.eup %6398 }
 0x72c   : > { %v1855_v24 = vmul.f32 %v6399_v17, %v7339_v25  ;;  %5781 = vmatprep.subr.bf16.mxu0 %v5780_v35  ;;  %v2102_v17 = vld [vmem:[#allocation8 + $0x98] sm:$0xff]  ;;  %v2107_v35 = vld [vmem:[#allocation8 + $0xc0] sm:$0xff] }
 0x72d   : > { %5257 = vmatprep.mubr.msk.f32.mxu0 %vm893_vm2, %v1854_v16  ;;  %v5798_v39 = vpack.c.bf16 %v2110_v37, %v2107_v35 }
 0x732   : > { %5258 = vmatmul.mubr.msk.f32.vlgmr.msra.gmra.mrb[6].mxu0 %vm893_vm2, %v1855_v24  ;;  %v2105_v24 = vld [vmem:[#allocation8 + $0xb0] sm:$0xff] }
 0x733   : > { %2212 = vmatprep.mubr.f32.mxu0 %v6720_v10  ;;  %5783 = vmatpush1.bf16.msra.mxu0 %v5782_v40  ;;  %v2112_v40 = vld [vmem:[#allocation8 + $0xe8] sm:$0xff] }
 0x734   : > { %5785 = vmatprep.subr.bf16.mxu0 %v5784_v36  ;;  %v5828_v44 = vpack.c.bf16 %v2112_v40, %v2109_v38  ;;  %v2113_v36 = vld [vmem:[#allocation8 + $0xf0] sm:$0xff]  ;;  %v4747_v38 = vld [vmem:[%s7786_s11] ss:$0 sm:$0xff] }
 0x805   : > { %v5259_v18 = vpop.f32.mrb[6].mxu0 }
 0x806   : > { %v1930_v19 = vpop.f32.mrb[7].mxu0 }
 0x807   : > { %5292 = vmatprep.mubr.f32.mxu1 %v1930_v19  ;;  %v2101_v19 = vld [vmem:[#allocation8 + $0x90] sm:$0xff] }
 0x808   : > { %5293 = vmatmul.mubr.f32.vlgmr.msra.gmra.mrb[10].mxu1 %v5259_v18  ;;  %v5792_v18 = vpack.c.bf16 %v2105_v24, %v2102_v17  ;;  %v2322_v24 = vld [vmem:[#allocation10 + $0x80] sm:$0xff] }
 0x809   : > { %5815 = vmatpush3.bf16.msra.mxu1 %v5812_v41  ;;  %v2114_v41 = vld [vmem:[#allocation8 + $0xf8] sm:$0xff] }
 0x80a   : > { %5817 = vmatprep.subr.bf16.mxu1 %v5816_v61 }
 0x80d   : > { %5819 = vmatpush3.bf16.msra.mxu1 %v5816_v61  ;;  %v2120_v61 = vld [vmem:[#allocation8 + $0x128] sm:$0xff] }
 0x80e   : > { %5821 = vmatprep.subr.bf16.mxu1 %v5820_v5  ;;  %v5804_v63 = vpack.c.bf16 %v2123_v45, %v2120_v61  ;;  %v2341_v61 = vld [vmem:[#allocation10 + $0x118] sm:$0xff] }
 0x811   : > { %5823 = vmatpush3.bf16.msra.mxu1 %v5820_v5  ;;  %v2126_v5 = vld [vmem:[#allocation8 + $0x158] sm:$0xff] }
 0x8db   : > { %v5294_v21 = vpop.f32.mrb[10].mxu1 }
 0x8dc   : > { %v2036_v51 = vadd.f32 %v5294_v21, %v4746_v20  ;;  %v2030_v22 = vpop.f32.mrb[11].mxu1  ;;  %v2103_v21 = vld [vmem:[#allocation8 + $0xa0] sm:$0xff] }
 0x8dd   : > { %v2031_v28 = vadd.f32 %v4746_v20, %v2030_v22  ;;  %v2104_v20 = vld [vmem:[#allocation8 + $0xa8] sm:$0xff]  ;;  %v2106_v22 = vld [vmem:[#allocation8 + $0xb8] sm:$0xff] }
 0x8de   : > { %v7358_v29 = vadd.f32 %v2036_v51, %v7067_v1  ;;  %v2089_v1 = vld [vmem:[#allocation8 + $0x30] sm:$0xff]  ;;  %v5794_v51 = vpack.c.bf16 %v2104_v20, %v2101_v19  ;;  %v2338_v20 = vld [vmem:[#allocation10 + $0x100] sm:$0xff] }
 0x8df   : > { %v7361_v25 = vadd.f32 %v2031_v28, %v7064_v0  ;;  %v2092_v0 = vld [vmem:[#allocation8 + $0x48] sm:$0xff]  ;;  %v5824_v28 = vpack.c.bf16 %v2106_v22, %v2103_v21 }
 0x8e0   : > { %2045 = vadd.xlane.f32.xlu1 %v7358_v29  ;;  %v5786_v49 = vpack.c.bf16 %v2092_v0, %v2089_v1  ;;  %v5800_v1 = vpack.c.bf16 %v2117_v42, %v2114_v41  ;;  %v2116_v0 = vld [vmem:[#allocation8 + $0x108] sm:$0xff]  ;;  %v4748_v41 = vld [vmem:[%s7787_s9] ss:$0 sm:$0xff] }
 0x8e1   : > { %2043 = vadd.xlane.f32.xlu0 %v7361_v25  ;;  %5825 = vmatprep.subr.bf16.mxu1 %v5824_v28  ;;  %v5802_v48 = vpack.c.bf16 %v2116_v0, %v2113_v36  ;;  %v2339_v21 = vld [vmem:[#allocation10 + $0x108] sm:$0xff]  ;;  %v2324_v0 = vld [vmem:[#allocation10 + $0x90] sm:$0xff] }
 0x8e2   : > { %5787 = vmatpush1.bf16.msra.mxu0 %v5786_v49  ;;  %5827 = vmatpush3.bf16.msra.mxu1 %v5824_v28  ;;  %v2118_v49 = vld [vmem:[#allocation8 + $0x118] sm:$0xff]  ;;  %v2307_v36 = vld [vmem:[#allocation10 + $0x8] sm:$0xff] }
 0x8e3   : > { %5789 = vmatprep.subr.bf16.mxu0 %v5788_v2  ;;  %5829 = vmatprep.subr.bf16.mxu1 %v5828_v44  ;;  %v5832_v50 = vpack.c.bf16 %v2118_v49, %v2115_v47  ;;  %v2119_v2 = vld [vmem:[#allocation8 + $0x120] sm:$0xff]  ;;  %v2340_v49 = vld [vmem:[#allocation10 + $0x110] sm:$0xff] }
 0x8e6   : > { %5791 = vmatpush1.bf16.msra.mxu0 %v5790_v6  ;;  %5831 = vmatpush3.bf16.msra.mxu1 %v5828_v44  ;;  %v2129_v6 = vld [vmem:[#allocation8 + $0x170] sm:$0xff] }
 0x8e7   : > { %5793 = vmatprep.subr.bf16.mxu0 %v5792_v18  ;;  %5833 = vmatprep.subr.bf16.mxu1 %v5832_v50  ;;  %v2323_v18 = vld [vmem:[#allocation10 + $0x88] sm:$0xff] }
 0x8e8   : > { %v5844_v19 = vpack.c.bf16 %v2323_v18, %v2322_v24 }
 0x8ea   : > { %5795 = vmatpush1.bf16.msra.mxu0 %v5794_v51  ;;  %5835 = vmatpush3.bf16.msra.mxu1 %v5832_v50  ;;  %v5876_v51 = vpack.c.bf16 %v2339_v21, %v2338_v20  ;;  %v2313_v20 = vld [vmem:[#allocation10 + $0x38] sm:$0xff] }
 0x8eb   : > { %5797 = vmatprep.subr.bf16.mxu0 %v5796_v34 }
 0x8ee   : > { %5799 = vmatpush1.bf16.msra.mxu0 %v5798_v39 }
 0x8ef   : > { %5801 = vmatprep.subr.bf16.mxu0 %v5800_v1  ;;  %v2306_v1 = vld [vmem:[#allocation10] sm:$0xff] }
 0x8f0   : > { %v5846_v50 = vpack.c.bf16 %v2307_v36, %v2306_v1  ;;  %v2316_v36 = vld [vmem:[#allocation10 + $0x50] sm:$0xff] }
 0x8f2   : > { %5803 = vmatpush1.bf16.msra.mxu0 %v5802_v48  ;;  %v2325_v48 = vld [vmem:[#allocation10 + $0x98] sm:$0xff] }
 0x8f3   : > { %5805 = vmatprep.subr.bf16.mxu0 %v5804_v63 }
 0x96d   : > { %v2046_v7 = vpop.xlane.xlu1 %2045 }
 0x96e   : > { %v2048_v8 = vmul.f32 0.010416667, %v2046_v7  ;;  %v2044_v9 = vpop.xlane.xlu0 %2043  ;;  %v5836_v7 = vpack.c.bf16 %v2124_v4, %v2121_v46  ;;  %v5880_v46 = vpack.c.bf16 %v2341_v61, %v2340_v49  ;;  %v2326_v4 = vld [vmem:[#allocation10 + $0xa0] sm:$0xff]  ;;  %v2335_v49 = vld [vmem:[#allocation10 + $0xe8] sm:$0xff] }
 0x96f   : > { %v2047_v11 = vmul.f32 0.010416667, %v2044_v9  ;;  %v2127_v9 = vld [vmem:[#allocation8 + $0x160] sm:$0xff] }
 0x970   : > { %v2050_v12 = vsub.f32 %v7358_v29, %v2048_v8  ;;  %v5806_v8 = vpack.c.bf16 %v2122_v3, %v2119_v2  ;;  %5837 = vmatprep.subr.bf16.mxu1 %v5836_v7  ;;  %v5848_v2 = vpack.c.bf16 %v2325_v48, %v2324_v0  ;;  %v2308_v3 = vld [vmem:[#allocation10 + $0x10] sm:$0xff]  ;;  %v2317_v0 = vld [vmem:[#allocation10 + $0x58] sm:$0xff]  ;;  %v2334_v48 = vld [vmem:[#allocation10 + $0xe0] sm:$0xff] }
 0x971   : > { %v2049_v13 = vsub.f32 %v7361_v25, %v2047_v11  ;;  %v2130_v11 = vld [vmem:[#allocation8 + $0x178] sm:$0xff]  ;;  %5839 = vmatpush3.bf16.msra.mxu1 %v5836_v7  ;;  %v5866_v61 = vpack.c.bf16 %v2317_v0, %v2316_v36 }
 0x972   : > { %v7369_v23 = vsel %vm563_vm0, %v2050_v12, 0.0  ;;  %v5808_v12 = vpack.c.bf16 %v2129_v6, %v2126_v5  ;;  %5807 = vmatpush1.bf16.msra.mxu0 %v5806_v8  ;;  %v2327_v5 = vld [vmem:[#allocation10 + $0xa8] sm:$0xff] }
 0x973   : > { %v2054_v14 = vmul.f32 %v7369_v23, %v7369_v23  ;;  %v7375_v15 = vsel %vm563_vm0, %v2049_v13, 0.0  ;;  %v2125_v13 = vld [vmem:[#allocation8 + $0x150] sm:$0xff]  ;;  %v2343_v6 = vld [vmem:[#allocation10 + $0x128] sm:$0xff]  ;;  %v5852_v8 = vpack.c.bf16 %v2327_v5, %v2326_v4  ;;  %v2337_v5 = vld [vmem:[#allocation10 + $0xf8] sm:$0xff] }
 0x974   : > { %v2053_v16 = vmul.f32 %v7375_v15, %v7375_v15  ;;  %5809 = vmatprep.subr.bf16.mxu0 %v5808_v12  ;;  %v2336_v4 = vld [vmem:[#allocation10 + $0xf0] sm:$0xff] }
 0x975   : > { %2057 = vadd.xlane.f32.xlu1 %v2054_v14  ;;  %v2128_v14 = vld [vmem:[#allocation8 + $0x168] sm:$0xff] }
 0x976   : > { %2055 = vadd.xlane.f32.xlu0 %v2053_v16  ;;  %v5840_v16 = vpack.c.bf16 %v2130_v11, %v2127_v9  ;;  %v5810_v17 = vpack.c.bf16 %v2128_v14, %v2125_v13  ;;  %v2310_v9 = vld [vmem:[#allocation10 + $0x20] sm:$0xff]  ;;  %v2311_v11 = vld [vmem:[#allocation10 + $0x28] sm:$0xff]  ;;  %v2328_v13 = vld [vmem:[#allocation10 + $0xb0] sm:$0xff] }
 0x977   : > { %v2329_v14 = vld [vmem:[#allocation10 + $0xb8] sm:$0xff]  ;;  %v5854_v24 = vpack.c.bf16 %v2311_v11, %v2310_v9 }
 0x978   : > { %5841 = vmatprep.subr.bf16.mxu1 %v5840_v16  ;;  %5811 = vmatpush1.bf16.msra.mxu0 %v5810_v17  ;;  %v2345_v17 = vld [vmem:[#allocation10 + $0x138] sm:$0xff]  ;;  %v5856_v18 = vpack.c.bf16 %v2329_v14, %v2328_v13  ;;  %v2135_v13 = vsub.s32 0, %v7196_v57  ;;  %v2131_v14 = vld [vmem:[%s7788_s26] sm:$0x7] }
 0x979   : > { %5843 = vmatpush3.bf16.msra.mxu1 %v5840_v16  ;;  %5845 = vmatprep.subr.bf16.mxu0 %v5844_v19  ;;  %v2344_v16 = vld [vmem:[#allocation10 + $0x130] sm:$0xff]  ;;  %v2353_v11 = vld [vmem:[#allocation10 + $0x178] sm:$0xff] }
 0x97a   : > { %5877 = vmatprep.subr.bf16.mxu1 %v5876_v51  ;;  %v2312_v19 = vld [vmem:[#allocation10 + $0x30] sm:$0xff]  ;;  %v5888_v21 = vpack.c.bf16 %v2345_v17, %v2344_v16  ;;  %v2139_v16 = vsub.s32 1, %v7196_v57  ;;  %v2143_v17 = vsub.s32 2, %v7196_v57 }
 0xa02   : > { %v2058_v22 = vpop.xlane.xlu1 %2057 }
 0xa03   : > { %v2060_v28 = vmul.f32 0.010416667, %v2058_v22  ;;  %v2056_v30 = vpop.xlane.xlu0 %2055  ;;  %v2331_v22 = vld [vmem:[#allocation10 + $0xc8] sm:$0xff] }
 0xa04   : > { %v2059_v31 = vmul.f32 0.010416667, %v2056_v30  ;;  %v2347_v30 = vld [vmem:[#allocation10 + $0x148] sm:$0xff] }
 0xa05   : > { %v2062_v34 = vadd.f32 1e-05, %v2060_v28  ;;  %v2346_v28 = vld [vmem:[#allocation10 + $0x140] sm:$0xff] }
 0xa06   : > { %v2061_v35 = vadd.f32 1e-05, %v2059_v31  ;;  %v5858_v31 = vpack.c.bf16 %v2313_v20, %v2312_v19  ;;  %v2144_v19 = vrot.slane %v2131_v14, %v2143_v17 }
 0xa07   : > { %6400 = vrsqrt.f32 %v2062_v34 }
 0xa08   : > { %6402 = vrsqrt.f32 %v2061_v35  ;;  %v2314_v35 = vld [vmem:[#allocation10 + $0x40] sm:$0xff] }
 0xa11   : > { %v6401_v37 = vpop.eup %6400 }
 0xa12   : > { %v6403_v39 = vpop.eup %6402  ;;  %v2066_v40 = vmul.f32 %v6401_v37, %v7369_v23  ;;  %v2309_v23 = vld [vmem:[#allocation10 + $0x18] sm:$0xff]  ;;  %v2315_v37 = vld [vmem:[#allocation10 + $0x48] sm:$0xff] }
 0xa13   : > { %v2065_v42 = vmul.f32 %v6403_v39, %v7375_v15  ;;  %v2342_v15 = vld [vmem:[#allocation10 + $0x120] sm:$0xff]  ;;  %v5850_v7 = vpack.c.bf16 %v2309_v23, %v2308_v3  ;;  %v2332_v39 = vld [vmem:[#allocation10 + $0xd0] sm:$0xff]  ;;  %v2351_v23 = vld [vmem:[#allocation10 + $0x168] sm:$0xff] }
 0xa14   : > { %v2074_v44 = vmul.f32 %v4747_v38, %v2066_v40  ;;  %v5884_v12 = vpack.c.bf16 %v2343_v6, %v2342_v15  ;;  %v2333_v40 = vld [vmem:[#allocation10 + $0xd8] sm:$0xff]  ;;  %v5872_v15 = vpack.c.bf16 %v2337_v5, %v2336_v4  ;;  %v2320_v6 = vld [vmem:[#allocation10 + $0x70] sm:$0xff] }
 0xa15   : > { %v2073_v47 = vmul.f32 %v4747_v38, %v2065_v42  ;;  %v5892_v38 = vpack.c.bf16 %v2347_v30, %v2346_v28  ;;  %v2349_v42 = vld [vmem:[#allocation10 + $0x158] sm:$0xff]  ;;  %v5864_v1 = vpack.c.bf16 %v2333_v40, %v2332_v39 }
 0xa16   : > { %v2082_v63 = vadd.f32 %v4748_v41, %v2074_v44  ;;  %v5862_v44 = vpack.c.bf16 %v2315_v37, %v2314_v35 }
 0xa17   : > { %v2081_v45 = vadd.f32 %v4748_v41, %v2073_v47  ;;  %v2348_v41 = vld [vmem:[#allocation10 + $0x150] sm:$0xff] }
 0xa18   : > { %v5896_v47 = vpack.c.bf16 %v2349_v42, %v2348_v41 }
 0xa19   : > { %2213 = vmatmul.mubr.f32.vlgmr.msra.gmra.mrb[10].mxu0 %v2081_v45  ;;  %5327 = vmatprep.mubr.f32.mxu1 %v2081_v45  ;;  %v5868_v45 = vpack.c.bf16 %v2335_v49, %v2334_v48 }
 0xa1a   : > { %5328 = vmatmul.mubr.f32.vlgmr.msra.gmra.mrb[12].mxu1 %v2082_v63  ;;  %2218 = vmatprep.mubr.f32.mxu0 %v6720_v10 }
 0xa1b   : > { %5847 = vmatpush3.bf16.msra.mxu0 %v5846_v50  ;;  %5879 = vmatpush3.bf16.msra.mxu1 %v5876_v51  ;;  %v2330_v51 = vld [vmem:[#allocation10 + $0xc0] sm:$0xff] }
 0xa1c   : > { %5849 = vmatprep.subr.bf16.mxu0 %v5848_v2  ;;  %5881 = vmatprep.subr.bf16.mxu1 %v5880_v46  ;;  %v5860_v34 = vpack.c.bf16 %v2331_v22, %v2330_v51  ;;  %v2318_v50 = vld [vmem:[#allocation10 + $0x60] sm:$0xff] }
 0xa1d   : > { %2219 = vmatmul.mubr.f32.gmra.mrb[12].mxu0 %v2082_v63  ;;  %v2319_v63 = vld [vmem:[#allocation10 + $0x68] sm:$0xff]  ;;  %v2350_v2 = vld [vmem:[#allocation10 + $0x160] sm:$0xff] }
 0xa1e   : > { %v5870_v3 = vpack.c.bf16 %v2319_v63, %v2318_v50 }
 0xa1f   : > { %5851 = vmatpush3.bf16.msra.mxu0 %v5850_v7  ;;  %5883 = vmatpush3.bf16.msra.mxu1 %v5880_v46  ;;  %v5900_v46 = vpack.c.bf16 %v2351_v23, %v2350_v2  ;;  %v2321_v7 = vld [vmem:[#allocation10 + $0x78] sm:$0xff]  ;;  %v4749_v2 = vld [vmem:[%s7789_s14] ss:$0 sm:$0xff] }
 0xa20   : > { %5853 = vmatprep.subr.bf16.mxu0 %v5852_v8  ;;  %5885 = vmatprep.subr.bf16.mxu1 %v5884_v12  ;;  %v2352_v8 = vld [vmem:[#allocation10 + $0x170] sm:$0xff]  ;;  %v5874_v9 = vpack.c.bf16 %v2321_v7, %v2320_v6  ;;  %v2561_v6 = vld [vmem:[#allocation5 + $0x188] sm:$0xff]  ;;  %v2564_v7 = vld [vmem:[#allocation5 + $0x1a0] sm:$0xff] }
 0xa23   : > { %5855 = vmatpush3.bf16.msra.mxu0 %v5854_v24  ;;  %5887 = vmatpush3.bf16.msra.mxu1 %v5884_v12  ;;  %v5904_v12 = vpack.c.bf16 %v2353_v11, %v2352_v8  ;;  %v2136_v24 = vrot.slane %v2131_v14, %v2135_v13  ;;  %v2560_v8 = vld [vmem:[#allocation5 + $0x180] sm:$0xff]  ;;  %v2563_v11 = vld [vmem:[#allocation5 + $0x198] sm:$0xff] }
 0xa24   : > { %5857 = vmatprep.subr.bf16.mxu0 %v5856_v18  ;;  %5889 = vmatprep.subr.bf16.mxu1 %v5888_v21  ;;  %v2140_v18 = vrot.slane %v2131_v14, %v2139_v16  ;;  %v2570_v14 = vld [vmem:[#allocation5 + $0x1d0] sm:$0xff] }
 0xa27   : > { %5859 = vmatpush3.bf16.msra.mxu0 %v5858_v31  ;;  %5891 = vmatpush3.bf16.msra.mxu1 %v5888_v21 }
 0xa28   : > { %5861 = vmatprep.subr.bf16.mxu0 %v5860_v34  ;;  %5893 = vmatprep.subr.bf16.mxu1 %v5892_v38 }
 0xa2b   : > { %5863 = vmatpush3.bf16.msra.mxu0 %v5862_v44  ;;  %5895 = vmatpush3.bf16.msra.mxu1 %v5892_v38 }
 0xa2c   : > { %5865 = vmatprep.subr.bf16.mxu0 %v5864_v1  ;;  %5897 = vmatprep.subr.bf16.mxu1 %v5896_v47 }
 0xa2f   : > { %5867 = vmatpush3.bf16.msra.mxu0 %v5866_v61  ;;  %5899 = vmatpush3.bf16.msra.mxu1 %v5896_v47 }
 0xa30   : > { %5869 = vmatprep.subr.bf16.mxu0 %v5868_v45  ;;  %5901 = vmatprep.subr.bf16.mxu1 %v5900_v46 }
 0xa33   : > { %5871 = vmatpush3.bf16.msra.mxu0 %v5870_v3  ;;  %5903 = vmatpush3.bf16.msra.mxu1 %v5900_v46 }
 0xa34   : > { %5873 = vmatprep.subr.bf16.mxu0 %v5872_v15  ;;  %5905 = vmatprep.subr.bf16.mxu1 %v5904_v12 }
 0xa37   : > { %5875 = vmatpush3.bf16.msra.mxu0 %v5874_v9  ;;  %5907 = vmatpush3.bf16.msra.mxu1 %v5904_v12  ;;  %v5908_v9 = vpack.c.bf16 %v2564_v7, %v2561_v6  ;;  %v2567_v12 = vld [vmem:[#allocation5 + $0x1b8] sm:$0xff]  ;;  %v2585_v6 = vld [vmem:[#allocation5 + $0x248] sm:$0xff]  ;;  %v2588_v7 = vld [vmem:[#allocation5 + $0x260] sm:$0xff] }
 0xa39   : > { %5909 = vmatprep.subr.bf16.mxu0 %v5908_v9  ;;  %v5924_v9 = vpack.c.bf16 %v2588_v7, %v2585_v6 }
 0xaec   : > { %v2214_v20 = vpop.f32.mrb[10].mxu0 }
 0xaed   : > { %v2215_v21 = vadd.f32 %v2214_v20, %v2136_v24  ;;  %v2216_v51 = vpop.f32.mrb[11].mxu0  ;;  %v5329_v22 = vpop.f32.mrb[12].mxu1  ;;  %v2566_v20 = vld [vmem:[#allocation5 + $0x1b0] sm:$0xff] }
 0xaee   : > { %v2217_v28 = vadd.f32 %v2216_v51, %v2140_v18  ;;  %v2297_v30 = vadd.f32 %v5329_v22, %v2144_v19  ;;  %v2291_v31 = vpop.f32.mrb[13].mxu1  ;;  %v2573_v51 = vld [vmem:[#allocation5 + $0x1e8] sm:$0xff]  ;;  %v2576_v22 = vld [vmem:[#allocation5 + $0x200] sm:$0xff] }
 0xaef   : > { %v2292_v34 = vadd.f32 %v2291_v31, %v2144_v19  ;;  %v2300_v38 = vmax.f32 %v2215_v21, 0.0  ;;  %v2565_v19 = vld [vmem:[#allocation5 + $0x1a8] sm:$0xff]  ;;  %v2571_v31 = vld [vmem:[#allocation5 + $0x1d8] sm:$0xff] }
 0xaf0   : > { %v2301_v35 = vmax.f32 %v2217_v28, 0.0  ;;  %v2220_v37 = vpop.f32.mrb[12].mxu0  ;;  %v2305_v42 = vmax.f32 %v2297_v30, 0.0  ;;  %v2569_v21 = vld [vmem:[#allocation5 + $0x1c8] sm:$0xff]  ;;  %v2568_v30 = vld [vmem:[#allocation5 + $0x1c0] sm:$0xff] }
 0xaf1   : > { %v2302_v39 = vmax.f32 %v2292_v34, 0.0  ;;  %v2221_v40 = vadd.f32 %v2220_v37, %v2136_v24  ;;  %v2222_v41 = vpop.f32.mrb[13].mxu0  ;;  %v5912_v24 = vpack.c.bf16 %v2570_v14, %v2567_v12  ;;  %v5914_v28 = vpack.c.bf16 %v2569_v21, %v2566_v20  ;;  %v2572_v37 = vld [vmem:[#allocation5 + $0x1e0] sm:$0xff]  ;;  %v2587_v14 = vld [vmem:[#allocation5 + $0x258] sm:$0xff]  ;;  %v2586_v20 = vld [vmem:[#allocation5 + $0x250] sm:$0xff] }
 0xaf2   : > { %v2223_v44 = vadd.f32 %v2222_v41, %v2140_v18  ;;  %2418 = vmatprep.mubr.f32.mxu0 %v2301_v35  ;;  %v2562_v18 = vld [vmem:[#allocation5 + $0x190] sm:$0xff]  ;;  %v5916_v34 = vpack.c.bf16 %v2576_v22, %v2573_v51  ;;  %v5944_v35 = vpack.c.bf16 %v2571_v31, %v2568_v30  ;;  %v2584_v12 = vld [vmem:[#allocation5 + $0x240] sm:$0xff]  ;;  %v2589_v21 = vld [vmem:[#allocation5 + $0x268] sm:$0xff] }
 0xaf3   : > { %2419 = vmatmul.mubr.f32.vlgmr.msra.gmra.mrb[14].mxu0 %v2300_v38  ;;  %5362 = vmatprep.mubr.f32.mxu1 %v2302_v39  ;;  %v2303_v36 = vmax.f32 %v2221_v40, 0.0  ;;  %v2575_v38 = vld [vmem:[#allocation5 + $0x1f8] sm:$0xff]  ;;  %v2590_v51 = vld [vmem:[#allocation5 + $0x270] sm:$0xff]  ;;  %v2593_v22 = vld [vmem:[#allocation5 + $0x288] sm:$0xff] }
 0xaf4   : > { %v2304_v1 = vmax.f32 %v2223_v44, 0.0  ;;  %5363 = vmatmul.mubr.f32.vlgmr.msra.gmra.mrb[14].mxu1 %v2305_v42  ;;  %v5918_v39 = vpack.c.bf16 %v2575_v38, %v2572_v37  ;;  %v5930_v30 = vpack.c.bf16 %v2593_v22, %v2590_v51  ;;  %v2597_v31 = vld [vmem:[#allocation5 + $0x2a8] sm:$0xff]  ;;  %v2595_v38 = vld [vmem:[#allocation5 + $0x298] sm:$0xff] }
 0xaf6   : > { %2423 = vmatprep.mubr.f32.mxu0 %v2304_v1 }
 0xaf7   : > { %2424 = vmatmul.mubr.f32.gmra.mrb[16].mxu0 %v2303_v36 }
 0xaf8   : > { %2672 = vmatprep.mubr.f32.mxu0 %v6720_v10 }
 0xbc6   : > { %v4941_v0 = vpop.f32.mrb[14].mxu0 }
 0xbc7   : > { %v4942_v47 = vpop.f32.mrb[15].mxu0  ;;  %v5364_v48 = vpop.f32.mrb[14].mxu1 }
 0xbc8   : > { %v4943_v49 = vadd.f32 %v4942_v47, %v4941_v0  ;;  %v2495_v61 = vpop.f32.mrb[15].mxu1 }
 0xbca   : > { %v2496_v45 = vadd.f32 %v4943_v49, %v2495_v61  ;;  %v4944_v50 = vpop.f32.mrb[16].mxu0  ;;  %v2579_v61 = vld [vmem:[#allocation5 + $0x218] sm:$0xff] }
 0xbcb   : > { %v4945_v63 = vpop.f32.mrb[17].mxu0 }
 0xbcc   : > { %v2504_v3 = vadd.f32 %v2496_v45, %v7361_v25  ;;  %v4946_v23 = vadd.f32 %v4945_v63, %v4944_v50  ;;  %v5910_v25 = vpack.c.bf16 %v2563_v11, %v2560_v8  ;;  %v2582_v45 = vld [vmem:[#allocation5 + $0x230] sm:$0xff]  ;;  %v2580_v8 = vld [vmem:[#allocation5 + $0x220] sm:$0xff]  ;;  %v2583_v11 = vld [vmem:[#allocation5 + $0x238] sm:$0xff] }
 0xbcd   : > { %v2574_v50 = vld [vmem:[#allocation5 + $0x1f0] sm:$0xff]  ;;  %v5920_v63 = vpack.c.bf16 %v2582_v45, %v2579_v61  ;;  %v2605_v45 = vld [vmem:[#allocation5 + $0x2e8] sm:$0xff] }
 0xbce   : > { %v2501_v46 = vadd.f32 %v5364_v48, %v4946_v23  ;;  %v7405_v4 = vadd.f32 %v4749_v2, %v2504_v3  ;;  %5911 = vmatpush1.bf16.msra.mxu0 %v5910_v25  ;;  %v2578_v3 = vld [vmem:[#allocation5 + $0x210] sm:$0xff]  ;;  %v2581_v23 = vld [vmem:[#allocation5 + $0x228] sm:$0xff]  ;;  %v5952_v25 = vpack.c.bf16 %v2583_v11, %v2580_v8 }
 0xbcf   : > { %5913 = vmatprep.subr.bf16.mxu0 %v5912_v24  ;;  %v5926_v24 = vpack.c.bf16 %v2587_v14, %v2584_v12  ;;  %v2602_v61 = vld [vmem:[#allocation5 + $0x2d0] sm:$0xff]  ;;  %v4752_v12 = vld [vmem:[%s7710_s1 + $0x1] ss:$0 sm:$0xff] }
 0xbd0   : > { %v2505_v5 = vadd.f32 %v2501_v46, %v7358_v29  ;;  %2519 = vadd.xlane.f32.xlu0 %v7405_v4  ;;  %v5940_v29 = vpack.c.bf16 %v2565_v19, %v2562_v18  ;;  %v2591_v18 = vld [vmem:[#allocation5 + $0x278] sm:$0xff]  ;;  %v2594_v19 = vld [vmem:[#allocation5 + $0x290] sm:$0xff] }
 0xbd2   : > { %v7409_v15 = vadd.f32 %v4749_v2, %v2505_v5  ;;  %5941 = vmatprep.subr.bf16.mxu1 %v5940_v29  ;;  %5915 = vmatpush1.bf16.msra.mxu0 %v5914_v28  ;;  %v2577_v2 = vld [vmem:[#allocation5 + $0x208] sm:$0xff]  ;;  %v5922_v5 = vpack.c.bf16 %v2581_v23, %v2578_v3  ;;  %v5956_v28 = vpack.c.bf16 %v2589_v21, %v2586_v20  ;;  %v2607_v3 = vld [vmem:[#allocation5 + $0x2f8] sm:$0xff] }
 0xbd3   : > { %5943 = vmatpush3.bf16.msra.mxu1 %v5940_v29  ;;  %5917 = vmatprep.subr.bf16.mxu0 %v5916_v34  ;;  %v5948_v46 = vpack.c.bf16 %v2577_v2, %v2574_v50  ;;  %v5928_v29 = vpack.c.bf16 %v2594_v19, %v2591_v18  ;;  %v2600_v34 = vld [vmem:[#allocation5 + $0x2c0] sm:$0xff] }
 0xbd4   : > { %2521 = vadd.xlane.f32.xlu1 %v7409_v15  ;;  %5945 = vmatprep.subr.bf16.mxu1 %v5944_v35  ;;  %v5932_v37 = vpack.c.bf16 %v2600_v34, %v2597_v31  ;;  %v2604_v2 = vld [vmem:[#allocation5 + $0x2e0] sm:$0xff] }
 0xbd5   : > { %v5968_v23 = vpack.c.bf16 %v2607_v3, %v2604_v2 }
 0xbd6   : > { %5919 = vmatpush1.bf16.msra.mxu0 %v5918_v39  ;;  %v2596_v39 = vld [vmem:[#allocation5 + $0x2a0] sm:$0xff] }
 0xbd7   : > { %5947 = vmatpush3.bf16.msra.mxu1 %v5944_v35  ;;  %5921 = vmatprep.subr.bf16.mxu0 %v5920_v63  ;;  %v2592_v35 = vld [vmem:[#allocation5 + $0x280] sm:$0xff]  ;;  %v5938_v63 = vpack.c.bf16 %v2605_v45, %v2602_v61 }
 0xbd8   : > { %5949 = vmatprep.subr.bf16.mxu1 %v5948_v46 }
 0xbda   : > { %5923 = vmatpush1.bf16.msra.mxu0 %v5922_v5 }
 0xbdb   : > { %5951 = vmatpush3.bf16.msra.mxu1 %v5948_v46  ;;  %5925 = vmatprep.subr.bf16.mxu0 %v5924_v9 }
 0xbdc   : > { %5953 = vmatprep.subr.bf16.mxu1 %v5952_v25 }
 0xbde   : > { %5927 = vmatpush1.bf16.msra.mxu0 %v5926_v24 }
 0xbdf   : > { %5955 = vmatpush3.bf16.msra.mxu1 %v5952_v25  ;;  %5929 = vmatprep.subr.bf16.mxu0 %v5928_v29  ;;  %v4753_v25 = vld [vmem:[%s7711_s2 + $0x1] ss:$0 sm:$0xff] }
 0xbe0   : > { %5957 = vmatprep.subr.bf16.mxu1 %v5956_v28 }
 0xbe2   : > { %5931 = vmatpush1.bf16.msra.mxu0 %v5930_v30 }
 0xbe3   : > { %5959 = vmatpush3.bf16.msra.mxu1 %v5956_v28  ;;  %5933 = vmatprep.subr.bf16.mxu0 %v5932_v37 }
 0xc5d   : > { %v2520_v40 = vpop.xlane.xlu0 %2519 }
 0xc5e   : > { %v2523_v41 = vmul.f32 0.010416667, %v2520_v40  ;;  %v2599_v40 = vld [vmem:[#allocation5 + $0x2b8] sm:$0xff] }
 0xc60   : > { %v2525_v42 = vsub.f32 %v7405_v4, %v2523_v41  ;;  %v5960_v41 = vpack.c.bf16 %v2595_v38, %v2592_v35 }
 0xc61   : > { %v2522_v44 = vpop.xlane.xlu1 %2521 }
 0xc62   : > { %v2524_v1 = vmul.f32 0.010416667, %v2522_v44  ;;  %v7415_v36 = vsel %vm563_vm0, %v2525_v42, 0.0  ;;  %v5934_v42 = vpack.c.bf16 %v2599_v40, %v2596_v39  ;;  %5961 = vmatprep.subr.bf16.mxu1 %v5960_v41  ;;  %v2603_v44 = vld [vmem:[#allocation5 + $0x2d8] sm:$0xff] }
 0xc63   : > { %v2529_v0 = vmul.f32 %v7415_v36, %v7415_v36  ;;  %5963 = vmatpush3.bf16.msra.mxu1 %v5960_v41 }
 0xc64   : > { %v2526_v47 = vsub.f32 %v7409_v15, %v2524_v1  ;;  %5935 = vmatpush1.bf16.msra.mxu0 %v5934_v42  ;;  %v2606_v1 = vld [vmem:[#allocation5 + $0x2f0] sm:$0xff] }
 0xc65   : > { %2531 = vadd.xlane.f32.xlu0 %v2529_v0  ;;  %v2598_v0 = vld [vmem:[#allocation5 + $0x2b0] sm:$0xff] }
 0xc66   : > { %v7422_v48 = vsel %vm563_vm0, %v2526_v47, 0.0  ;;  %v5936_v47 = vpack.c.bf16 %v2606_v1, %v2603_v44 }
 0xc67   : > { %v2530_v49 = vmul.f32 %v7422_v48, %v7422_v48 }
 0xc68   : > { %5937 = vmatprep.subr.bf16.mxu0 %v5936_v47 }
 0xc69   : > { %2533 = vadd.xlane.f32.xlu1 %v2530_v49  ;;  %v2601_v49 = vld [vmem:[#allocation5 + $0x2c8] sm:$0xff]  ;;  %5939 = vmatpush1.bf16.msra.mxu0 %v5938_v63 }
 0xc6a   : > { %v5964_v50 = vpack.c.bf16 %v2601_v49, %v2598_v0 }
 0xc6c   : > { %5965 = vmatprep.subr.bf16.mxu1 %v5964_v50 }
 0xc6d   : > { %5967 = vmatpush3.bf16.msra.mxu1 %v5964_v50 }
 0xc6e   : > { %5969 = vmatprep.subr.bf16.mxu1 %v5968_v23 }
 0xc71   : > { %5971 = vmatpush3.bf16.msra.mxu1 %v5968_v23 }
 0xcf2   : > { %v2532_v46 = vpop.xlane.xlu0 %2531 }
 0xcf3   : > { %v2535_v5 = vmul.f32 0.010416667, %v2532_v46 }
 0xcf5   : > { %v2537_v6 = vadd.f32 1e-05, %v2535_v5 }
 0xcf6   : > { %v2534_v7 = vpop.xlane.xlu1 %2533 }
 0xcf7   : > { %6404 = vrsqrt.f32 %v2537_v6  ;;  %v2536_v8 = vmul.f32 0.010416667, %v2534_v7 }
 0xcf9   : > { %v2538_v9 = vadd.f32 1e-05, %v2536_v8 }
 0xcfb   : > { %6406 = vrsqrt.f32 %v2538_v9 }
 0xd01   : > { %v6405_v11 = vpop.eup %6404 }
 0xd02   : > { %v2541_v14 = vmul.f32 %v6405_v11, %v7415_v36 }
 0xd04   : > { %v2549_v24 = vmul.f32 %v4752_v12, %v2541_v14 }
 0xd05   : > { %v6407_v18 = vpop.eup %6406 }
 0xd06   : > { %v2557_v19 = vadd.f32 %v4753_v25, %v2549_v24  ;;  %v2542_v20 = vmul.f32 %v6407_v18, %v7422_v48 }
 0xd08   : > { %2673 = vmatmul.mubr.f32.vlgmr.msra.gmra.mrb[18].mxu0 %v2557_v19  ;;  %5397 = vmatprep.mubr.f32.mxu1 %v2557_v19  ;;  %v2550_v29 = vmul.f32 %v4752_v12, %v2542_v20 }
 0xd09   : > { %2678 = vmatprep.mubr.f32.mxu0 %v6720_v10 }
 0xd0a   : > { %v2558_v21 = vadd.f32 %v4753_v25, %v2550_v29 }
 0xd0c   : > { %2679 = vmatmul.mubr.f32.gmra.mrb[20].mxu0 %v2558_v21  ;;  %5398 = vmatmul.mubr.f32.vlgmr.msra.gmra.mrb[16].mxu1 %v2558_v21 }
 0xddb   : > { %v7435_v51 = vpop.f32.mrb[18].mxu0 }
 0xddc   : > { %v2676_v36 = vpop.f32.mrb[19].mxu0  ;;  %5404 = vmatprep.mubr.msk.f32.mxu0 %vm7790_vm11, %v7435_v51  ;;  %5446 = vmatprep.mubr.msk.f32.mxu1 %vm7166_vm12, %v7435_v51 }
 0xddf   : > { %v7443_v48 = vpop.f32.mrb[20].mxu0  ;;  %v5399_v22 = vpop.f32.mrb[16].mxu1 }
 0xde0   : > { %v2682_v28 = vpop.f32.mrb[21].mxu0  ;;  %v2751_v30 = vpop.f32.mrb[17].mxu1 }
 0xde1   : > { %v7445_v31 = vpack.c.bf16 %v2682_v28, %v2676_v36  ;;  %v7447_v34 = vpack.c.bf16 %v5399_v22, %v2751_v30 }
 0xde3   : > { %5973 = vmatprep.subr.bf16.mxu0 %v7445_v31  ;;  %6003 = vmatprep.subr.bf16.mxu1 %v7445_v31 }
 0xde4   : > { %5975 = vmatpush3.bf16.xpose.msra.mxu0 %v7445_v31  ;;  %6005 = vmatpush3.bf16.xpose.msra.mxu1 %v7445_v31 }
 0xde5   : > { %5977 = vmatprep.subr.bf16.mxu0 %v7445_v31  ;;  %6013 = vmatprep.subr.bf16.mxu1 %v7445_v31 }
 0xdeb   : > { %5405 = vmatmul.mubr.msk.f32.vlgmr.msra.gmra.mrb[22].mxu0 %vm7790_vm11, %v7443_v48  ;;  %5447 = vmatmul.mubr.msk.f32.vlgmr.msra.gmra.mrb[18].mxu1 %vm7166_vm12, %v7443_v48 }
 0xdec   : > { %5979 = vmatpush3.bf16.xpose.msra.mxu0 %v7445_v31  ;;  %5411 = vmatprep.mubr.msk.f32.mxu0 %vm7101_vm4, %v7435_v51 }
 0xded   : > { %6015 = vmatpush3.bf16.xpose.msra.mxu1 %v7445_v31  ;;  %5460 = vmatprep.mubr.msk.f32.mxu1 %vm7285_vm13, %v7435_v51 }
 0xdee   : > { %5982 = vmatprep.subr.msk.bf16.mxu0 %vm7122_vm5, %v7447_v34  ;;  %6023 = vmatprep.subr.bf16.mxu1 %v7445_v31 }
 0xdf3   : > { %5412 = vmatmul.mubr.msk.f32.vlgmr.msra.gmra.mrb[24].mxu0 %vm7101_vm4, %v7443_v48 }
 0xdf4   : > { %5461 = vmatmul.mubr.msk.f32.vlgmr.msra.gmra.mrb[20].mxu1 %vm7285_vm13, %v7443_v48  ;;  %5985 = vmatpush3.bf16.msk.msra.mxu0 %vm7122_vm5, %v7447_v34 }
 0xdf5   : > { %6025 = vmatpush3.bf16.xpose.msra.mxu1 %v7445_v31  ;;  %5474 = vmatprep.mubr.msk.f32.mxu1 %vm7181_vm14, %v7435_v51 }
 0xdf6   : > { %5988 = vmatprep.subr.msk.bf16.mxu0 %vm7143_vm9, %v7447_v34 }
 0xdfc   : > { %5475 = vmatmul.mubr.msk.f32.vlgmr.msra.gmra.mrb[22].mxu1 %vm7181_vm14, %v7443_v48 }
 0xdfd   : > { %4149 = vmatprep.mubr.f32.mxu1 %v6720_v10 }
 0xebe   : > { %v5406_v33 = vpop.f32.mrb[22].mxu0  ;;  %v7493_v55 = vpop.f32.mrb[18].mxu1 }
 0xebf   : > { %v2828_v52 = vpop.f32.mrb[23].mxu0  ;;  %v7495_v58 = vpop.f32.mrb[19].mxu1  ;;  %v2838_v42 = vsel %vm7200_vm15, %v5406_v33, -inf  ;;  %v3392_v53 = vsel %vm7200_vm15, %v7493_v55, -inf }
 0xec0   : > { %v2837_v1 = vsel %vm7206_vm1, %v2828_v52, -inf  ;;  %v2842_v0 = vsel %vm893_vm2, %v2838_v42, -inf }
 0xec1   : > { %v2839_v47 = vsel %vm893_vm2, %v2837_v1, -inf }
 0xec6   : > { %v5413_v35 = vpop.f32.mrb[24].mxu0 }
 0xec7   : > { %v2941_v37 = vsel %vm7200_vm15, %v5413_v35, -inf  ;;  %v7499_v38 = vpop.f32.mrb[20].mxu1  ;;  %v2931_v39 = vpop.f32.mrb[25].mxu0 }
 0xec8   : > { %v2940_v40 = vsel %vm7206_vm1, %v2931_v39, -inf  ;;  %v7503_v56 = vpop.f32.mrb[21].mxu1  ;;  %v2945_v41 = vsel %vm893_vm2, %v2941_v37, -inf }
 0xec9   : > { %2946 = vmax.xlane.f32.xlu1 %v2945_v41  ;;  %v2942_v44 = vsel %vm893_vm2, %v2940_v40, -inf  ;;  %v3577_v55 = vsel %vm7206_vm1, %v7503_v56, -inf }
 0xeca   : > { %2943 = vmax.xlane.f32.xlu0 %v2942_v44  ;;  %v3396_v44 = vsel %vm893_vm2, %v3392_v53, -inf }
 0xecd   : > { %2843 = vmax.xlane.f32.xlu1 %v2842_v0 }
 0xece   : > { %2840 = vmax.xlane.f32.xlu0 %v2839_v47 }
 0xecf   : > { %v7513_v49 = vpop.f32.mrb[22].mxu1 }
 0xed0   : > { %v7515_v61 = vpop.f32.mrb[23].mxu1 }
 0xf56   : > { %v2947_v45 = vpop.xlane.xlu1 %2946 }
 0xf57   : > { %v2949_v50 = vsub.f32 %v2941_v37, %v2947_v45  ;;  %v2944_v63 = vpop.xlane.xlu0 %2943  ;;  %v3579_v45 = vsel %vm893_vm2, %v3577_v55, -inf }
 0xf58   : > { %v2948_v2 = vsub.f32 %v2940_v40, %v2944_v63 }
 0xf59   : > { %v2952_v3 = vmul.f32 1.442695, %v2949_v50 }
 0xf5a   : > { %v2950_v23 = vmul.f32 1.442695, %v2948_v2  ;;  %v2844_v46 = vpop.xlane.xlu1 %2843 }
 0xf5b   : > { %6408 = vpow2.f32 %v2952_v3  ;;  %v2846_v5 = vsub.f32 %v2838_v42, %v2844_v46  ;;  %v2841_v6 = vpop.xlane.xlu0 %2840 }
 0xf5c   : > { %6410 = vpow2.f32 %v2950_v23  ;;  %v2845_v7 = vsub.f32 %v2837_v1, %v2841_v6  ;;  %v3578_v1 = vsel %vm7200_vm15, %v7499_v38, -inf  ;;  %v3763_v38 = vsel %vm7206_vm1, %v7515_v61, -inf }
 0xf5d   : > { %v2849_v8 = vmul.f32 1.442695, %v2846_v5  ;;  %v3582_v47 = vsel %vm893_vm2, %v3578_v1, -inf  ;;  %v3765_v56 = vsel %vm893_vm2, %v3763_v38, -inf }
 0xf5e   : > { %v2847_v9 = vmul.f32 1.442695, %v2845_v7 }
 0xf5f   : > { %6412 = vpow2.f32 %v2849_v8 }
 0xf60   : > { %6414 = vpow2.f32 %v2847_v9 }
 0xf65   : > { %v6409_v11 = vpop.eup %6408 }
 0xf66   : > { %v6411_v12 = vpop.eup %6410  ;;  %v2957_v14 = vsel %vm893_vm2, %v6409_v11, 0.0 }
 0xf67   : > { %2958 = vadd.xlane.f32.xlu1 %v2957_v14  ;;  %v2954_v25 = vsel %vm893_vm2, %v6411_v12, 0.0 }
 0xf68   : > { %2955 = vadd.xlane.f32.xlu0 %v2954_v25 }
 0xf69   : > { %v6413_v24 = vpop.eup %6412 }
 0xf6a   : > { %v6415_v18 = vpop.eup %6414  ;;  %v2854_v19 = vsel %vm893_vm2, %v6413_v24, 0.0 }
 0xf6b   : > { %2855 = vadd.xlane.f32.xlu1 %v2854_v19  ;;  %v2851_v20 = vsel %vm893_vm2, %v6415_v18, 0.0 }
 0xf6c   : > { %2852 = vadd.xlane.f32.xlu0 %v2851_v20 }
 0xff4   : > { %v2959_v29 = vpop.xlane.xlu1 %2958 }
 0xff5   : > { %6416 = vrcp.f32 %v2959_v29  ;;  %v2956_v21 = vpop.xlane.xlu0 %2955 }
 0xff6   : > { %6418 = vrcp.f32 %v2956_v21 }
 0xff8   : > { %v2856_v22 = vpop.xlane.xlu1 %2855 }
 0xff9   : > { %v2853_v36 = vpop.xlane.xlu0 %2852 }
 0xffa   : > { %6420 = vrcp.f32 %v2853_v36 }
 0xffb   : > { %6422 = vrcp.f32 %v2856_v22 }
 0xfff   : > { %v6417_v28 = vpop.eup %6416 }
0x1000   : > { %v6419_v30 = vpop.eup %6418  ;;  %v2963_v52 = vmul.f32 %v6417_v28, %v6409_v11 }
0x1001   : > { %v2962_v33 = vmul.f32 %v6419_v30, %v6411_v12 }
0x1003   : > { %5418 = vmatprep.mubr.msk.f32.mxu0 %vm893_vm2, %v2962_v33 }
0x1004   : > { %v6421_v35 = vpop.eup %6420  ;;  %5419 = vmatmul.mubr.msk.f32.vlgmr.msra.gmra.mrb[26].mxu0 %vm893_vm2, %v2963_v52 }
0x1005   : > { %5991 = vmatpush3.bf16.msk.msra.mxu0 %vm7143_vm9, %v7447_v34  ;;  %v2859_v37 = vmul.f32 %v6421_v35, %v6415_v18  ;;  %v6423_v39 = vpop.eup %6422 }
0x1006   : > { %5993 = vmatprep.subr.bf16.mxu0 %v7445_v31  ;;  %v2860_v40 = vmul.f32 %v6423_v39, %v6413_v24 }
0x1007   : > { %5425 = vmatprep.mubr.msk.f32.mxu0 %vm893_vm2, %v2859_v37 }
0x100c   : > { %5426 = vmatmul.mubr.msk.f32.vlgmr.msra.gmra.mrb[26].mxu0 %vm893_vm2, %v2860_v40 }
0x100d   : > { %5432 = vmatprep.mubr.msk.f32.mxu0 %vm7136_vm8, %v7435_v51 }
0x100e   : > { %5995 = vmatpush3.bf16.xpose.msra.mxu0 %v7445_v31 }
0x100f   : > { %5998 = vmatprep.subr.msk.bf16.mxu0 %vm7250_vm6, %v7447_v34 }
0x1015   : > { %5433 = vmatmul.mubr.msk.f32.vlgmr.msra.gmra.mrb[28].mxu0 %vm7136_vm8, %v7443_v48  ;;  %v3391_v48 = vsel %vm7206_vm1, %v7495_v58, -inf  ;;  %v3764_v58 = vsel %vm7200_vm15, %v7513_v49, -inf }
0x1016   : > { %6001 = vmatpush3.bf16.msk.msra.mxu0 %vm7250_vm6, %v7447_v34  ;;  %v3393_v0 = vsel %vm893_vm2, %v3391_v48, -inf  ;;  %v3768_v50 = vsel %vm893_vm2, %v3764_v58, -inf }
0x1017   : > { %6008 = vmatprep.subr.msk.bf16.mxu0 %vm7265_vm7, %v7447_v34 }
0x10e8   : > { %v5434_v54 = vpop.f32.mrb[28].mxu0 }
0x10e9   : > { %v3206_v51 = vsel %vm7200_vm15, %v5434_v54, -inf  ;;  %v3196_v31 = vpop.f32.mrb[29].mxu0 }
0x10ea   : > { %v3205_v41 = vsel %vm7206_vm1, %v3196_v31, -inf  ;;  %v3210_v42 = vsel %vm893_vm2, %v3206_v51, -inf }
0x10eb   : > { %3211 = vmax.xlane.f32.xlu1 %v3210_v42  ;;  %v3207_v32 = vsel %vm893_vm2, %v3205_v41, -inf }
0x10ec   : > { %3208 = vmax.xlane.f32.xlu0 %v3207_v32 }
0x10ef   : > { %3397 = vmax.xlane.f32.xlu1 %v3396_v44 }
0x10f0   : > { %3394 = vmax.xlane.f32.xlu0 %v3393_v0 }
0x10f3   : > { %3583 = vmax.xlane.f32.xlu1 %v3582_v47 }
0x10f4   : > { %3580 = vmax.xlane.f32.xlu0 %v3579_v45 }
0x10f7   : > { %3769 = vmax.xlane.f32.xlu1 %v3768_v50 }
0x10f8   : > { %3766 = vmax.xlane.f32.xlu0 %v3765_v56 }
0x1178   : > { %v3212_v63 = vpop.xlane.xlu1 %3211 }
0x1179   : > { %v3214_v2 = vsub.f32 %v3206_v51, %v3212_v63  ;;  %v3209_v3 = vpop.xlane.xlu0 %3208 }
0x117a   : > { %v3213_v23 = vsub.f32 %v3205_v41, %v3209_v3 }
0x117b   : > { %v3217_v59 = vmul.f32 1.442695, %v3214_v2 }
0x117c   : > { %v3215_v49 = vmul.f32 1.442695, %v3213_v23  ;;  %v3398_v46 = vpop.xlane.xlu1 %3397 }
0x117d   : > { %6424 = vpow2.f32 %v3217_v59  ;;  %v3400_v5 = vsub.f32 %v3392_v53, %v3398_v46  ;;  %v3395_v6 = vpop.xlane.xlu0 %3394  ;;  %v3873_v46 = vld [vmem:[#allocation7 + $0x80] sm:$0xff] }
0x117e   : > { %6426 = vpow2.f32 %v3215_v49  ;;  %v3399_v60 = vsub.f32 %v3391_v48, %v3395_v6 }
0x117f   : > { %v3403_v61 = vmul.f32 1.442695, %v3400_v5  ;;  %v3874_v5 = vld [vmem:[#allocation7 + $0x88] sm:$0xff] }
0x1180   : > { %v3401_v7 = vmul.f32 1.442695, %v3399_v60  ;;  %v3584_v8 = vpop.xlane.xlu1 %3583 }
0x1181   : > { %6428 = vpow2.f32 %v3403_v61  ;;  %v3586_v9 = vsub.f32 %v3578_v1, %v3584_v8  ;;  %v3581_v11 = vpop.xlane.xlu0 %3580  ;;  %v6032_v61 = vpack.c.bf16 %v3874_v5, %v3873_v46  ;;  %v3875_v8 = vld [vmem:[#allocation7 + $0x90] sm:$0xff]  ;;  %v4031_v46 = vld [vmem:[#allocation8 + $0x1e0] sm:$0xff] }
0x1182   : > { %6430 = vpow2.f32 %v3401_v7  ;;  %v3585_v12 = vsub.f32 %v3577_v55, %v3581_v11 }
0x1183   : > { %v3589_v14 = vmul.f32 1.442695, %v3586_v9  ;;  %v3876_v9 = vld [vmem:[#allocation7 + $0x98] sm:$0xff] }
0x1184   : > { %v3587_v25 = vmul.f32 1.442695, %v3585_v12  ;;  %v3770_v24 = vpop.xlane.xlu1 %3769  ;;  %v6036_v12 = vpack.c.bf16 %v3876_v9, %v3875_v8 }
0x1185   : > { %6432 = vpow2.f32 %v3589_v14  ;;  %v3772_v18 = vsub.f32 %v3764_v58, %v3770_v24  ;;  %v3767_v19 = vpop.xlane.xlu0 %3766  ;;  %v3877_v14 = vld [vmem:[#allocation7 + $0xa0] sm:$0xff] }
0x1186   : > { %6434 = vpow2.f32 %v3587_v25  ;;  %v3771_v20 = vsub.f32 %v3763_v38, %v3767_v19  ;;  %v3878_v25 = vld [vmem:[#allocation7 + $0xa8] sm:$0xff]  ;;  %v3880_v19 = vld [vmem:[#allocation7 + $0xb8] sm:$0xff] }
0x1187   : > { %v6425_v29 = vpop.eup %6424  ;;  %v3775_v21 = vmul.f32 1.442695, %v3772_v18  ;;  %v6040_v24 = vpack.c.bf16 %v3878_v25, %v3877_v14  ;;  %v3879_v18 = vld [vmem:[#allocation7 + $0xb0] sm:$0xff] }
0x1188   : > { %v6427_v36 = vpop.eup %6426  ;;  %v3773_v22 = vmul.f32 1.442695, %v3771_v20  ;;  %v3222_v28 = vsel %vm893_vm2, %v6425_v29, 0.0  ;;  %v6044_v26 = vpack.c.bf16 %v3880_v19, %v3879_v18  ;;  %v3882_v20 = vld [vmem:[#allocation7 + $0xc8] sm:$0xff] }
0x1189   : > { %6436 = vpow2.f32 %v3775_v21  ;;  %3223 = vadd.xlane.f32.xlu1 %v3222_v28  ;;  %v3219_v30 = vsel %vm893_vm2, %v6427_v36, 0.0  ;;  %v3883_v21 = vld [vmem:[#allocation7 + $0xd0] sm:$0xff]  ;;  %v3885_v28 = vld [vmem:[#allocation7 + $0xe0] sm:$0xff] }
0x118a   : > { %6438 = vpow2.f32 %v3773_v22  ;;  %3220 = vadd.xlane.f32.xlu0 %v3219_v30  ;;  %v3886_v30 = vld [vmem:[#allocation7 + $0xe8] sm:$0xff] }
0x118b   : > { %v6429_v33 = vpop.eup %6428 }
0x118c   : > { %v6431_v52 = vpop.eup %6430  ;;  %v3408_v35 = vsel %vm893_vm2, %v6429_v33, 0.0 }
0x118d   : > { %3409 = vadd.xlane.f32.xlu1 %v3408_v35  ;;  %v3405_v37 = vsel %vm893_vm2, %v6431_v52, 0.0  ;;  %v3888_v35 = vld [vmem:[#allocation7 + $0xf8] sm:$0xff] }
0x118e   : > { %3406 = vadd.xlane.f32.xlu0 %v3405_v37 }
0x118f   : > { %v6433_v39 = vpop.eup %6432 }
0x1190   : > { %v6435_v40 = vpop.eup %6434  ;;  %v3594_v54 = vsel %vm893_vm2, %v6433_v39, 0.0 }
0x1191   : > { %3595 = vadd.xlane.f32.xlu1 %v3594_v54  ;;  %v3591_v51 = vsel %vm893_vm2, %v6435_v40, 0.0  ;;  %v4791_v54 = vld [vmem:[%s7714_s5 + $0x1] ss:$0 sm:$0xff] }
0x1192   : > { %3592 = vadd.xlane.f32.xlu0 %v3591_v51 }
0x1193   : > { %v6437_v31 = vpop.eup %6436 }
0x1194   : > { %v6439_v41 = vpop.eup %6438  ;;  %v3780_v42 = vsel %vm893_vm2, %v6437_v31, 0.0 }
0x1195   : > { %3781 = vadd.xlane.f32.xlu1 %v3780_v42  ;;  %v3777_v53 = vsel %vm893_vm2, %v6439_v41, 0.0 }
0x1196   : > { %3778 = vadd.xlane.f32.xlu0 %v3777_v53 }
0x1216   : > { %v3224_v32 = vpop.xlane.xlu1 %3223 }
0x1217   : > { %6440 = vrcp.f32 %v3224_v32  ;;  %v3221_v48 = vpop.xlane.xlu0 %3220 }
0x1218   : > { %6442 = vrcp.f32 %v3221_v48  ;;  %v4020_v48 = vld [vmem:[#allocation8 + $0x188] sm:$0xff] }
0x121a   : > { %v3410_v1 = vpop.xlane.xlu1 %3409 }
0x121b   : > { %v3407_v44 = vpop.xlane.xlu0 %3406 }
0x121c   : > { %6444 = vrcp.f32 %v3407_v44  ;;  %v4023_v44 = vld [vmem:[#allocation8 + $0x1a0] sm:$0xff] }
0x121d   : > { %6446 = vrcp.f32 %v3410_v1  ;;  %v4019_v1 = vld [vmem:[#allocation8 + $0x180] sm:$0xff] }
0x121e   : > { %v3596_v38 = vpop.xlane.xlu1 %3595 }
0x121f   : > { %v3593_v0 = vpop.xlane.xlu0 %3592 }
0x1220   : > { %6448 = vrcp.f32 %v3593_v0  ;;  %v6064_v0 = vpack.c.bf16 %v4023_v44, %v4020_v48  ;;  %v4049_v44 = vld [vmem:[#allocation8 + $0x270] sm:$0xff] }
0x1221   : > { %v6441_v55 = vpop.eup %6440  ;;  %6450 = vrcp.f32 %v3596_v38 }
0x1222   : > { %v6443_v47 = vpop.eup %6442  ;;  %v3228_v45 = vmul.f32 %v6441_v55, %v6425_v29  ;;  %v3782_v59 = vpop.xlane.xlu1 %3781  ;;  %v4022_v55 = vld [vmem:[#allocation8 + $0x198] sm:$0xff]  ;;  %6065 = vmatprep.subr.bf16.mxu1 %v6064_v0  ;;  %v4051_v0 = vld [vmem:[#allocation8 + $0x280] sm:$0xff] }
0x1223   : > { %v3227_v58 = vmul.f32 %v6443_v47, %v6427_v36  ;;  %v3779_v50 = vpop.xlane.xlu0 %3778  ;;  %v3884_v36 = vld [vmem:[#allocation7 + $0xd8] sm:$0xff]  ;;  %v4021_v47 = vld [vmem:[#allocation8 + $0x190] sm:$0xff] }
0x1224   : > { %6452 = vrcp.f32 %v3779_v50  ;;  %v6052_v22 = vpack.c.bf16 %v3884_v36, %v3883_v21  ;;  %v4026_v50 = vld [vmem:[#allocation8 + $0x1b8] sm:$0xff]  ;;  %v4037_v21 = vld [vmem:[#allocation8 + $0x210] sm:$0xff]  ;;  %v4040_v36 = vld [vmem:[#allocation8 + $0x228] sm:$0xff] }
0x1225   : > { %5439 = vmatprep.mubr.msk.f32.mxu0 %vm893_vm2, %v3227_v58  ;;  %6454 = vrcp.f32 %v3782_v59  ;;  %v4024_v58 = vld [vmem:[#allocation8 + $0x1a8] sm:$0xff] }
0x1226   : > { %v6445_v56 = vpop.eup %6444  ;;  %5440 = vmatmul.mubr.msk.f32.vlgmr.msra.gmra.mrb[26].mxu0 %vm893_vm2, %v3228_v45  ;;  %v6066_v45 = vpack.c.bf16 %v4022_v55, %v4019_v1  ;;  %v6096_v38 = vpack.c.bf16 %v4024_v58, %v4021_v47  ;;  %v4052_v1 = vld [vmem:[#allocation8 + $0x288] sm:$0xff]  ;;  %v4054_v47 = vld [vmem:[#allocation8 + $0x298] sm:$0xff] }
0x1227   : > { %6011 = vmatpush3.bf16.msk.msra.mxu0 %vm7265_vm7, %v7447_v34  ;;  %v3413_v63 = vmul.f32 %v6445_v56, %v6431_v52  ;;  %v6447_v2 = vpop.eup %6446  ;;  %v3887_v52 = vld [vmem:[#allocation7 + $0xf0] sm:$0xff]  ;;  %v6086_v55 = vpack.c.bf16 %v4052_v1, %v4049_v44  ;;  %v4056_v58 = vld [vmem:[#allocation8 + $0x2a8] sm:$0xff]  ;;  %v4264_v1 = vld [vmem:[#allocation10 + $0x220] sm:$0xff] }
0x1228   : > { %6018 = vmatprep.subr.msk.bf16.mxu0 %vm7293_vm3, %v7447_v34  ;;  %v3414_v23 = vmul.f32 %v6447_v2, %v6429_v33  ;;  %v6056_v33 = vpack.c.bf16 %v3886_v30, %v3885_v28  ;;  %v6060_v37 = vpack.c.bf16 %v3888_v35, %v3887_v52  ;;  %v4029_v56 = vld [vmem:[#allocation8 + $0x1d0] sm:$0xff]  ;;  %v4027_v2 = vld [vmem:[#allocation8 + $0x1c0] sm:$0xff]  ;;  %6067 = vmatpush1.bf16.msra.mxu1 %v6066_v45  ;;  %v4042_v30 = vld [vmem:[#allocation8 + $0x238] sm:$0xff] }
0x1229   : > { %5453 = vmatprep.mubr.msk.f32.mxu0 %vm893_vm2, %v3413_v63  ;;  %v6068_v63 = vpack.c.bf16 %v4029_v56, %v4026_v50  ;;  %v6078_v28 = vpack.c.bf16 %v4040_v36, %v4037_v21  ;;  %v4044_v52 = vld [vmem:[#allocation8 + $0x248] sm:$0xff]  ;;  %v4059_v45 = vld [vmem:[#allocation8 + $0x2c0] sm:$0xff] }
0x122a   : > { %v6449_v3 = vpop.eup %6448  ;;  %v6080_v35 = vpack.c.bf16 %v4047_v27, %v4044_v52  ;;  %v6088_v50 = vpack.c.bf16 %v4059_v45, %v4056_v58  ;;  %v4055_v56 = vld [vmem:[#allocation8 + $0x2a0] sm:$0xff]  ;;  %v4245_v27 = vld [vmem:[#allocation10 + $0x188] sm:$0xff] }
0x122b   : > { %v3599_v49 = vmul.f32 %v6449_v3, %v6435_v40  ;;  %v6451_v43 = vpop.eup %6450  ;;  %v4030_v3 = vld [vmem:[#allocation8 + $0x1d8] sm:$0xff]  ;;  %6069 = vmatprep.subr.bf16.mxu1 %v6068_v63  ;;  %v4057_v63 = vld [vmem:[#allocation8 + $0x2b0] sm:$0xff]  ;;  %v4794_v21 = vld [vmem:[%s7786_s11 + $0x1] ss:$0 sm:$0xff] }
0x122c   : > { %v3600_v60 = vmul.f32 %v6451_v43, %v6433_v39  ;;  %v6100_v59 = vpack.c.bf16 %v4030_v3, %v4027_v2  ;;  %v4035_v43 = vld [vmem:[#allocation8 + $0x200] sm:$0xff]  ;;  %v4062_v2 = vld [vmem:[#allocation8 + $0x2d8] sm:$0xff]  ;;  %v4065_v3 = vld [vmem:[#allocation8 + $0x2f0] sm:$0xff] }
0x122d   : > { %v4244_v52 = vld [vmem:[#allocation10 + $0x180] sm:$0xff] }
0x122e   : > { %5454 = vmatmul.mubr.msk.f32.vlgmr.msra.gmra.mrb[26].mxu0 %vm893_vm2, %v3414_v23  ;;  %v6453_v6 = vpop.eup %6452  ;;  %v4248_v45 = vld [vmem:[#allocation10 + $0x1a0] sm:$0xff] }
0x122f   : > { %6021 = vmatpush3.bf16.msk.msra.mxu0 %vm7293_vm3, %v7447_v34  ;;  %5467 = vmatprep.mubr.msk.f32.mxu0 %vm893_vm2, %v3599_v49  ;;  %v3785_v7 = vmul.f32 %v6453_v6, %v6439_v41  ;;  %v6455_v62 = vpop.eup %6454  ;;  %v4032_v49 = vld [vmem:[#allocation8 + $0x1e8] sm:$0xff]  ;;  %v4034_v6 = vld [vmem:[#allocation8 + $0x1f8] sm:$0xff] }
0x1230   : > { %6028 = vmatprep.subr.msk.bf16.mxu0 %vm7307_vm10, %v7447_v34  ;;  %v3786_v11 = vmul.f32 %v6455_v62, %v6437_v31  ;;  %v6072_v5 = vpack.c.bf16 %v4035_v43, %v4032_v49  ;;  %v6074_v62 = vpack.c.bf16 %v4034_v6, %v4031_v46  ;;  %v4063_v49 = vld [vmem:[#allocation8 + $0x2e0] sm:$0xff]  ;;  %v4066_v43 = vld [vmem:[#allocation8 + $0x2f8] sm:$0xff]  ;;  %v6092_v46 = vpack.c.bf16 %v4065_v3, %v4062_v2  ;;  %v4064_v6 = vld [vmem:[#allocation8 + $0x2e8] sm:$0xff] }
0x1231   : > { %v4250_v3 = vld [vmem:[#allocation10 + $0x1b0] sm:$0xff] }
0x1236   : > { %5468 = vmatmul.mubr.msk.f32.vlgmr.msra.gmra.mrb[26].mxu0 %vm893_vm2, %v3600_v60  ;;  %v4033_v60 = vld [vmem:[#allocation8 + $0x1f0] sm:$0xff] }
0x1237   : > { %6031 = vmatpush3.bf16.msk.msra.mxu0 %vm7307_vm10, %v7447_v34  ;;  %5481 = vmatprep.mubr.msk.f32.mxu0 %vm893_vm2, %v3785_v7  ;;  %v3881_v34 = vld [vmem:[#allocation7 + $0xc0] sm:$0xff] }
0x1238   : > { %6033 = vmatprep.subr.bf16.mxu0 %v6032_v61  ;;  %v6048_v29 = vpack.c.bf16 %v3882_v20, %v3881_v34  ;;  %v4038_v34 = vld [vmem:[#allocation8 + $0x218] sm:$0xff]  ;;  %v4041_v20 = vld [vmem:[#allocation8 + $0x230] sm:$0xff] }
0x123e   : > { %5482 = vmatmul.mubr.msk.f32.vlgmr.msra.gmra.mrb[26].mxu0 %vm893_vm2, %v3786_v11 }
0x123f   : > { %6035 = vmatpush3.bf16.msra.mxu0 %v6032_v61  ;;  %v4036_v61 = vld [vmem:[#allocation8 + $0x208] sm:$0xff] }
0x1240   : > { %6037 = vmatprep.subr.bf16.mxu0 %v6036_v12  ;;  %v6104_v7 = vpack.c.bf16 %v4036_v61, %v4033_v60  ;;  %v6124_v60 = vpack.c.bf16 %v4066_v43, %v4063_v49  ;;  %v4268_v49 = vld [vmem:[#allocation10 + $0x240] sm:$0xff]  ;;  %v4269_v43 = vld [vmem:[#allocation10 + $0x248] sm:$0xff] }
0x1243   : > { %6039 = vmatpush3.bf16.msra.mxu0 %v6036_v12 }
0x1244   : > { %6041 = vmatprep.subr.bf16.mxu0 %v6040_v24 }
0x1247   : > { %6043 = vmatpush3.bf16.msra.mxu0 %v6040_v24 }
0x1248   : > { %6045 = vmatprep.subr.bf16.mxu0 %v6044_v26 }
0x124b   : > { %6047 = vmatpush3.bf16.msra.mxu0 %v6044_v26 }
0x124c   : > { %6049 = vmatprep.subr.bf16.mxu0 %v6048_v29 }
0x124f   : > { %6051 = vmatpush3.bf16.msra.mxu0 %v6048_v29  ;;  %v6076_v29 = vpack.c.bf16 %v4041_v20, %v4038_v34 }
0x1250   : > { %6053 = vmatprep.subr.bf16.mxu0 %v6052_v22 }
0x1253   : > { %6055 = vmatpush3.bf16.msra.mxu0 %v6052_v22  ;;  %v4039_v22 = vld [vmem:[#allocation8 + $0x220] sm:$0xff] }
0x1254   : > { %6057 = vmatprep.subr.bf16.mxu0 %v6056_v33 }
0x1257   : > { %6059 = vmatpush3.bf16.msra.mxu0 %v6056_v33  ;;  %v6108_v33 = vpack.c.bf16 %v4042_v30, %v4039_v22 }
0x1258   : > { %6061 = vmatprep.subr.bf16.mxu0 %v6060_v37 }
0x125b   : > { %6063 = vmatpush3.bf16.msra.mxu0 %v6060_v37  ;;  %v4043_v37 = vld [vmem:[#allocation8 + $0x240] sm:$0xff] }
0x125c   : > { %6097 = vmatprep.subr.bf16.mxu0 %v6096_v38 }
0x1311   : > { %v5483_v39 = vpop.f32.mrb[26].mxu0 }
0x1312   : > { %v3861_v40 = vpop.f32.mrb[27].mxu0 }
0x1313   : > { %5516 = vmatprep.mubr.f32.mxu0 %v3861_v40  ;;  %v4045_v40 = vld [vmem:[#allocation8 + $0x250] sm:$0xff] }
0x1314   : > { %5517 = vmatmul.mubr.f32.vlgmr.msra.gmra.mrb[30].mxu0 %v5483_v39  ;;  %v4046_v39 = vld [vmem:[#allocation8 + $0x258] sm:$0xff] }
0x1315   : > { %6099 = vmatpush3.bf16.msra.mxu0 %v6096_v38  ;;  %v6116_v38 = vpack.c.bf16 %v4054_v47, %v4051_v0  ;;  %v4265_v0 = vld [vmem:[#allocation10 + $0x228] sm:$0xff] }
0x1316   : > { %6101 = vmatprep.subr.bf16.mxu0 %v6100_v59  ;;  %v6136_v58 = vpack.c.bf16 %v4265_v0, %v4264_v1  ;;  %v4796_v1 = vld [vmem:[%s7788_s26 + $0x3] sm:$0x7] }
0x1317   : > { %v4073_v0 = vrot.slane %v4796_v1, %v2135_v13 }
0x1319   : > { %6103 = vmatpush3.bf16.msra.mxu0 %v6100_v59 }
0x131a   : > { %6105 = vmatprep.subr.bf16.mxu0 %v6104_v7 }
0x131d   : > { %6107 = vmatpush3.bf16.msra.mxu0 %v6104_v7  ;;  %v4260_v7 = vld [vmem:[#allocation10 + $0x200] sm:$0xff] }
0x131e   : > { %6109 = vmatprep.subr.bf16.mxu0 %v6108_v33 }
0x1321   : > { %6111 = vmatpush3.bf16.msra.mxu0 %v6108_v33 }
0x13e7   : > { %v5518_v51 = vpop.f32.mrb[30].mxu0 }
0x13e8   : > { %v3969_v31 = vadd.f32 %v5518_v51, %v4791_v54  ;;  %v3963_v41 = vpop.f32.mrb[31].mxu0  ;;  %v4048_v51 = vld [vmem:[#allocation8 + $0x268] sm:$0xff] }
0x13e9   : > { %v3964_v42 = vadd.f32 %v4791_v54, %v3963_v41  ;;  %v6082_v54 = vpack.c.bf16 %v4046_v39, %v4043_v37  ;;  %v4053_v41 = vld [vmem:[#allocation8 + $0x290] sm:$0xff]  ;;  %v4263_v39 = vld [vmem:[#allocation10 + $0x218] sm:$0xff] }
0x13ea   : > { %v7610_v53 = vadd.f32 %v3969_v31, %v7409_v15  ;;  %v4025_v15 = vld [vmem:[#allocation8 + $0x1b0] sm:$0xff]  ;;  %v4050_v31 = vld [vmem:[#allocation8 + $0x278] sm:$0xff] }
0x13eb   : > { %v7613_v32 = vadd.f32 %v3964_v42, %v7405_v4  ;;  %v4028_v4 = vld [vmem:[#allocation8 + $0x1c8] sm:$0xff]  ;;  %v6112_v42 = vpack.c.bf16 %v4048_v51, %v4045_v40  ;;  %v6084_v48 = vpack.c.bf16 %v4053_v41, %v4050_v31  ;;  %v4278_v40 = vld [vmem:[#allocation10 + $0x290] sm:$0xff]  ;;  %v6130_v31 = vpack.c.bf16 %v4245_v27, %v4244_v52 }
0x13ec   : > { %3980 = vadd.xlane.f32.xlu1 %v7610_v53  ;;  %v6070_v23 = vpack.c.bf16 %v4028_v4, %v4025_v15  ;;  %v4058_v15 = vld [vmem:[#allocation8 + $0x2b8] sm:$0xff]  ;;  %v4060_v4 = vld [vmem:[#allocation8 + $0x2c8] sm:$0xff] }
0x13ed   : > { %3978 = vadd.xlane.f32.xlu0 %v7613_v32  ;;  %6113 = vmatprep.subr.bf16.mxu0 %v6112_v42  ;;  %v6090_v59 = vpack.c.bf16 %v4058_v15, %v4055_v56  ;;  %v4266_v56 = vld [vmem:[#allocation10 + $0x230] sm:$0xff]  ;;  %v4267_v15 = vld [vmem:[#allocation10 + $0x238] sm:$0xff]  ;;  %v4289_v52 = vld [vmem:[#allocation10 + $0x2e8] sm:$0xff] }
0x13ee   : > { %6071 = vmatpush1.bf16.msra.mxu1 %v6070_v23  ;;  %6115 = vmatpush3.bf16.msra.mxu0 %v6112_v42  ;;  %v6120_v23 = vpack.c.bf16 %v4060_v4, %v4057_v63  ;;  %v4282_v63 = vld [vmem:[#allocation10 + $0x2b0] sm:$0xff]  ;;  %v4283_v4 = vld [vmem:[#allocation10 + $0x2b8] sm:$0xff] }
0x13ef   : > { %6073 = vmatprep.subr.bf16.mxu1 %v6072_v5  ;;  %6117 = vmatprep.subr.bf16.mxu0 %v6116_v38  ;;  %v4061_v5 = vld [vmem:[#allocation8 + $0x2d0] sm:$0xff] }
0x13f0   : > { %v6094_v61 = vpack.c.bf16 %v4064_v6, %v4061_v5  ;;  %v4285_v5 = vld [vmem:[#allocation10 + $0x2c8] sm:$0xff] }
0x13f2   : > { %6075 = vmatpush1.bf16.msra.mxu1 %v6074_v62  ;;  %6119 = vmatpush3.bf16.msra.mxu0 %v6116_v38  ;;  %v4261_v62 = vld [vmem:[#allocation10 + $0x208] sm:$0xff] }
0x13f3   : > { %6077 = vmatprep.subr.bf16.mxu1 %v6076_v29  ;;  %6121 = vmatprep.subr.bf16.mxu0 %v6120_v23  ;;  %v4249_v38 = vld [vmem:[#allocation10 + $0x1a8] sm:$0xff] }
0x13f4   : > { %v6138_v2 = vpack.c.bf16 %v4249_v38, %v4248_v45 }
0x13f6   : > { %6079 = vmatpush1.bf16.msra.mxu1 %v6078_v28  ;;  %6123 = vmatpush3.bf16.msra.mxu0 %v6120_v23  ;;  %v4795_v28 = vld [vmem:[%s7787_s9 + $0x1] ss:$0 sm:$0xff]  ;;  %v4251_v23 = vld [vmem:[#allocation10 + $0x1b8] sm:$0xff] }
0x13f7   : > { %6081 = vmatprep.subr.bf16.mxu1 %v6080_v35  ;;  %6125 = vmatprep.subr.bf16.mxu0 %v6124_v60  ;;  %v4262_v35 = vld [vmem:[#allocation10 + $0x210] sm:$0xff]  ;;  %v6142_v6 = vpack.c.bf16 %v4251_v23, %v4250_v3 }
0x13f8   : > { %v6132_v42 = vpack.c.bf16 %v4263_v39, %v4262_v35  ;;  %v4274_v35 = vld [vmem:[#allocation10 + $0x270] sm:$0xff] }
0x13fa   : > { %6083 = vmatpush1.bf16.msra.mxu1 %v6082_v54  ;;  %6127 = vmatpush3.bf16.msra.mxu0 %v6124_v60  ;;  %v4279_v54 = vld [vmem:[#allocation10 + $0x298] sm:$0xff]  ;;  %v6144_v60 = vpack.c.bf16 %v4269_v43, %v4268_v49 }
0x13fb   : > { %6085 = vmatprep.subr.bf16.mxu1 %v6084_v48  ;;  %v4246_v48 = vld [vmem:[#allocation10 + $0x190] sm:$0xff]  ;;  %v6164_v44 = vpack.c.bf16 %v4279_v54, %v4278_v40  ;;  %v4259_v54 = vld [vmem:[#allocation10 + $0x1f8] sm:$0xff] }
0x13fc   : > { %v4258_v40 = vld [vmem:[#allocation10 + $0x1f0] sm:$0xff] }
0x13fe   : > { %6087 = vmatpush1.bf16.msra.mxu1 %v6086_v55  ;;  %v4281_v55 = vld [vmem:[#allocation10 + $0x2a8] sm:$0xff] }
0x13ff   : > { %6089 = vmatprep.subr.bf16.mxu1 %v6088_v50 }
0x1402   : > { %6091 = vmatpush1.bf16.msra.mxu1 %v6090_v59  ;;  %v6172_v59 = vpack.c.bf16 %v4283_v4, %v4282_v63  ;;  %v4456_v63 = vld [vmem:[#allocation11 + $0x10] sm:$0xff]  ;;  %v4457_v4 = vld [vmem:[#allocation11 + $0x18] sm:$0xff] }
0x1403   : > { %6093 = vmatprep.subr.bf16.mxu1 %v6092_v46  ;;  %v4284_v46 = vld [vmem:[#allocation10 + $0x2c0] sm:$0xff] }
0x1406   : > { %6095 = vmatpush1.bf16.msra.mxu1 %v6094_v61  ;;  %v4252_v61 = vld [vmem:[#allocation10 + $0x1c0] sm:$0xff] }
0x1479   : > { %v3981_v8 = vpop.xlane.xlu1 %3980 }
0x147a   : > { %v3983_v9 = vmul.f32 0.010416667, %v3981_v8  ;;  %v3979_v11 = vpop.xlane.xlu0 %3978  ;;  %v6128_v8 = vpack.c.bf16 %v4261_v62, %v4260_v7  ;;  %v4253_v7 = vld [vmem:[#allocation10 + $0x1c8] sm:$0xff]  ;;  %v6176_v62 = vpack.c.bf16 %v4285_v5, %v4284_v46 }
0x147b   : > { %v3982_v12 = vmul.f32 0.010416667, %v3979_v11  ;;  %v4277_v11 = vld [vmem:[#allocation10 + $0x288] sm:$0xff] }
0x147c   : > { %v3985_v14 = vsub.f32 %v7610_v53, %v3983_v9  ;;  %v4276_v9 = vld [vmem:[#allocation10 + $0x280] sm:$0xff]  ;;  %6129 = vmatprep.subr.bf16.mxu1 %v6128_v8  ;;  %v4270_v8 = vld [vmem:[#allocation10 + $0x250] sm:$0xff]  ;;  %v4459_v46 = vld [vmem:[#allocation11 + $0x28] sm:$0xff] }
0x147d   : > { %v3984_v25 = vsub.f32 %v7613_v32, %v3982_v12  ;;  %v6160_v12 = vpack.c.bf16 %v4277_v11, %v4276_v9  ;;  %v4271_v9 = vld [vmem:[#allocation10 + $0x258] sm:$0xff]  ;;  %v4286_v11 = vld [vmem:[#allocation10 + $0x2d0] sm:$0xff] }
0x147e   : > { %v7621_v24 = vsel %vm563_vm0, %v3985_v14, 0.0 }
0x147f   : > { %v3989_v18 = vmul.f32 %v7621_v24, %v7621_v24  ;;  %v7627_v19 = vsel %vm563_vm0, %v3984_v25, 0.0  ;;  %6161 = vmatprep.subr.bf16.mxu0 %v6160_v12 }
0x1480   : > { %v3988_v26 = vmul.f32 %v7627_v19, %v7627_v19 }
0x1481   : > { %3992 = vadd.xlane.f32.xlu1 %v3989_v18 }
0x1482   : > { %3990 = vadd.xlane.f32.xlu0 %v3988_v26 }
0x150e   : > { %v3993_v14 = vpop.xlane.xlu1 %3992 }
0x150f   : > { %v3995_v25 = vmul.f32 0.010416667, %v3993_v14  ;;  %v3991_v18 = vpop.xlane.xlu0 %3990  ;;  %v6146_v14 = vpack.c.bf16 %v4253_v7, %v4252_v61  ;;  %v4460_v61 = vld [vmem:[#allocation11 + $0x30] sm:$0xff]  ;;  %v4461_v7 = vld [vmem:[#allocation11 + $0x38] sm:$0xff] }
0x1510   : > { %v3994_v26 = vmul.f32 0.010416667, %v3991_v18  ;;  %v4254_v18 = vld [vmem:[#allocation10 + $0x1d0] sm:$0xff] }
0x1511   : > { %v3997_v34 = vadd.f32 1e-05, %v3995_v25  ;;  %v6148_v25 = vpack.c.bf16 %v4271_v9, %v4270_v8  ;;  %v4462_v8 = vld [vmem:[#allocation11 + $0x40] sm:$0xff]  ;;  %v4463_v9 = vld [vmem:[#allocation11 + $0x48] sm:$0xff] }
0x1512   : > { %v3996_v20 = vadd.f32 1e-05, %v3994_v26  ;;  %v4255_v26 = vld [vmem:[#allocation10 + $0x1d8] sm:$0xff] }
0x1513   : > { %6456 = vrsqrt.f32 %v3997_v34 }
0x1514   : > { %6458 = vrsqrt.f32 %v3996_v20  ;;  %v4272_v20 = vld [vmem:[#allocation10 + $0x260] sm:$0xff] }
0x151d   : > { %v6457_v29 = vpop.eup %6456 }
0x151e   : > { %v6459_v36 = vpop.eup %6458  ;;  %v4001_v22 = vmul.f32 %v6457_v29, %v7621_v24  ;;  %v4247_v24 = vld [vmem:[#allocation10 + $0x198] sm:$0xff]  ;;  %v4273_v29 = vld [vmem:[#allocation10 + $0x268] sm:$0xff] }
0x151f   : > { %v4000_v30 = vmul.f32 %v6459_v36, %v7627_v19  ;;  %v4280_v19 = vld [vmem:[#allocation10 + $0x2a0] sm:$0xff]  ;;  %v6134_v47 = vpack.c.bf16 %v4247_v24, %v4246_v48  ;;  %v6152_v36 = vpack.c.bf16 %v4273_v29, %v4272_v20  ;;  %v4455_v24 = vld [vmem:[#allocation11 + $0x8] sm:$0xff]  ;;  %v4468_v20 = vld [vmem:[#allocation11 + $0x70] sm:$0xff] }
0x1520   : > { %v4009_v33 = vmul.f32 %v4794_v21, %v4001_v22  ;;  %v6168_v50 = vpack.c.bf16 %v4281_v55, %v4280_v19  ;;  %v4256_v22 = vld [vmem:[#allocation10 + $0x1e0] sm:$0xff]  ;;  %v4077_v19 = vrot.slane %v4796_v1, %v2139_v16  ;;  %v4081_v55 = vrot.slane %v4796_v1, %v2143_v17  ;;  %v4469_v29 = vld [vmem:[#allocation11 + $0x78] sm:$0xff] }
0x1521   : > { %v4008_v37 = vmul.f32 %v4794_v21, %v4000_v30  ;;  %v6150_v21 = vpack.c.bf16 %v4255_v26, %v4254_v18  ;;  %v4288_v30 = vld [vmem:[#allocation10 + $0x2e0] sm:$0xff]  ;;  %v6196_v16 = vpack.c.bf16 %v4457_v4, %v4456_v63  ;;  %v4467_v26 = vld [vmem:[#allocation11 + $0x68] sm:$0xff] }
0x1522   : > { %v4017_v41 = vadd.f32 %v4795_v28, %v4009_v33  ;;  %v6184_v27 = vpack.c.bf16 %v4289_v52, %v4288_v30  ;;  %v4454_v48 = vld [vmem:[#allocation11] sm:$0xff] }
0x1523   : > { %v4016_v51 = vadd.f32 %v4795_v28, %v4008_v37  ;;  %v4257_v28 = vld [vmem:[#allocation10 + $0x1e8] sm:$0xff]  ;;  %v4275_v37 = vld [vmem:[#allocation10 + $0x278] sm:$0xff]  ;;  %v4458_v17 = vld [vmem:[#allocation11 + $0x20] sm:$0xff] }
0x1524   : > { %v6154_v33 = vpack.c.bf16 %v4257_v28, %v4256_v22  ;;  %v6156_v39 = vpack.c.bf16 %v4275_v37, %v4274_v35  ;;  %v4466_v18 = vld [vmem:[#allocation11 + $0x60] sm:$0xff] }
0x1525   : > { %4150 = vmatmul.mubr.f32.vlgmr.msra.gmra.mrb[24].mxu1 %v4016_v51  ;;  %5551 = vmatprep.mubr.f32.mxu0 %v4016_v51  ;;  %v4290_v51 = vld [vmem:[#allocation10 + $0x2f0] sm:$0xff]  ;;  %v4798_v37 = vld [vmem:[%s7789_s14 + $0x1] ss:$0 sm:$0xff] }
0x1526   : > { %5552 = vmatmul.mubr.f32.vlgmr.msra.gmra.mrb[32].mxu0 %v4017_v41  ;;  %4155 = vmatprep.mubr.f32.mxu1 %v6720_v10  ;;  %v6140_v10 = vpack.c.bf16 %v4267_v15, %v4266_v56 }
0x1527   : > { %6131 = vmatpush3.bf16.msra.mxu1 %v6130_v31  ;;  %6163 = vmatpush3.bf16.msra.mxu0 %v6160_v12  ;;  %v4287_v12 = vld [vmem:[#allocation10 + $0x2d8] sm:$0xff]  ;;  %v6158_v31 = vpack.c.bf16 %v4259_v54, %v4258_v40 }
0x1528   : > { %6133 = vmatprep.subr.bf16.mxu1 %v6132_v42  ;;  %6165 = vmatprep.subr.bf16.mxu0 %v6164_v44  ;;  %v6180_v34 = vpack.c.bf16 %v4287_v12, %v4286_v11  ;;  %v6208_v11 = vpack.c.bf16 %v4463_v9, %v4462_v8  ;;  %v4464_v12 = vld [vmem:[#allocation11 + $0x50] sm:$0xff] }
0x1529   : > { %4156 = vmatmul.mubr.f32.gmra.mrb[26].mxu1 %v4017_v41  ;;  %v4291_v41 = vld [vmem:[#allocation10 + $0x2f8] sm:$0xff] }
0x152a   : > { %v6188_v42 = vpack.c.bf16 %v4291_v41, %v4290_v51 }
0x152b   : > { %6135 = vmatpush3.bf16.msra.mxu1 %v6134_v47  ;;  %6167 = vmatpush3.bf16.msra.mxu0 %v6164_v44  ;;  %v6192_v44 = vpack.c.bf16 %v4455_v24, %v4454_v48 }
0x152c   : > { %6137 = vmatprep.subr.bf16.mxu1 %v6136_v58  ;;  %6169 = vmatprep.subr.bf16.mxu0 %v6168_v50 }
0x152f   : > { %6139 = vmatpush3.bf16.msra.mxu1 %v6138_v2  ;;  %6171 = vmatpush3.bf16.msra.mxu0 %v6168_v50 }
0x1530   : > { %6141 = vmatprep.subr.bf16.mxu1 %v6140_v10  ;;  %6173 = vmatprep.subr.bf16.mxu0 %v6172_v59 }
0x1533   : > { %6143 = vmatpush3.bf16.msra.mxu1 %v6142_v6  ;;  %6175 = vmatpush3.bf16.msra.mxu0 %v6172_v59 }
0x1534   : > { %6145 = vmatprep.subr.bf16.mxu1 %v6144_v60  ;;  %6177 = vmatprep.subr.bf16.mxu0 %v6176_v62  ;;  %v6200_v60 = vpack.c.bf16 %v4459_v46, %v4458_v17 }
0x1537   : > { %6147 = vmatpush3.bf16.msra.mxu1 %v6146_v14  ;;  %6179 = vmatpush3.bf16.msra.mxu0 %v6176_v62  ;;  %v6204_v62 = vpack.c.bf16 %v4461_v7, %v4460_v61  ;;  %v4465_v14 = vld [vmem:[#allocation11 + $0x58] sm:$0xff] }
0x1538   : > { %6149 = vmatprep.subr.bf16.mxu1 %v6148_v25  ;;  %6181 = vmatprep.subr.bf16.mxu0 %v6180_v34  ;;  %v6212_v25 = vpack.c.bf16 %v4465_v14, %v4464_v12 }
0x153b   : > { %6151 = vmatpush3.bf16.msra.mxu1 %v6150_v21  ;;  %6183 = vmatpush3.bf16.msra.mxu0 %v6180_v34  ;;  %v6216_v34 = vpack.c.bf16 %v4467_v26, %v4466_v18  ;;  %v6220_v21 = vpack.c.bf16 %v4469_v29, %v4468_v20 }
0x153c   : > { %6153 = vmatprep.subr.bf16.mxu1 %v6152_v36  ;;  %6185 = vmatprep.subr.bf16.mxu0 %v6184_v27 }
0x153f   : > { %6155 = vmatpush3.bf16.msra.mxu1 %v6154_v33  ;;  %6187 = vmatpush3.bf16.msra.mxu0 %v6184_v27 }
0x1540   : > { %6157 = vmatprep.subr.bf16.mxu1 %v6156_v39  ;;  %6189 = vmatprep.subr.bf16.mxu0 %v6188_v42 }
0x1543   : > { %6159 = vmatpush3.bf16.msra.mxu1 %v6158_v31  ;;  %6191 = vmatpush3.bf16.msra.mxu0 %v6188_v42  ;;  %v4799_v42 = vld [vmem:[%s7791_s22] ss:$0 sm:$0xff]  ;;  %s6636_s22 = scalar_lea.vmem %s6635_s18, 512 }
0x1544   : > { %6193 = vmatprep.subr.bf16.mxu1 %v6192_v44  ;;  %p6638_p0 = scmp.lt.s32.totalorder %s6636_s22, %s6630_s13 }
0x1546   : > { %p6639_p2 = por %p6638_p0, %p6637_p13 }
0x1548   : > { %p6640_p8 = pnand %p6639_p2, %p6633_p1 }
0x15f8   : > { %v4151_v47 = vpop.f32.mrb[24].mxu1 }
0x15f9   : > { %v4152_v58 = vadd.f32 %v4151_v47, %v4073_v0  ;;  %v4153_v45 = vpop.f32.mrb[25].mxu1  ;;  %v5553_v38 = vpop.f32.mrb[32].mxu0 }
0x15fa   : > { %v4154_v50 = vadd.f32 %v4153_v45, %v4077_v19  ;;  %v4234_v56 = vadd.f32 %v5553_v38, %v4081_v55  ;;  %v4228_v15 = vpop.f32.mrb[33].mxu0 }
0x15fb   : > { %v4229_v2 = vadd.f32 %v4228_v15, %v4081_v55  ;;  %v4237_v23 = vmax.f32 %v4152_v58, 0.0 }
0x15fc   : > { %v4238_v10 = vmax.f32 %v4154_v50, 0.0  ;;  %v4157_v3 = vpop.f32.mrb[26].mxu1  ;;  %v4242_v43 = vmax.f32 %v4234_v56, 0.0 }
0x15fd   : > { %v4239_v13 = vmax.f32 %v4229_v2, 0.0  ;;  %v4158_v59 = vadd.f32 %v4157_v3, %v4073_v0  ;;  %v4159_v49 = vpop.f32.mrb[27].mxu1 }
0x15fe   : > { %v4160_v57 = vadd.f32 %v4159_v49, %v4077_v19  ;;  %4356 = vmatprep.mubr.f32.mxu1 %v4238_v10 }
0x15ff   : > { %4357 = vmatmul.mubr.f32.vlgmr.msra.gmra.mrb[28].mxu1 %v4237_v23  ;;  %5586 = vmatprep.mubr.f32.mxu0 %v4239_v13  ;;  %v4240_v6 = vmax.f32 %v4158_v59, 0.0 }
0x1600   : > { %v4241_v5 = vmax.f32 %v4160_v57, 0.0  ;;  %5587 = vmatmul.mubr.f32.vlgmr.msra.gmra.mrb[34].mxu0 %v4242_v43  ;;  %6195 = vmatpush3.bf16.msra.mxu1 %v6192_v44 }
0x1601   : > { %6197 = vmatprep.subr.bf16.mxu1 %v6196_v16 }
0x1602   : > { %4361 = vmatprep.mubr.f32.mxu1 %v4241_v5 }
0x1603   : > { %4362 = vmatmul.mubr.f32.gmra.mrb[30].mxu1 %v4240_v6 }
0x1604   : > { %6199 = vmatpush3.bf16.msra.mxu1 %v6196_v16 }
0x1605   : > { %6201 = vmatprep.subr.bf16.mxu1 %v6200_v60 }
0x1608   : > { %6203 = vmatpush3.bf16.msra.mxu1 %v6200_v60 }
0x1609   : > { %6205 = vmatprep.subr.bf16.mxu1 %v6204_v62 }
0x160c   : > { %6207 = vmatpush3.bf16.msra.mxu1 %v6204_v62 }
0x160d   : > { %6209 = vmatprep.subr.bf16.mxu1 %v6208_v11 }
0x1610   : > { %6211 = vmatpush3.bf16.msra.mxu1 %v6208_v11 }
0x1611   : > { %6213 = vmatprep.subr.bf16.mxu1 %v6212_v25 }
0x1614   : > { %6215 = vmatpush3.bf16.msra.mxu1 %v6212_v25 }
0x1615   : > { %6217 = vmatprep.subr.bf16.mxu1 %v6216_v34 }
0x1618   : > { %6219 = vmatpush3.bf16.msra.mxu1 %v6216_v34 }
0x1619   : > { %6221 = vmatprep.subr.bf16.mxu1 %v6220_v21 }
0x161c   : > { %6223 = vmatpush3.bf16.msra.mxu1 %v6220_v21 }
0x16d2   : > { %v5099_v36 = vpop.f32.mrb[28].mxu1 }
0x16d3   : > { %v5100_v22 = vpop.f32.mrb[29].mxu1  ;;  %v5588_v28 = vpop.f32.mrb[34].mxu0 }
0x16d4   : > { %v5101_v30 = vadd.f32 %v5100_v22, %v5099_v36  ;;  %v4433_v33 = vpop.f32.mrb[35].mxu0 }
0x16d6   : > { %v4434_v52 = vadd.f32 %v5101_v30, %v4433_v33  ;;  %v5102_v27 = vpop.f32.mrb[30].mxu1 }
0x16d7   : > { %v5103_v35 = vpop.f32.mrb[31].mxu1 }
0x16d8   : > { %v4442_v39 = vadd.f32 %v4434_v52, %v7613_v32  ;;  %v5104_v40 = vadd.f32 %v5103_v35, %v5102_v27 }
0x16da   : > { %v4439_v54 = vadd.f32 %v5588_v28, %v5104_v40  ;;  %v4452_v51 = vadd.f32 %v4798_v37, %v4442_v39 }
0x16dc   : > { %v4443_v31 = vadd.f32 %v4439_v54, %v7610_v53  ;;  %5621 = vmatprep.mubr.f32.mxu1 %v4452_v51 }
0x16de   : > { %v4453_v41 = vadd.f32 %v4798_v37, %v4443_v31 }
0x16e0   : > { %5622 = vmatmul.mubr.f32.vlgmr.msra.gmra.mrb[32].mxu1 %v4453_v41 }
0x17b3   : > { %v5623_v48 = vpop.f32.mrb[32].mxu1 }
0x17b4   : > { %v4549_v53 = vadd.f32 %v5623_v48, %v4799_v42  ;;  %v4543_v32 = vpop.f32.mrb[33].mxu1 }
0x17b5   : > { %v4544_v24 = vadd.f32 %v4799_v42, %v4543_v32 }
0x17b6   : > { %4553 = vst [vmem:[%s558_s23 + $0x8] sm:$0xff] %v4549_v53 }
0x17b7   : > { %4552 = vst [vmem:[%s558_s23] sm:$0xff] %v4544_v24 }
0x17b8   : > { %6643 = shalt.err (!%p6640_p8)
}
0x17b9   : > { %s6644_s23 = scalar_lea.hbm %s7665_s0, 256  ;;  %s6648_s28 = scalar_lea.hbm %s7792_s24, 512 }
0x17ba   : > { %p6645_p6 = scmp.ne.s32.totalorder %s7665_s0, %s6644_s23  ;;  %p6649_p3 = scmp.lt.u32.totalorder %s7665_s0, %s7792_s24 }
0x17bb   : > { %p6650_p5 = scmp.lt.u32.totalorder %s6648_s28, %s6644_s23  ;;  %p6652_p7 = scmp.lt.u32.totalorder %s6644_s23, %s7665_s0 }
0x17bc   : > { %p6646_p10 = pnand %p6645_p6, %p7793_p4 }
0x17bd   : > { %p6651_p9 = por %p6650_p5, %p6649_p3 }
0x17be   : > { %p6647_p11 = pneg %p6646_p10 }
0x17bf   : > { %p6653_p12 = por %p6652_p7, %p6651_p9 }
0x17c1   : > { %p6654_p1 = pnand %p6653_p12, %p6647_p11 }
0x17c3   : > { %6657 = shalt.err (!%p6654_p1)
}
0x17c4   : > { %s6722_s13 = smov 128   ;;  %s6723_s22 = smov 8  }
0x17c5   : > { %6266 = dma.vmem_to_hbm [thread:$0]  (%p7793_p4), %s7660_s20, 256, %s7665_s0, %s4555_s17, %s6722_s13, %s6722_s13, %s6723_s22  }
0x17c6 PF: > { %s4583_s25 = sand.u32 1, %s6696_s29   ;;  %p7794_p13 = scmp.ne.s32.totalorder %s7750_s7, 0 }
0x17c7   : > { %p7795_p0 = scmp.ge.s32.totalorder %s6708_s16, 2  ;;  %s4584_s23 = scalar_lea.sflag [#allocation4], %s4583_s25 }
0x17c9   : > { %p6289_p2 = pnand %p7795_p0, %p7794_p13 }
0x17cb   : > { %6691 = dma.done.wait (!%p6289_p2), %s4584_s23, 256  }
0x17cc   : > { %6693 = vsyncadd (!%p6289_p2), %s4584_s23, 4294967040  ;;  %p30_p8 = scmp.ge.s32.totalorder %s6966_s21, 4   ;;  %s7796_s29 = smov %s6700_s30 }
0x17cd   : > { %s7797_s30 = smov %s6704_s15  ;;  %s7798_s15 = smov %s6978_s8 }
0x17ce   : > { %s7799_s16 = smov %s6966_s21  ;;  %32 = sbr.rel (!%p30_p8) target bundleno = 18 (0x12), region = 152 }
0x17d5   :  { %4589 = vsyncpa [#allocation3], 1 }
0x17d6   :  { %4591 = vsyncpa [#allocation3 + $0x1], 1 }
0x17d7   :  { %4592 = vsyncpa [#allocation6], 1 }
0x17d8   :  { %4593 = vsyncpa [#allocation9], 1 }
0x17d9   :  { %4594 = vsyncpa [#allocation12], 1 }
0x17da   :  { %4595 = vsyncpa [#allocation4], 1 }
0x17db   :  { %4597 = vsyncpa [#allocation4 + $0x1], 1 }

</bundles_post_ra>
